<compile_context>
chip_gen: v5e
topology: v5e:2x2
jax: 0.10.0
libtpu: 0.0.40
codegen_flags: <defaults>
</compile_context>

<pallas_src>
import functools

import jax
import jax.numpy as jnp
import numpy as np
from jax import lax
from jax.experimental import pallas as pl
from jax.experimental.pallas import tpu as pltpu


def _round_up(x, m):
    return (x + m - 1) // m * m


def lstm_tagger_kernel(emb_ref, w_ih_t_ref, w_hh_t_ref, b_ref,
                       w_out_t_ref, b_out_ref, out_ref,
                       gx_ref, hs_ref, h_ref, c_ref,
                       *, TC, Bt, Hp, unroll):
    """One (batch-tile, time-chunk) grid step of the LSTM tagger.

    emb_ref:    (TC, Bt, E)    wdtype  time-major chunk of embeddings
    w_ih_t_ref: (E, 4*Hp)      wdtype  gate blocks at lane-aligned offsets k*Hp
    w_hh_t_ref: (Hp, 4*Hp)     wdtype
    b_ref:      (1, 4*Hp)      f32     b_ih + b_hh (padded entries = 0)
    w_out_t_ref:(Hp, TAGP)     wdtype
    b_out_ref:  (1, TAGP)      f32     padded tag entries = -1e30 (f32 path only)
    out_ref:    (TC, Bt, TAGP) f32     log-softmax emissions (lane-dense)
    gx_ref:     (TC, Bt, 4*Hp) f32     scratch: per-chunk precomputed input gates
    hs_ref:     (TC, Bt, Hp)   wdtype  scratch: per-chunk hidden states
    h_ref:      (Bt, Hp)       wdtype  scratch: h carry across time chunks
    c_ref:      (Bt, Hp)       f32     scratch: c carry across time chunks
    """
    t_chunk = pl.program_id(1)

    # New batch tile begins a fresh sequence sweep: reset the carried state.
    @pl.when(t_chunk == 0)
    def _():
        h_ref[...] = jnp.zeros_like(h_ref)
        c_ref[...] = jnp.zeros_like(c_ref)

    w_hh_t = w_hh_t_ref[...]
    wdtype = w_hh_t.dtype

    # (1) Input projection + bias for the whole chunk in one MXU matmul,
    #     hoisted off the serial critical path.
    emb_flat = emb_ref[...].reshape(TC * Bt, -1)
    gx = (jnp.dot(emb_flat, w_ih_t_ref[...],
                  preferred_element_type=jnp.float32)
          + b_ref[...])
    gx_ref[...] = gx.reshape(TC, Bt, 4 * Hp)

    # (2) Recurrence: only h @ W_hh + elementwise cell math per step.
    def step(s, _):
        h = h_ref[...]                              # wdtype (bf16 carry kept)
        c = c_ref[...]                              # f32
        gates = gx_ref[s] + jnp.dot(h, w_hh_t,
                                    preferred_element_type=jnp.float32)
        # PyTorch gate order: input, forget, cell(g), output.
        # Gate blocks are Hp wide (multiple of 128) -> lane-aligned slices.
        i = jax.nn.sigmoid(gates[:, 0 * Hp:1 * Hp])
        f = jax.nn.sigmoid(gates[:, 1 * Hp:2 * Hp])
        g = jnp.tanh(gates[:, 2 * Hp:3 * Hp])
        o = jax.nn.sigmoid(gates[:, 3 * Hp:4 * Hp])
        c_new = f * c + i * g                       # f32 elementwise (v5e-safe)
        h_new = (o * jnp.tanh(c_new)).astype(wdtype)
        c_ref[...] = c_new
        h_ref[...] = h_new
        hs_ref[s] = h_new
        return 0

    lax.fori_loop(0, TC, step, 0, unroll=unroll)

    # (3) hidden2tag + log_softmax once for the whole chunk:
    #     one MXU call, batched EUP exp/log, one lane-dense store.
    tag = (jnp.dot(hs_ref[...].reshape(TC * Bt, Hp), w_out_t_ref[...],
                   preferred_element_type=jnp.float32)
           + b_out_ref[...])
    m = jnp.max(tag, axis=-1, keepdims=True)
    z = tag - m
    lse = jnp.log(jnp.sum(jnp.exp(z), axis=-1, keepdims=True))
    out_ref[...] = (z - lse).reshape(TC, Bt, -1)


def prepare_params(params, *, use_bf16=False):
    """One-time parameter prep: transpose, pad to TPU-friendly shapes, cast.

    bf16 MXU operands are fine on v5e/v6e/v7x (f32 accumulation, f32 gate math).
    """
    w_ih, w_hh = params["w_ih"], params["w_hh"]          # (4H,E), (4H,H)
    b_ih, b_hh = params["b_ih"], params["b_hh"]          # (4H,)
    w_out, b_out = params["w_out"], params["b_out"]      # (TAG,H), (TAG,)

    H = w_hh.shape[1]
    E = w_ih.shape[1]
    TAG = w_out.shape[0]
    Hp = _round_up(H, 128)       # lane-aligned gate blocks
    TAGP = _round_up(TAG, 128)   # lane-dense output
    wdtype = jnp.bfloat16 if use_bf16 else jnp.float32   # MXU operand dtype

    w_ih_t = w_ih.T.astype(jnp.float32)                  # (E, 4H)
    w_hh_t = w_hh.T.astype(jnp.float32)                  # (H, 4H)
    b = (b_ih + b_hh).astype(jnp.float32)                # (4H,)

    w_ih_t_p = jnp.zeros((E, 4 * Hp), jnp.float32)
    w_hh_t_p = jnp.zeros((Hp, 4 * Hp), jnp.float32)
    b_p = jnp.zeros((1, 4 * Hp), jnp.float32)
    for k in range(4):  # place each gate block at a lane-aligned offset k*Hp
        w_ih_t_p = w_ih_t_p.at[:, k * Hp:k * Hp + H].set(w_ih_t[:, k * H:(k + 1) * H])
        w_hh_t_p = w_hh_t_p.at[:H, k * Hp:k * Hp + H].set(w_hh_t[:, k * H:(k + 1) * H])
        b_p = b_p.at[0, k * Hp:k * Hp + H].set(b[k * H:(k + 1) * H])

    w_out_t_p = (jnp.zeros((Hp, TAGP), jnp.float32)
                 .at[:H, :TAG].set(w_out.T.astype(jnp.float32)))
    # Padded tag logits get -1e30 so exp() -> 0; b_out / tag path stays f32, so
    # the sentinel never becomes -inf in a narrow dtype.
    b_out_p = (jnp.full((1, TAGP), -1e30, jnp.float32)
               .at[0, :TAG].set(b_out.astype(jnp.float32)))

    return {
        "embed": params["embed"].astype(wdtype),
        "w_ih_t": w_ih_t_p.astype(wdtype),
        "w_hh_t": w_hh_t_p.astype(wdtype),
        "b": b_p,                    # bias stays f32 (VPU add)
        "w_out_t": w_out_t_p.astype(wdtype),
        "b_out": b_out_p,            # f32
        "E": E, "H": H, "Hp": Hp, "TAG": TAG, "TAGP": TAGP,
        "wdtype": wdtype,
    }


def _vmem_limit_bytes(TC, Bt, E, Hp, TAGP, wdtype):
    """Size the scoped-VMEM limit from the actual resident set (+ margin)."""
    wsz = jnp.dtype(wdtype).itemsize
    weights = ((E + Hp) * 4 * Hp + Hp * TAGP) * wsz + (4 * Hp + TAGP) * 4
    io_blocks = 2 * (TC * Bt * E * wsz) + 2 * (TC * Bt * TAGP * 4)   # double-buffered
    scratch = (TC * Bt * 4 * Hp * 4          # gx (f32)
               + TC * Bt * Hp * wsz          # hs (wdtype)
               + Bt * Hp * (wsz + 4))        # h (wdtype) + c (f32)
    est = 2 * weights + io_blocks + scratch
    return int(min(max(1.5 * est + (4 << 20), 16 << 20), 100 << 20))


def lstm_tagger_forward(x, prep, *, batch_tile=128, time_chunk=8):
    """x: (B, T) int32 token ids -> (B, T, TAG) float32 log-softmax emissions."""
    B, T = x.shape
    E, Hp, TAG, TAGP = prep["E"], prep["Hp"], prep["TAG"], prep["TAGP"]
    wdtype = prep["wdtype"]

    # Batch tiling: rows of the per-step MXU matmul.  Large tiles (128-256)
    # are the main throughput lever on v6e/v7x; clipped for tiny demo batches.
    Bt = _round_up(min(batch_tile, _round_up(B, 8)), 8)
    Bp = _round_up(B, Bt)
    # Time chunking keeps gx/hs scratch O(chunk) and pipelines the emb DMA.
    TC = min(time_chunk, T)
    Tp = _round_up(T, TC)
    nb, nt = Bp // Bt, Tp // TC

    # Embedding gather directly in time-major (T, B, E) order; pad T and B.
    emb_tbe = prep["embed"][x.T]                                    # (T, B, E)
    emb_tbe = jnp.pad(emb_tbe, ((0, Tp - T), (0, Bp - B), (0, 0)))  # (Tp, Bp, E)

    unroll = min(TC, 8)   # cap unroll so large chunks don't blow up vregs/code
    kernel = functools.partial(lstm_tagger_kernel, TC=TC, Bt=Bt, Hp=Hp,
                               unroll=unroll)

    grid_spec = pltpu.PrefetchScalarGridSpec(
        num_scalar_prefetch=0,
        grid=(nb, nt),
        in_specs=[
            pl.BlockSpec((TC, Bt, E), lambda b, t: (t, b, 0)),
            pl.BlockSpec((E, 4 * Hp), lambda b, t: (0, 0)),
            pl.BlockSpec((Hp, 4 * Hp), lambda b, t: (0, 0)),
            pl.BlockSpec((1, 4 * Hp), lambda b, t: (0, 0)),
            pl.BlockSpec((Hp, TAGP), lambda b, t: (0, 0)),
            pl.BlockSpec((1, TAGP), lambda b, t: (0, 0)),
        ],
        out_specs=pl.BlockSpec((TC, Bt, TAGP), lambda b, t: (t, b, 0)),
        scratch_shapes=[
            pltpu.VMEM((TC, Bt, 4 * Hp), jnp.float32),   # per-chunk input gates
            pltpu.VMEM((TC, Bt, Hp), wdtype),            # per-chunk hidden states
            pltpu.VMEM((Bt, Hp), wdtype),                # h carry (bf16 in bf16 path)
            pltpu.VMEM((Bt, Hp), jnp.float32),           # c carry (always f32)
        ],
    )

    out = pl.pallas_call(
        kernel,
        out_shape=jax.ShapeDtypeStruct((Tp, Bp, TAGP), jnp.float32),
        grid_spec=grid_spec,
        compiler_params=pltpu.CompilerParams(
            # batch tiles independent -> megacore-shardable on v7x;
            # time chunks carry h/c state -> sequential.
            dimension_semantics=("parallel", "arbitrary"),
            vmem_limit_bytes=_vmem_limit_bytes(TC, Bt, E, Hp, TAGP, wdtype),
        ),
    )(emb_tbe, prep["w_ih_t"], prep["w_hh_t"], prep["b"],
      prep["w_out_t"], prep["b_out"])

    out = out[:T, :B, :TAG]                               # strip padding
    return jnp.transpose(out, (1, 0, 2))                  # (B, T, TAG)


def reference_forward(x, params):
    """Pure-JAX reference matching PyTorch semantics (for verification)."""
    emb = params["embed"][x].astype(jnp.float32)          # (B, T, E)
    H = params["w_hh"].shape[1]
    B = x.shape[0]
    w_ih_t = params["w_ih"].T
    w_hh_t = params["w_hh"].T
    b = params["b_ih"] + params["b_hh"]

    def step(carry, x_t):
        h, c = carry
        gates = x_t @ w_ih_t + h @ w_hh_t + b
        i = jax.nn.sigmoid(gates[:, 0 * H:1 * H])
        f = jax.nn.sigmoid(gates[:, 1 * H:2 * H])
        g = jnp.tanh(gates[:, 2 * H:3 * H])
        o = jax.nn.sigmoid(gates[:, 3 * H:4 * H])
        c_new = f * c + i * g
        h_new = o * jnp.tanh(c_new)
        return (h_new, c_new), h_new

    h0 = jnp.zeros((B, H), jnp.float32)
    c0 = jnp.zeros((B, H), jnp.float32)
    _, hs = lax.scan(step, (h0, c0), jnp.transpose(emb, (1, 0, 2)))
    lstm_out = jnp.transpose(hs, (1, 0, 2))               # (B, T, H)
    tag_space = lstm_out @ params["w_out"].T + params["b_out"]
    return jax.nn.log_softmax(tag_space, axis=2)


def init_params(key, vocab_dim, tag_dim, embed_dim, hidden_dim):
    ks = jax.random.split(key, 7)
    s = 1.0 / np.sqrt(hidden_dim)
    return {
        "embed": jax.random.normal(ks[0], (vocab_dim, embed_dim), jnp.float32),
        "w_ih": jax.random.uniform(ks[1], (4 * hidden_dim, embed_dim), jnp.float32, -s, s),
        "w_hh": jax.random.uniform(ks[2], (4 * hidden_dim, hidden_dim), jnp.float32, -s, s),
        "b_ih": jax.random.uniform(ks[3], (4 * hidden_dim,), jnp.float32, -s, s),
        "b_hh": jax.random.uniform(ks[4], (4 * hidden_dim,), jnp.float32, -s, s),
        "w_out": jax.random.uniform(ks[5], (tag_dim, hidden_dim), jnp.float32, -s, s),
        "b_out": jax.random.uniform(ks[6], (tag_dim,), jnp.float32, -s, s),
    }


if __name__ == "__main__":
    # Small shapes consistent with the module's forward: x is (batch, seq) int ids.
    VOCAB, TAG, EMBED, HIDDEN = 50, 8, 32, 32
    B, T = 2, 8

    key = jax.random.PRNGKey(0)
    k_param, k_x = jax.random.split(key)
    params = init_params(k_param, VOCAB, TAG, EMBED, HIDDEN)
    x = jax.random.randint(k_x, (B, T), 0, VOCAB, dtype=jnp.int32)

    ref = jax.block_until_ready(reference_forward(x, params))

    # f32 MXU operands: tight check against the PyTorch-matching reference.
    prep_f32 = prepare_params(params, use_bf16=False)
    out_f32 = jax.block_until_ready(lstm_tagger_forward(x, prep_f32))
    assert out_f32.shape == (B, T, TAG)
    np.testing.assert_allclose(np.asarray(out_f32), np.asarray(ref),
                               rtol=1e-5, atol=1e-5)

    # bf16 MXU operands (works on v5e/v6e/v7x), f32 accumulation + f32 gate math.
    prep_bf16 = prepare_params(params, use_bf16=True)
    out_bf16 = jax.block_until_ready(lstm_tagger_forward(x, prep_bf16))
    np.testing.assert_allclose(np.asarray(out_bf16), np.asarray(ref),
                               rtol=5e-2, atol=5e-2)

    print("KERNEL_OK")
</pallas_src>

<mosaic_0001>
module attributes {stable_mosaic.version = 11 : i64} {
  func.func @lstm_tagger_kernel(%arg0: i32, %arg1: i32, %arg2: memref<8x8x32xf32, #tpu.memory_space<vmem>>, %arg3: memref<32x512xf32, #tpu.memory_space<vmem>>, %arg4: memref<128x512xf32, #tpu.memory_space<vmem>>, %arg5: memref<1x512xf32, #tpu.memory_space<vmem>>, %arg6: memref<128x128xf32, #tpu.memory_space<vmem>>, %arg7: memref<1x128xf32, #tpu.memory_space<vmem>>, %arg8: memref<8x8x128xf32, #tpu.memory_space<vmem>>, %arg9: memref<8x8x512xf32, #tpu.memory_space<vmem>>, %arg10: memref<8x8x128xf32, #tpu.memory_space<vmem>>, %arg11: memref<8x128xf32, #tpu.memory_space<vmem>>, %arg12: memref<8x128xf32, #tpu.memory_space<vmem>>) attributes {dimension_semantics = [#tpu.dimension_semantics<parallel>, #tpu.dimension_semantics<arbitrary>], iteration_bounds = array<i64: 1, 1>, scalar_prefetch = 0 : i64, scratch_operands = 4 : i64, tpu.core_type = #tpu.core_type<tc>, window_params = [{transform_indices = @transform_0, window_bounds = array<i64: 8, 8, 32>}, {pipeline_mode = #tpu.pipeline_mode<synchronous>, transform_indices = @transform_1, window_bounds = array<i64: 32, 512>}, {pipeline_mode = #tpu.pipeline_mode<synchronous>, transform_indices = @transform_2, window_bounds = array<i64: 128, 512>}, {pipeline_mode = #tpu.pipeline_mode<synchronous>, transform_indices = @transform_3, window_bounds = array<i64: 1, 512>}, {pipeline_mode = #tpu.pipeline_mode<synchronous>, transform_indices = @transform_4, window_bounds = array<i64: 128, 128>}, {pipeline_mode = #tpu.pipeline_mode<synchronous>, transform_indices = @transform_5, window_bounds = array<i64: 1, 128>}, {transform_indices = @transform_6, window_bounds = array<i64: 8, 8, 128>}]} {
    %c0_i32 = arith.constant 0 : i32
    %0 = arith.cmpi eq, %arg1, %c0_i32 : i32
    %1 = arith.extui %0 : i1 to i32
    %c0_i32_0 = arith.constant 0 : i32
    %2 = arith.cmpi ne, %1, %c0_i32_0 : i32
    scf.if %2 {
      %cst_154 = arith.constant 0.000000e+00 : f32
      %336 = vector.broadcast %cst_154 : f32 to vector<8x128xf32>
      %c0_155 = arith.constant 0 : index
      %c0_156 = arith.constant 0 : index
      %337 = vector.load %arg11[%c0_155, %c0_156] : memref<8x128xf32, #tpu.memory_space<vmem>>, vector<8x128xf32>
      tpu.vector_store %arg11[%c0_155, %c0_156], %336 {strides = array<i32>} : memref<8x128xf32, #tpu.memory_space<vmem>>, vector<8x128xf32>,
      %cst_157 = arith.constant 0.000000e+00 : f32
      %338 = vector.broadcast %cst_157 : f32 to vector<8x128xf32>
      %c0_158 = arith.constant 0 : index
      %c0_159 = arith.constant 0 : index
      %339 = vector.load %arg12[%c0_158, %c0_159] : memref<8x128xf32, #tpu.memory_space<vmem>>, vector<8x128xf32>
      tpu.vector_store %arg12[%c0_158, %c0_159], %338 {strides = array<i32>} : memref<8x128xf32, #tpu.memory_space<vmem>>, vector<8x128xf32>,
    } else {
    }
    %c0 = arith.constant 0 : index
    %c0_1 = arith.constant 0 : index
    %3 = vector.load %arg4[%c0, %c0_1] : memref<128x512xf32, #tpu.memory_space<vmem>>, vector<128x512xf32>
    %c0_2 = arith.constant 0 : index
    %c0_3 = arith.constant 0 : index
    %c0_4 = arith.constant 0 : index
    %4 = vector.load %arg2[%c0_2, %c0_3, %c0_4] : memref<8x8x32xf32, #tpu.memory_space<vmem>>, vector<8x8x32xf32>
    %5 = vector.shape_cast %4 : vector<8x8x32xf32> to vector<64x32xf32>
    %c0_5 = arith.constant 0 : index
    %c0_6 = arith.constant 0 : index
    %6 = vector.load %arg3[%c0_5, %c0_6] : memref<32x512xf32, #tpu.memory_space<vmem>>, vector<32x512xf32>
    %cst = arith.constant dense<0.000000e+00> : vector<64x512xf32>
    %7 = tpu.matmul %5, %6, %cst {dimension_numbers = #tpu.dot_dimension_numbers<[1], [0], [0], [1], [0, 0, 1, 1], [], []>} : vector<64x32xf32>, vector<32x512xf32>, vector<64x512xf32> -> vector<64x512xf32>
    %c0_7 = arith.constant 0 : index
    %c0_8 = arith.constant 0 : index
    %8 = vector.load %arg5[%c0_7, %c0_8] : memref<1x512xf32, #tpu.memory_space<vmem>>, vector<1x512xf32>
    %9 = vector.broadcast %8 : vector<1x512xf32> to vector<64x512xf32>
    %10 = arith.addf %7, %9 : vector<64x512xf32>
    %11 = vector.shape_cast %10 : vector<64x512xf32> to vector<8x8x512xf32>
    %c0_9 = arith.constant 0 : index
    %c0_10 = arith.constant 0 : index
    %c0_11 = arith.constant 0 : index
    %12 = vector.load %arg9[%c0_9, %c0_10, %c0_11] : memref<8x8x512xf32, #tpu.memory_space<vmem>>, vector<8x8x512xf32>
    tpu.vector_store %arg9[%c0_9, %c0_10, %c0_11], %11 {strides = array<i32>} : memref<8x8x512xf32, #tpu.memory_space<vmem>>, vector<8x8x512xf32>,
    %c0_i32_12 = arith.constant 0 : i32
    %c0_13 = arith.constant 0 : index
    %c0_14 = arith.constant 0 : index
    %13 = vector.load %arg11[%c0_13, %c0_14] : memref<8x128xf32, #tpu.memory_space<vmem>>, vector<8x128xf32>
    %c0_15 = arith.constant 0 : index
    %c0_16 = arith.constant 0 : index
    %14 = vector.load %arg12[%c0_15, %c0_16] : memref<8x128xf32, #tpu.memory_space<vmem>>, vector<8x128xf32>
    %15 = arith.index_cast %c0_i32_12 : i32 to index
    %c0_17 = arith.constant 0 : index
    %c0_18 = arith.constant 0 : index
    %16 = vector.load %arg9[%15, %c0_17, %c0_18] : memref<8x8x512xf32, #tpu.memory_space<vmem>>, vector<1x8x512xf32>
    %17 = vector.shape_cast %16 : vector<1x8x512xf32> to vector<8x512xf32>
    %cst_19 = arith.constant dense<0.000000e+00> : vector<8x512xf32>
    %18 = tpu.matmul %13, %3, %cst_19 {dimension_numbers = #tpu.dot_dimension_numbers<[1], [0], [0], [1], [0, 0, 1, 1], [], []>} : vector<8x128xf32>, vector<128x512xf32>, vector<8x512xf32> -> vector<8x512xf32>
    %19 = arith.addf %17, %18 : vector<8x512xf32>
    %20 = vector.extract_strided_slice %19 {offsets = [0, 0], sizes = [8, 128], strides = [1, 1]} : vector<8x512xf32> to vector<8x128xf32>
    %21 = arith.negf %20 : vector<8x128xf32>
    %22 = math.exp %21 : vector<8x128xf32>
    %cst_20 = arith.constant 1.000000e+00 : f32
    %23 = vector.broadcast %cst_20 : f32 to vector<8x128xf32>
    %24 = arith.addf %23, %22 : vector<8x128xf32>
    %25 = arith.divf %23, %24 : vector<8x128xf32>
    %26 = vector.extract_strided_slice %19 {offsets = [0, 128], sizes = [8, 128], strides = [1, 1]} : vector<8x512xf32> to vector<8x128xf32>
    %27 = arith.negf %26 : vector<8x128xf32>
    %28 = math.exp %27 : vector<8x128xf32>
    %cst_21 = arith.constant 1.000000e+00 : f32
    %29 = vector.broadcast %cst_21 : f32 to vector<8x128xf32>
    %30 = arith.addf %29, %28 : vector<8x128xf32>
    %31 = arith.divf %29, %30 : vector<8x128xf32>
    %32 = vector.extract_strided_slice %19 {offsets = [0, 256], sizes = [8, 128], strides = [1, 1]} : vector<8x512xf32> to vector<8x128xf32>
    %33 = math.tanh %32 : vector<8x128xf32>
    %34 = vector.extract_strided_slice %19 {offsets = [0, 384], sizes = [8, 128], strides = [1, 1]} : vector<8x512xf32> to vector<8x128xf32>
    %35 = arith.negf %34 : vector<8x128xf32>
    %36 = math.exp %35 : vector<8x128xf32>
    %cst_22 = arith.constant 1.000000e+00 : f32
    %37 = vector.broadcast %cst_22 : f32 to vector<8x128xf32>
    %38 = arith.addf %37, %36 : vector<8x128xf32>
    %39 = arith.divf %37, %38 : vector<8x128xf32>
    %40 = arith.mulf %31, %14 : vector<8x128xf32>
    %41 = arith.mulf %25, %33 : vector<8x128xf32>
    %42 = arith.addf %40, %41 : vector<8x128xf32>
    %43 = math.tanh %42 : vector<8x128xf32>
    %44 = arith.mulf %39, %43 : vector<8x128xf32>
    %c0_23 = arith.constant 0 : index
    %c0_24 = arith.constant 0 : index
    %45 = vector.load %arg12[%c0_23, %c0_24] : memref<8x128xf32, #tpu.memory_space<vmem>>, vector<8x128xf32>
    tpu.vector_store %arg12[%c0_23, %c0_24], %42 {strides = array<i32>} : memref<8x128xf32, #tpu.memory_space<vmem>>, vector<8x128xf32>,
    %c0_25 = arith.constant 0 : index
    %c0_26 = arith.constant 0 : index
    %46 = vector.load %arg11[%c0_25, %c0_26] : memref<8x128xf32, #tpu.memory_space<vmem>>, vector<8x128xf32>
    tpu.vector_store %arg11[%c0_25, %c0_26], %44 {strides = array<i32>} : memref<8x128xf32, #tpu.memory_space<vmem>>, vector<8x128xf32>,
    %47 = arith.index_cast %c0_i32_12 : i32 to index
    %c0_27 = arith.constant 0 : index
    %c0_28 = arith.constant 0 : index
    %48 = vector.load %arg10[%47, %c0_27, %c0_28] : memref<8x8x128xf32, #tpu.memory_space<vmem>>, vector<1x8x128xf32>
    %49 = vector.shape_cast %48 : vector<1x8x128xf32> to vector<8x128xf32>
    %50 = vector.shape_cast %44 : vector<8x128xf32> to vector<1x8x128xf32>
    tpu.vector_store %arg10[%47, %c0_27, %c0_28], %50 {strides = array<i32>} : memref<8x8x128xf32, #tpu.memory_space<vmem>>, vector<1x8x128xf32>,
    %c1_i32 = arith.constant 1 : i32
    %c0_29 = arith.constant 0 : index
    %c0_30 = arith.constant 0 : index
    %51 = vector.load %arg11[%c0_29, %c0_30] : memref<8x128xf32, #tpu.memory_space<vmem>>, vector<8x128xf32>
    %c0_31 = arith.constant 0 : index
    %c0_32 = arith.constant 0 : index
    %52 = vector.load %arg12[%c0_31, %c0_32] : memref<8x128xf32, #tpu.memory_space<vmem>>, vector<8x128xf32>
    %53 = arith.index_cast %c1_i32 : i32 to index
    %c0_33 = arith.constant 0 : index
    %c0_34 = arith.constant 0 : index
    %54 = vector.load %arg9[%53, %c0_33, %c0_34] : memref<8x8x512xf32, #tpu.memory_space<vmem>>, vector<1x8x512xf32>
    %55 = vector.shape_cast %54 : vector<1x8x512xf32> to vector<8x512xf32>
    %cst_35 = arith.constant dense<0.000000e+00> : vector<8x512xf32>
    %56 = tpu.matmul %51, %3, %cst_35 {dimension_numbers = #tpu.dot_dimension_numbers<[1], [0], [0], [1], [0, 0, 1, 1], [], []>} : vector<8x128xf32>, vector<128x512xf32>, vector<8x512xf32> -> vector<8x512xf32>
    %57 = arith.addf %55, %56 : vector<8x512xf32>
    %58 = vector.extract_strided_slice %57 {offsets = [0, 0], sizes = [8, 128], strides = [1, 1]} : vector<8x512xf32> to vector<8x128xf32>
    %59 = arith.negf %58 : vector<8x128xf32>
    %60 = math.exp %59 : vector<8x128xf32>
    %cst_36 = arith.constant 1.000000e+00 : f32
    %61 = vector.broadcast %cst_36 : f32 to vector<8x128xf32>
    %62 = arith.addf %61, %60 : vector<8x128xf32>
    %63 = arith.divf %61, %62 : vector<8x128xf32>
    %64 = vector.extract_strided_slice %57 {offsets = [0, 128], sizes = [8, 128], strides = [1, 1]} : vector<8x512xf32> to vector<8x128xf32>
    %65 = arith.negf %64 : vector<8x128xf32>
    %66 = math.exp %65 : vector<8x128xf32>
    %cst_37 = arith.constant 1.000000e+00 : f32
    %67 = vector.broadcast %cst_37 : f32 to vector<8x128xf32>
    %68 = arith.addf %67, %66 : vector<8x128xf32>
    %69 = arith.divf %67, %68 : vector<8x128xf32>
    %70 = vector.extract_strided_slice %57 {offsets = [0, 256], sizes = [8, 128], strides = [1, 1]} : vector<8x512xf32> to vector<8x128xf32>
    %71 = math.tanh %70 : vector<8x128xf32>
    %72 = vector.extract_strided_slice %57 {offsets = [0, 384], sizes = [8, 128], strides = [1, 1]} : vector<8x512xf32> to vector<8x128xf32>
    %73 = arith.negf %72 : vector<8x128xf32>
    %74 = math.exp %73 : vector<8x128xf32>
    %cst_38 = arith.constant 1.000000e+00 : f32
    %75 = vector.broadcast %cst_38 : f32 to vector<8x128xf32>
    %76 = arith.addf %75, %74 : vector<8x128xf32>
    %77 = arith.divf %75, %76 : vector<8x128xf32>
    %78 = arith.mulf %69, %52 : vector<8x128xf32>
    %79 = arith.mulf %63, %71 : vector<8x128xf32>
    %80 = arith.addf %78, %79 : vector<8x128xf32>
    %81 = math.tanh %80 : vector<8x128xf32>
    %82 = arith.mulf %77, %81 : vector<8x128xf32>
    %c0_39 = arith.constant 0 : index
    %c0_40 = arith.constant 0 : index
    %83 = vector.load %arg12[%c0_39, %c0_40] : memref<8x128xf32, #tpu.memory_space<vmem>>, vector<8x128xf32>
    tpu.vector_store %arg12[%c0_39, %c0_40], %80 {strides = array<i32>} : memref<8x128xf32, #tpu.memory_space<vmem>>, vector<8x128xf32>,
    %c0_41 = arith.constant 0 : index
    %c0_42 = arith.constant 0 : index
    %84 = vector.load %arg11[%c0_41, %c0_42] : memref<8x128xf32, #tpu.memory_space<vmem>>, vector<8x128xf32>
    tpu.vector_store %arg11[%c0_41, %c0_42], %82 {strides = array<i32>} : memref<8x128xf32, #tpu.memory_space<vmem>>, vector<8x128xf32>,
    %85 = arith.index_cast %c1_i32 : i32 to index
    %c0_43 = arith.constant 0 : index
    %c0_44 = arith.constant 0 : index
    %86 = vector.load %arg10[%85, %c0_43, %c0_44] : memref<8x8x128xf32, #tpu.memory_space<vmem>>, vector<1x8x128xf32>
    %87 = vector.shape_cast %86 : vector<1x8x128xf32> to vector<8x128xf32>
    %88 = vector.shape_cast %82 : vector<8x128xf32> to vector<1x8x128xf32>
    tpu.vector_store %arg10[%85, %c0_43, %c0_44], %88 {strides = array<i32>} : memref<8x8x128xf32, #tpu.memory_space<vmem>>, vector<1x8x128xf32>,
    %c2_i32 = arith.constant 2 : i32
    %c0_45 = arith.constant 0 : index
    %c0_46 = arith.constant 0 : index
    %89 = vector.load %arg11[%c0_45, %c0_46] : memref<8x128xf32, #tpu.memory_space<vmem>>, vector<8x128xf32>
    %c0_47 = arith.constant 0 : index
    %c0_48 = arith.constant 0 : index
    %90 = vector.load %arg12[%c0_47, %c0_48] : memref<8x128xf32, #tpu.memory_space<vmem>>, vector<8x128xf32>
    %91 = arith.index_cast %c2_i32 : i32 to index
    %c0_49 = arith.constant 0 : index
    %c0_50 = arith.constant 0 : index
    %92 = vector.load %arg9[%91, %c0_49, %c0_50] : memref<8x8x512xf32, #tpu.memory_space<vmem>>, vector<1x8x512xf32>
    %93 = vector.shape_cast %92 : vector<1x8x512xf32> to vector<8x512xf32>
    %cst_51 = arith.constant dense<0.000000e+00> : vector<8x512xf32>
    %94 = tpu.matmul %89, %3, %cst_51 {dimension_numbers = #tpu.dot_dimension_numbers<[1], [0], [0], [1], [0, 0, 1, 1], [], []>} : vector<8x128xf32>, vector<128x512xf32>, vector<8x512xf32> -> vector<8x512xf32>
    %95 = arith.addf %93, %94 : vector<8x512xf32>
    %96 = vector.extract_strided_slice %95 {offsets = [0, 0], sizes = [8, 128], strides = [1, 1]} : vector<8x512xf32> to vector<8x128xf32>
    %97 = arith.negf %96 : vector<8x128xf32>
    %98 = math.exp %97 : vector<8x128xf32>
    %cst_52 = arith.constant 1.000000e+00 : f32
    %99 = vector.broadcast %cst_52 : f32 to vector<8x128xf32>
    %100 = arith.addf %99, %98 : vector<8x128xf32>
    %101 = arith.divf %99, %100 : vector<8x128xf32>
    %102 = vector.extract_strided_slice %95 {offsets = [0, 128], sizes = [8, 128], strides = [1, 1]} : vector<8x512xf32> to vector<8x128xf32>
    %103 = arith.negf %102 : vector<8x128xf32>
    %104 = math.exp %103 : vector<8x128xf32>
    %cst_53 = arith.constant 1.000000e+00 : f32
    %105 = vector.broadcast %cst_53 : f32 to vector<8x128xf32>
    %106 = arith.addf %105, %104 : vector<8x128xf32>
    %107 = arith.divf %105, %106 : vector<8x128xf32>
    %108 = vector.extract_strided_slice %95 {offsets = [0, 256], sizes = [8, 128], strides = [1, 1]} : vector<8x512xf32> to vector<8x128xf32>
    %109 = math.tanh %108 : vector<8x128xf32>
    %110 = vector.extract_strided_slice %95 {offsets = [0, 384], sizes = [8, 128], strides = [1, 1]} : vector<8x512xf32> to vector<8x128xf32>
    %111 = arith.negf %110 : vector<8x128xf32>
    %112 = math.exp %111 : vector<8x128xf32>
    %cst_54 = arith.constant 1.000000e+00 : f32
    %113 = vector.broadcast %cst_54 : f32 to vector<8x128xf32>
    %114 = arith.addf %113, %112 : vector<8x128xf32>
    %115 = arith.divf %113, %114 : vector<8x128xf32>
    %116 = arith.mulf %107, %90 : vector<8x128xf32>
    %117 = arith.mulf %101, %109 : vector<8x128xf32>
    %118 = arith.addf %116, %117 : vector<8x128xf32>
    %119 = math.tanh %118 : vector<8x128xf32>
    %120 = arith.mulf %115, %119 : vector<8x128xf32>
    %c0_55 = arith.constant 0 : index
    %c0_56 = arith.constant 0 : index
    %121 = vector.load %arg12[%c0_55, %c0_56] : memref<8x128xf32, #tpu.memory_space<vmem>>, vector<8x128xf32>
    tpu.vector_store %arg12[%c0_55, %c0_56], %118 {strides = array<i32>} : memref<8x128xf32, #tpu.memory_space<vmem>>, vector<8x128xf32>,
    %c0_57 = arith.constant 0 : index
    %c0_58 = arith.constant 0 : index
    %122 = vector.load %arg11[%c0_57, %c0_58] : memref<8x128xf32, #tpu.memory_space<vmem>>, vector<8x128xf32>
    tpu.vector_store %arg11[%c0_57, %c0_58], %120 {strides = array<i32>} : memref<8x128xf32, #tpu.memory_space<vmem>>, vector<8x128xf32>,
    %123 = arith.index_cast %c2_i32 : i32 to index
    %c0_59 = arith.constant 0 : index
    %c0_60 = arith.constant 0 : index
    %124 = vector.load %arg10[%123, %c0_59, %c0_60] : memref<8x8x128xf32, #tpu.memory_space<vmem>>, vector<1x8x128xf32>
    %125 = vector.shape_cast %124 : vector<1x8x128xf32> to vector<8x128xf32>
    %126 = vector.shape_cast %120 : vector<8x128xf32> to vector<1x8x128xf32>
    tpu.vector_store %arg10[%123, %c0_59, %c0_60], %126 {strides = array<i32>} : memref<8x8x128xf32, #tpu.memory_space<vmem>>, vector<1x8x128xf32>,
    %c3_i32 = arith.constant 3 : i32
    %c0_61 = arith.constant 0 : index
    %c0_62 = arith.constant 0 : index
    %127 = vector.load %arg11[%c0_61, %c0_62] : memref<8x128xf32, #tpu.memory_space<vmem>>, vector<8x128xf32>
    %c0_63 = arith.constant 0 : index
    %c0_64 = arith.constant 0 : index
    %128 = vector.load %arg12[%c0_63, %c0_64] : memref<8x128xf32, #tpu.memory_space<vmem>>, vector<8x128xf32>
    %129 = arith.index_cast %c3_i32 : i32 to index
    %c0_65 = arith.constant 0 : index
    %c0_66 = arith.constant 0 : index
    %130 = vector.load %arg9[%129, %c0_65, %c0_66] : memref<8x8x512xf32, #tpu.memory_space<vmem>>, vector<1x8x512xf32>
    %131 = vector.shape_cast %130 : vector<1x8x512xf32> to vector<8x512xf32>
    %cst_67 = arith.constant dense<0.000000e+00> : vector<8x512xf32>
    %132 = tpu.matmul %127, %3, %cst_67 {dimension_numbers = #tpu.dot_dimension_numbers<[1], [0], [0], [1], [0, 0, 1, 1], [], []>} : vector<8x128xf32>, vector<128x512xf32>, vector<8x512xf32> -> vector<8x512xf32>
    %133 = arith.addf %131, %132 : vector<8x512xf32>
    %134 = vector.extract_strided_slice %133 {offsets = [0, 0], sizes = [8, 128], strides = [1, 1]} : vector<8x512xf32> to vector<8x128xf32>
    %135 = arith.negf %134 : vector<8x128xf32>
    %136 = math.exp %135 : vector<8x128xf32>
    %cst_68 = arith.constant 1.000000e+00 : f32
    %137 = vector.broadcast %cst_68 : f32 to vector<8x128xf32>
    %138 = arith.addf %137, %136 : vector<8x128xf32>
    %139 = arith.divf %137, %138 : vector<8x128xf32>
    %140 = vector.extract_strided_slice %133 {offsets = [0, 128], sizes = [8, 128], strides = [1, 1]} : vector<8x512xf32> to vector<8x128xf32>
    %141 = arith.negf %140 : vector<8x128xf32>
    %142 = math.exp %141 : vector<8x128xf32>
    %cst_69 = arith.constant 1.000000e+00 : f32
    %143 = vector.broadcast %cst_69 : f32 to vector<8x128xf32>
    %144 = arith.addf %143, %142 : vector<8x128xf32>
    %145 = arith.divf %143, %144 : vector<8x128xf32>
    %146 = vector.extract_strided_slice %133 {offsets = [0, 256], sizes = [8, 128], strides = [1, 1]} : vector<8x512xf32> to vector<8x128xf32>
    %147 = math.tanh %146 : vector<8x128xf32>
    %148 = vector.extract_strided_slice %133 {offsets = [0, 384], sizes = [8, 128], strides = [1, 1]} : vector<8x512xf32> to vector<8x128xf32>
    %149 = arith.negf %148 : vector<8x128xf32>
    %150 = math.exp %149 : vector<8x128xf32>
    %cst_70 = arith.constant 1.000000e+00 : f32
    %151 = vector.broadcast %cst_70 : f32 to vector<8x128xf32>
    %152 = arith.addf %151, %150 : vector<8x128xf32>
    %153 = arith.divf %151, %152 : vector<8x128xf32>
    %154 = arith.mulf %145, %128 : vector<8x128xf32>
    %155 = arith.mulf %139, %147 : vector<8x128xf32>
    %156 = arith.addf %154, %155 : vector<8x128xf32>
    %157 = math.tanh %156 : vector<8x128xf32>
    %158 = arith.mulf %153, %157 : vector<8x128xf32>
    %c0_71 = arith.constant 0 : index
    %c0_72 = arith.constant 0 : index
    %159 = vector.load %arg12[%c0_71, %c0_72] : memref<8x128xf32, #tpu.memory_space<vmem>>, vector<8x128xf32>
    tpu.vector_store %arg12[%c0_71, %c0_72], %156 {strides = array<i32>} : memref<8x128xf32, #tpu.memory_space<vmem>>, vector<8x128xf32>,
    %c0_73 = arith.constant 0 : index
    %c0_74 = arith.constant 0 : index
    %160 = vector.load %arg11[%c0_73, %c0_74] : memref<8x128xf32, #tpu.memory_space<vmem>>, vector<8x128xf32>
    tpu.vector_store %arg11[%c0_73, %c0_74], %158 {strides = array<i32>} : memref<8x128xf32, #tpu.memory_space<vmem>>, vector<8x128xf32>,
    %161 = arith.index_cast %c3_i32 : i32 to index
    %c0_75 = arith.constant 0 : index
    %c0_76 = arith.constant 0 : index
    %162 = vector.load %arg10[%161, %c0_75, %c0_76] : memref<8x8x128xf32, #tpu.memory_space<vmem>>, vector<1x8x128xf32>
    %163 = vector.shape_cast %162 : vector<1x8x128xf32> to vector<8x128xf32>
    %164 = vector.shape_cast %158 : vector<8x128xf32> to vector<1x8x128xf32>
    tpu.vector_store %arg10[%161, %c0_75, %c0_76], %164 {strides = array<i32>} : memref<8x8x128xf32, #tpu.memory_space<vmem>>, vector<1x8x128xf32>,
    %c4_i32 = arith.constant 4 : i32
    %c0_77 = arith.constant 0 : index
    %c0_78 = arith.constant 0 : index
    %165 = vector.load %arg11[%c0_77, %c0_78] : memref<8x128xf32, #tpu.memory_space<vmem>>, vector<8x128xf32>
    %c0_79 = arith.constant 0 : index
    %c0_80 = arith.constant 0 : index
    %166 = vector.load %arg12[%c0_79, %c0_80] : memref<8x128xf32, #tpu.memory_space<vmem>>, vector<8x128xf32>
    %167 = arith.index_cast %c4_i32 : i32 to index
    %c0_81 = arith.constant 0 : index
    %c0_82 = arith.constant 0 : index
    %168 = vector.load %arg9[%167, %c0_81, %c0_82] : memref<8x8x512xf32, #tpu.memory_space<vmem>>, vector<1x8x512xf32>
    %169 = vector.shape_cast %168 : vector<1x8x512xf32> to vector<8x512xf32>
    %cst_83 = arith.constant dense<0.000000e+00> : vector<8x512xf32>
    %170 = tpu.matmul %165, %3, %cst_83 {dimension_numbers = #tpu.dot_dimension_numbers<[1], [0], [0], [1], [0, 0, 1, 1], [], []>} : vector<8x128xf32>, vector<128x512xf32>, vector<8x512xf32> -> vector<8x512xf32>
    %171 = arith.addf %169, %170 : vector<8x512xf32>
    %172 = vector.extract_strided_slice %171 {offsets = [0, 0], sizes = [8, 128], strides = [1, 1]} : vector<8x512xf32> to vector<8x128xf32>
    %173 = arith.negf %172 : vector<8x128xf32>
    %174 = math.exp %173 : vector<8x128xf32>
    %cst_84 = arith.constant 1.000000e+00 : f32
    %175 = vector.broadcast %cst_84 : f32 to vector<8x128xf32>
    %176 = arith.addf %175, %174 : vector<8x128xf32>
    %177 = arith.divf %175, %176 : vector<8x128xf32>
    %178 = vector.extract_strided_slice %171 {offsets = [0, 128], sizes = [8, 128], strides = [1, 1]} : vector<8x512xf32> to vector<8x128xf32>
    %179 = arith.negf %178 : vector<8x128xf32>
    %180 = math.exp %179 : vector<8x128xf32>
    %cst_85 = arith.constant 1.000000e+00 : f32
    %181 = vector.broadcast %cst_85 : f32 to vector<8x128xf32>
    %182 = arith.addf %181, %180 : vector<8x128xf32>
    %183 = arith.divf %181, %182 : vector<8x128xf32>
    %184 = vector.extract_strided_slice %171 {offsets = [0, 256], sizes = [8, 128], strides = [1, 1]} : vector<8x512xf32> to vector<8x128xf32>
    %185 = math.tanh %184 : vector<8x128xf32>
    %186 = vector.extract_strided_slice %171 {offsets = [0, 384], sizes = [8, 128], strides = [1, 1]} : vector<8x512xf32> to vector<8x128xf32>
    %187 = arith.negf %186 : vector<8x128xf32>
    %188 = math.exp %187 : vector<8x128xf32>
    %cst_86 = arith.constant 1.000000e+00 : f32
    %189 = vector.broadcast %cst_86 : f32 to vector<8x128xf32>
    %190 = arith.addf %189, %188 : vector<8x128xf32>
    %191 = arith.divf %189, %190 : vector<8x128xf32>
    %192 = arith.mulf %183, %166 : vector<8x128xf32>
    %193 = arith.mulf %177, %185 : vector<8x128xf32>
    %194 = arith.addf %192, %193 : vector<8x128xf32>
    %195 = math.tanh %194 : vector<8x128xf32>
    %196 = arith.mulf %191, %195 : vector<8x128xf32>
    %c0_87 = arith.constant 0 : index
    %c0_88 = arith.constant 0 : index
    %197 = vector.load %arg12[%c0_87, %c0_88] : memref<8x128xf32, #tpu.memory_space<vmem>>, vector<8x128xf32>
    tpu.vector_store %arg12[%c0_87, %c0_88], %194 {strides = array<i32>} : memref<8x128xf32, #tpu.memory_space<vmem>>, vector<8x128xf32>,
    %c0_89 = arith.constant 0 : index
    %c0_90 = arith.constant 0 : index
    %198 = vector.load %arg11[%c0_89, %c0_90] : memref<8x128xf32, #tpu.memory_space<vmem>>, vector<8x128xf32>
    tpu.vector_store %arg11[%c0_89, %c0_90], %196 {strides = array<i32>} : memref<8x128xf32, #tpu.memory_space<vmem>>, vector<8x128xf32>,
    %199 = arith.index_cast %c4_i32 : i32 to index
    %c0_91 = arith.constant 0 : index
    %c0_92 = arith.constant 0 : index
    %200 = vector.load %arg10[%199, %c0_91, %c0_92] : memref<8x8x128xf32, #tpu.memory_space<vmem>>, vector<1x8x128xf32>
    %201 = vector.shape_cast %200 : vector<1x8x128xf32> to vector<8x128xf32>
    %202 = vector.shape_cast %196 : vector<8x128xf32> to vector<1x8x128xf32>
    tpu.vector_store %arg10[%199, %c0_91, %c0_92], %202 {strides = array<i32>} : memref<8x8x128xf32, #tpu.memory_space<vmem>>, vector<1x8x128xf32>,
    %c5_i32 = arith.constant 5 : i32
    %c0_93 = arith.constant 0 : index
    %c0_94 = arith.constant 0 : index
    %203 = vector.load %arg11[%c0_93, %c0_94] : memref<8x128xf32, #tpu.memory_space<vmem>>, vector<8x128xf32>
    %c0_95 = arith.constant 0 : index
    %c0_96 = arith.constant 0 : index
    %204 = vector.load %arg12[%c0_95, %c0_96] : memref<8x128xf32, #tpu.memory_space<vmem>>, vector<8x128xf32>
    %205 = arith.index_cast %c5_i32 : i32 to index
    %c0_97 = arith.constant 0 : index
    %c0_98 = arith.constant 0 : index
    %206 = vector.load %arg9[%205, %c0_97, %c0_98] : memref<8x8x512xf32, #tpu.memory_space<vmem>>, vector<1x8x512xf32>
    %207 = vector.shape_cast %206 : vector<1x8x512xf32> to vector<8x512xf32>
    %cst_99 = arith.constant dense<0.000000e+00> : vector<8x512xf32>
    %208 = tpu.matmul %203, %3, %cst_99 {dimension_numbers = #tpu.dot_dimension_numbers<[1], [0], [0], [1], [0, 0, 1, 1], [], []>} : vector<8x128xf32>, vector<128x512xf32>, vector<8x512xf32> -> vector<8x512xf32>
    %209 = arith.addf %207, %208 : vector<8x512xf32>
    %210 = vector.extract_strided_slice %209 {offsets = [0, 0], sizes = [8, 128], strides = [1, 1]} : vector<8x512xf32> to vector<8x128xf32>
    %211 = arith.negf %210 : vector<8x128xf32>
    %212 = math.exp %211 : vector<8x128xf32>
    %cst_100 = arith.constant 1.000000e+00 : f32
    %213 = vector.broadcast %cst_100 : f32 to vector<8x128xf32>
    %214 = arith.addf %213, %212 : vector<8x128xf32>
    %215 = arith.divf %213, %214 : vector<8x128xf32>
    %216 = vector.extract_strided_slice %209 {offsets = [0, 128], sizes = [8, 128], strides = [1, 1]} : vector<8x512xf32> to vector<8x128xf32>
    %217 = arith.negf %216 : vector<8x128xf32>
    %218 = math.exp %217 : vector<8x128xf32>
    %cst_101 = arith.constant 1.000000e+00 : f32
    %219 = vector.broadcast %cst_101 : f32 to vector<8x128xf32>
    %220 = arith.addf %219, %218 : vector<8x128xf32>
    %221 = arith.divf %219, %220 : vector<8x128xf32>
    %222 = vector.extract_strided_slice %209 {offsets = [0, 256], sizes = [8, 128], strides = [1, 1]} : vector<8x512xf32> to vector<8x128xf32>
    %223 = math.tanh %222 : vector<8x128xf32>
    %224 = vector.extract_strided_slice %209 {offsets = [0, 384], sizes = [8, 128], strides = [1, 1]} : vector<8x512xf32> to vector<8x128xf32>
    %225 = arith.negf %224 : vector<8x128xf32>
    %226 = math.exp %225 : vector<8x128xf32>
    %cst_102 = arith.constant 1.000000e+00 : f32
    %227 = vector.broadcast %cst_102 : f32 to vector<8x128xf32>
    %228 = arith.addf %227, %226 : vector<8x128xf32>
    %229 = arith.divf %227, %228 : vector<8x128xf32>
    %230 = arith.mulf %221, %204 : vector<8x128xf32>
    %231 = arith.mulf %215, %223 : vector<8x128xf32>
    %232 = arith.addf %230, %231 : vector<8x128xf32>
    %233 = math.tanh %232 : vector<8x128xf32>
    %234 = arith.mulf %229, %233 : vector<8x128xf32>
    %c0_103 = arith.constant 0 : index
    %c0_104 = arith.constant 0 : index
    %235 = vector.load %arg12[%c0_103, %c0_104] : memref<8x128xf32, #tpu.memory_space<vmem>>, vector<8x128xf32>
    tpu.vector_store %arg12[%c0_103, %c0_104], %232 {strides = array<i32>} : memref<8x128xf32, #tpu.memory_space<vmem>>, vector<8x128xf32>,
    %c0_105 = arith.constant 0 : index
    %c0_106 = arith.constant 0 : index
    %236 = vector.load %arg11[%c0_105, %c0_106] : memref<8x128xf32, #tpu.memory_space<vmem>>, vector<8x128xf32>
    tpu.vector_store %arg11[%c0_105, %c0_106], %234 {strides = array<i32>} : memref<8x128xf32, #tpu.memory_space<vmem>>, vector<8x128xf32>,
    %237 = arith.index_cast %c5_i32 : i32 to index
    %c0_107 = arith.constant 0 : index
    %c0_108 = arith.constant 0 : index
    %238 = vector.load %arg10[%237, %c0_107, %c0_108] : memref<8x8x128xf32, #tpu.memory_space<vmem>>, vector<1x8x128xf32>
    %239 = vector.shape_cast %238 : vector<1x8x128xf32> to vector<8x128xf32>
    %240 = vector.shape_cast %234 : vector<8x128xf32> to vector<1x8x128xf32>
    tpu.vector_store %arg10[%237, %c0_107, %c0_108], %240 {strides = array<i32>} : memref<8x8x128xf32, #tpu.memory_space<vmem>>, vector<1x8x128xf32>,
    %c6_i32 = arith.constant 6 : i32
    %c0_109 = arith.constant 0 : index
    %c0_110 = arith.constant 0 : index
    %241 = vector.load %arg11[%c0_109, %c0_110] : memref<8x128xf32, #tpu.memory_space<vmem>>, vector<8x128xf32>
    %c0_111 = arith.constant 0 : index
    %c0_112 = arith.constant 0 : index
    %242 = vector.load %arg12[%c0_111, %c0_112] : memref<8x128xf32, #tpu.memory_space<vmem>>, vector<8x128xf32>
    %243 = arith.index_cast %c6_i32 : i32 to index
    %c0_113 = arith.constant 0 : index
    %c0_114 = arith.constant 0 : index
    %244 = vector.load %arg9[%243, %c0_113, %c0_114] : memref<8x8x512xf32, #tpu.memory_space<vmem>>, vector<1x8x512xf32>
    %245 = vector.shape_cast %244 : vector<1x8x512xf32> to vector<8x512xf32>
    %cst_115 = arith.constant dense<0.000000e+00> : vector<8x512xf32>
    %246 = tpu.matmul %241, %3, %cst_115 {dimension_numbers = #tpu.dot_dimension_numbers<[1], [0], [0], [1], [0, 0, 1, 1], [], []>} : vector<8x128xf32>, vector<128x512xf32>, vector<8x512xf32> -> vector<8x512xf32>
    %247 = arith.addf %245, %246 : vector<8x512xf32>
    %248 = vector.extract_strided_slice %247 {offsets = [0, 0], sizes = [8, 128], strides = [1, 1]} : vector<8x512xf32> to vector<8x128xf32>
    %249 = arith.negf %248 : vector<8x128xf32>
    %250 = math.exp %249 : vector<8x128xf32>
    %cst_116 = arith.constant 1.000000e+00 : f32
    %251 = vector.broadcast %cst_116 : f32 to vector<8x128xf32>
    %252 = arith.addf %251, %250 : vector<8x128xf32>
    %253 = arith.divf %251, %252 : vector<8x128xf32>
    %254 = vector.extract_strided_slice %247 {offsets = [0, 128], sizes = [8, 128], strides = [1, 1]} : vector<8x512xf32> to vector<8x128xf32>
    %255 = arith.negf %254 : vector<8x128xf32>
    %256 = math.exp %255 : vector<8x128xf32>
    %cst_117 = arith.constant 1.000000e+00 : f32
    %257 = vector.broadcast %cst_117 : f32 to vector<8x128xf32>
    %258 = arith.addf %257, %256 : vector<8x128xf32>
    %259 = arith.divf %257, %258 : vector<8x128xf32>
    %260 = vector.extract_strided_slice %247 {offsets = [0, 256], sizes = [8, 128], strides = [1, 1]} : vector<8x512xf32> to vector<8x128xf32>
    %261 = math.tanh %260 : vector<8x128xf32>
    %262 = vector.extract_strided_slice %247 {offsets = [0, 384], sizes = [8, 128], strides = [1, 1]} : vector<8x512xf32> to vector<8x128xf32>
    %263 = arith.negf %262 : vector<8x128xf32>
    %264 = math.exp %263 : vector<8x128xf32>
    %cst_118 = arith.constant 1.000000e+00 : f32
    %265 = vector.broadcast %cst_118 : f32 to vector<8x128xf32>
    %266 = arith.addf %265, %264 : vector<8x128xf32>
    %267 = arith.divf %265, %266 : vector<8x128xf32>
    %268 = arith.mulf %259, %242 : vector<8x128xf32>
    %269 = arith.mulf %253, %261 : vector<8x128xf32>
    %270 = arith.addf %268, %269 : vector<8x128xf32>
    %271 = math.tanh %270 : vector<8x128xf32>
    %272 = arith.mulf %267, %271 : vector<8x128xf32>
    %c0_119 = arith.constant 0 : index
    %c0_120 = arith.constant 0 : index
    %273 = vector.load %arg12[%c0_119, %c0_120] : memref<8x128xf32, #tpu.memory_space<vmem>>, vector<8x128xf32>
    tpu.vector_store %arg12[%c0_119, %c0_120], %270 {strides = array<i32>} : memref<8x128xf32, #tpu.memory_space<vmem>>, vector<8x128xf32>,
    %c0_121 = arith.constant 0 : index
    %c0_122 = arith.constant 0 : index
    %274 = vector.load %arg11[%c0_121, %c0_122] : memref<8x128xf32, #tpu.memory_space<vmem>>, vector<8x128xf32>
    tpu.vector_store %arg11[%c0_121, %c0_122], %272 {strides = array<i32>} : memref<8x128xf32, #tpu.memory_space<vmem>>, vector<8x128xf32>,
    %275 = arith.index_cast %c6_i32 : i32 to index
    %c0_123 = arith.constant 0 : index
    %c0_124 = arith.constant 0 : index
    %276 = vector.load %arg10[%275, %c0_123, %c0_124] : memref<8x8x128xf32, #tpu.memory_space<vmem>>, vector<1x8x128xf32>
    %277 = vector.shape_cast %276 : vector<1x8x128xf32> to vector<8x128xf32>
    %278 = vector.shape_cast %272 : vector<8x128xf32> to vector<1x8x128xf32>
    tpu.vector_store %arg10[%275, %c0_123, %c0_124], %278 {strides = array<i32>} : memref<8x8x128xf32, #tpu.memory_space<vmem>>, vector<1x8x128xf32>,
    %c7_i32 = arith.constant 7 : i32
    %c0_125 = arith.constant 0 : index
    %c0_126 = arith.constant 0 : index
    %279 = vector.load %arg11[%c0_125, %c0_126] : memref<8x128xf32, #tpu.memory_space<vmem>>, vector<8x128xf32>
    %c0_127 = arith.constant 0 : index
    %c0_128 = arith.constant 0 : index
    %280 = vector.load %arg12[%c0_127, %c0_128] : memref<8x128xf32, #tpu.memory_space<vmem>>, vector<8x128xf32>
    %281 = arith.index_cast %c7_i32 : i32 to index
    %c0_129 = arith.constant 0 : index
    %c0_130 = arith.constant 0 : index
    %282 = vector.load %arg9[%281, %c0_129, %c0_130] : memref<8x8x512xf32, #tpu.memory_space<vmem>>, vector<1x8x512xf32>
    %283 = vector.shape_cast %282 : vector<1x8x512xf32> to vector<8x512xf32>
    %cst_131 = arith.constant dense<0.000000e+00> : vector<8x512xf32>
    %284 = tpu.matmul %279, %3, %cst_131 {dimension_numbers = #tpu.dot_dimension_numbers<[1], [0], [0], [1], [0, 0, 1, 1], [], []>} : vector<8x128xf32>, vector<128x512xf32>, vector<8x512xf32> -> vector<8x512xf32>
    %285 = arith.addf %283, %284 : vector<8x512xf32>
    %286 = vector.extract_strided_slice %285 {offsets = [0, 0], sizes = [8, 128], strides = [1, 1]} : vector<8x512xf32> to vector<8x128xf32>
    %287 = arith.negf %286 : vector<8x128xf32>
    %288 = math.exp %287 : vector<8x128xf32>
    %cst_132 = arith.constant 1.000000e+00 : f32
    %289 = vector.broadcast %cst_132 : f32 to vector<8x128xf32>
    %290 = arith.addf %289, %288 : vector<8x128xf32>
    %291 = arith.divf %289, %290 : vector<8x128xf32>
    %292 = vector.extract_strided_slice %285 {offsets = [0, 128], sizes = [8, 128], strides = [1, 1]} : vector<8x512xf32> to vector<8x128xf32>
    %293 = arith.negf %292 : vector<8x128xf32>
    %294 = math.exp %293 : vector<8x128xf32>
    %cst_133 = arith.constant 1.000000e+00 : f32
    %295 = vector.broadcast %cst_133 : f32 to vector<8x128xf32>
    %296 = arith.addf %295, %294 : vector<8x128xf32>
    %297 = arith.divf %295, %296 : vector<8x128xf32>
    %298 = vector.extract_strided_slice %285 {offsets = [0, 256], sizes = [8, 128], strides = [1, 1]} : vector<8x512xf32> to vector<8x128xf32>
    %299 = math.tanh %298 : vector<8x128xf32>
    %300 = vector.extract_strided_slice %285 {offsets = [0, 384], sizes = [8, 128], strides = [1, 1]} : vector<8x512xf32> to vector<8x128xf32>
    %301 = arith.negf %300 : vector<8x128xf32>
    %302 = math.exp %301 : vector<8x128xf32>
    %cst_134 = arith.constant 1.000000e+00 : f32
    %303 = vector.broadcast %cst_134 : f32 to vector<8x128xf32>
    %304 = arith.addf %303, %302 : vector<8x128xf32>
    %305 = arith.divf %303, %304 : vector<8x128xf32>
    %306 = arith.mulf %297, %280 : vector<8x128xf32>
    %307 = arith.mulf %291, %299 : vector<8x128xf32>
    %308 = arith.addf %306, %307 : vector<8x128xf32>
    %309 = math.tanh %308 : vector<8x128xf32>
    %310 = arith.mulf %305, %309 : vector<8x128xf32>
    %c0_135 = arith.constant 0 : index
    %c0_136 = arith.constant 0 : index
    %311 = vector.load %arg12[%c0_135, %c0_136] : memref<8x128xf32, #tpu.memory_space<vmem>>, vector<8x128xf32>
    tpu.vector_store %arg12[%c0_135, %c0_136], %308 {strides = array<i32>} : memref<8x128xf32, #tpu.memory_space<vmem>>, vector<8x128xf32>,
    %c0_137 = arith.constant 0 : index
    %c0_138 = arith.constant 0 : index
    %312 = vector.load %arg11[%c0_137, %c0_138] : memref<8x128xf32, #tpu.memory_space<vmem>>, vector<8x128xf32>
    tpu.vector_store %arg11[%c0_137, %c0_138], %310 {strides = array<i32>} : memref<8x128xf32, #tpu.memory_space<vmem>>, vector<8x128xf32>,
    %313 = arith.index_cast %c7_i32 : i32 to index
    %c0_139 = arith.constant 0 : index
    %c0_140 = arith.constant 0 : index
    %314 = vector.load %arg10[%313, %c0_139, %c0_140] : memref<8x8x128xf32, #tpu.memory_space<vmem>>, vector<1x8x128xf32>
    %315 = vector.shape_cast %314 : vector<1x8x128xf32> to vector<8x128xf32>
    %316 = vector.shape_cast %310 : vector<8x128xf32> to vector<1x8x128xf32>
    tpu.vector_store %arg10[%313, %c0_139, %c0_140], %316 {strides = array<i32>} : memref<8x8x128xf32, #tpu.memory_space<vmem>>, vector<1x8x128xf32>,
    %c8_i32 = arith.constant 8 : i32
    %c0_141 = arith.constant 0 : index
    %c0_142 = arith.constant 0 : index
    %c0_143 = arith.constant 0 : index
    %317 = vector.load %arg10[%c0_141, %c0_142, %c0_143] : memref<8x8x128xf32, #tpu.memory_space<vmem>>, vector<8x8x128xf32>
    %318 = vector.shape_cast %317 : vector<8x8x128xf32> to vector<64x128xf32>
    %c0_144 = arith.constant 0 : index
    %c0_145 = arith.constant 0 : index
    %319 = vector.load %arg6[%c0_144, %c0_145] : memref<128x128xf32, #tpu.memory_space<vmem>>, vector<128x128xf32>
    %cst_146 = arith.constant dense<0.000000e+00> : vector<64x128xf32>
    %320 = tpu.matmul %318, %319, %cst_146 {dimension_numbers = #tpu.dot_dimension_numbers<[1], [0], [0], [1], [0, 0, 1, 1], [], []>} : vector<64x128xf32>, vector<128x128xf32>, vector<64x128xf32> -> vector<64x128xf32>
    %c0_147 = arith.constant 0 : index
    %c0_148 = arith.constant 0 : index
    %321 = vector.load %arg7[%c0_147, %c0_148] : memref<1x128xf32, #tpu.memory_space<vmem>>, vector<1x128xf32>
    %322 = vector.broadcast %321 : vector<1x128xf32> to vector<64x128xf32>
    %323 = arith.addf %320, %322 : vector<64x128xf32>
    %cst_149 = arith.constant dense<0xFF800000> : vector<64xf32>
    %324 = vector.multi_reduction <maximumf>, %323, %cst_149 [1] : vector<64x128xf32> to vector<64xf32>
    %325 = vector.shape_cast %324 : vector<64xf32> to vector<64x1xf32>
    %326 = vector.broadcast %325 : vector<64x1xf32> to vector<64x128xf32>
    %327 = arith.subf %323, %326 : vector<64x128xf32>
    %328 = math.exp %327 : vector<64x128xf32>
    %cst_150 = arith.constant dense<0.000000e+00> : vector<64xf32>
    %329 = vector.multi_reduction <add>, %328, %cst_150 [1] : vector<64x128xf32> to vector<64xf32>
    %330 = vector.shape_cast %329 : vector<64xf32> to vector<64x1xf32>
    %331 = math.log %330 : vector<64x1xf32>
    %332 = vector.broadcast %331 : vector<64x1xf32> to vector<64x128xf32>
    %333 = arith.subf %327, %332 : vector<64x128xf32>
    %334 = vector.shape_cast %333 : vector<64x128xf32> to vector<8x8x128xf32>
    %c0_151 = arith.constant 0 : index
    %c0_152 = arith.constant 0 : index
    %c0_153 = arith.constant 0 : index
    %335 = vector.load %arg8[%c0_151, %c0_152, %c0_153] : memref<8x8x128xf32, #tpu.memory_space<vmem>>, vector<8x8x128xf32>
    tpu.vector_store %arg8[%c0_151, %c0_152, %c0_153], %334 {strides = array<i32>} : memref<8x8x128xf32, #tpu.memory_space<vmem>>, vector<8x8x128xf32>,
    return
  }
  func.func @transform_0(%arg0: i32, %arg1: i32) -> (i32, i32, i32) {
    %c0_i32 = arith.constant 0 : i32
    %c0_i32_0 = arith.constant 0 : i32
    return %arg1, %arg0, %c0_i32 : i32, i32, i32
  }
  func.func @transform_1(%arg0: i32, %arg1: i32) -> (i32, i32) {
    %c0_i32 = arith.constant 0 : i32
    %c0_i32_0 = arith.constant 0 : i32
    %c0_i32_1 = arith.constant 0 : i32
    return %c0_i32, %c0_i32_0 : i32, i32
  }
  func.func @transform_2(%arg0: i32, %arg1: i32) -> (i32, i32) {
    %c0_i32 = arith.constant 0 : i32
    %c0_i32_0 = arith.constant 0 : i32
    %c0_i32_1 = arith.constant 0 : i32
    return %c0_i32, %c0_i32_0 : i32, i32
  }
  func.func @transform_3(%arg0: i32, %arg1: i32) -> (i32, i32) {
    %c0_i32 = arith.constant 0 : i32
    %c0_i32_0 = arith.constant 0 : i32
    %c0_i32_1 = arith.constant 0 : i32
    return %c0_i32, %c0_i32_0 : i32, i32
  }
  func.func @transform_4(%arg0: i32, %arg1: i32) -> (i32, i32) {
    %c0_i32 = arith.constant 0 : i32
    %c0_i32_0 = arith.constant 0 : i32
    %c0_i32_1 = arith.constant 0 : i32
    return %c0_i32, %c0_i32_0 : i32, i32
  }
  func.func @transform_5(%arg0: i32, %arg1: i32) -> (i32, i32) {
    %c0_i32 = arith.constant 0 : i32
    %c0_i32_0 = arith.constant 0 : i32
    %c0_i32_1 = arith.constant 0 : i32
    return %c0_i32, %c0_i32_0 : i32, i32
  }
  func.func @transform_6(%arg0: i32, %arg1: i32) -> (i32, i32, i32) {
    %c0_i32 = arith.constant 0 : i32
    %c0_i32_0 = arith.constant 0 : i32
    return %arg1, %arg0, %c0_i32 : i32, i32, i32
  }
}

</mosaic_0001>

<bundles_post_ra>
// kernel: tpu_custom_call.1
= control target key start
LH: loop header
LB: loop body
LE: loop exit
PB: predicated region body
PF: predicated region fallthrough
CT: control target
= control target key end

     0   :  { %11 = vsyncpa [#allocation7], 0  ;;  %s3443_s0 = inlined_call_operand.hbm [shape: f32[8,8,32], index: 0, kind: input, shape index: {}]   ;;  %s3444_s1 = inlined_call_operand.hbm [shape: f32[32,512], index: 1, kind: input, shape index: {}]   ;;  %s3445_s2 = inlined_call_operand.hbm [shape: f32[128,512], index: 2, kind: input, shape index: {}]   ;;  %s3446_s3 = inlined_call_operand.hbm [shape: f32[1,512], index: 3, kind: input, shape index: {}]   ;;  %s3447_s4 = inlined_call_operand.hbm [shape: f32[128,128], index: 4, kind: input, shape index: {}]   ;;  %s3448_s5 = inlined_call_operand.vmem [shape: f32[1,128], index: 5, kind: input, shape index: {}]   ;;  %s3449_s6 = inlined_call_operand.hbm [shape: f32[8,8,128], index: 6, kind: output, shape index: {}]  }
   0x1   :  { %12 = vsyncpa [#allocation10], 0 }
   0x2   :  { %13 = vsyncpa [#allocation13], 0  ;;  %s32_s23 = sshll.u32 %s3444_s1, 4  ;;  %s33_s23 = int_to_ptr.hbm [resolvable:$true] %s32_s23 }
   0x3   :  { %14 = vsyncpa [#allocation8], 0  ;;  %s2317_s24 = smov [#allocation9]   ;;  %s59_s28 = sshll.u32 %s3446_s3, 4  ;;  %s60_s28 = int_to_ptr.hbm [resolvable:$true] %s59_s28 }
   0x4   :  { %s34_s25 = sshll.u32 %s2317_s24, 4  ;;  %s2318_s29 = smov 512   ;;  %s35_s25 = int_to_ptr.vmem [resolvable:$true] %s34_s25 }
   0x5   :  { %s2319_s30 = smov 32   ;;  %s2320_s7 = smov [#allocation12]  }
   0x6   :  { %40 = dma.hbm_to_vmem [thread:$0]  %s33_s23, 2048, %s35_s25, [#allocation10], %s2318_s29, %s2318_s29, %s2319_s30  }
   0x7   :  { %s61_s8 = sshll.u32 %s2320_s7, 4  ;;  %s19_s11 = sshll.u32 %s3443_s0, 4  ;;  %s62_s8 = int_to_ptr.vmem [resolvable:$true] %s61_s8  ;;  %s20_s11 = int_to_ptr.hbm [resolvable:$true] %s19_s11 }
   0x8   :  { %64 = dma.hbm_to_vmem [thread:$0]  %s60_s28, 64, %s62_s8, [#allocation13]  }
   0x9   :  { %s2321_s1 = smov [#allocation6]   ;;  %s45_s3 = sshll.u32 %s3445_s2, 4  ;;  %s46_s3 = int_to_ptr.hbm [resolvable:$true] %s45_s3 }
   0xa   :  { %s21_s12 = sshll.u32 %s2321_s1, 4  ;;  %s2322_s15 = smov 128   ;;  %s22_s12 = int_to_ptr.vmem [resolvable:$true] %s21_s12 }
   0xb   :  { %s2323_s16 = smov 8   ;;  %s2324_s17 = smov [#allocation11]  }
   0xc   :  { %27 = dma.hbm_to_vmem [thread:$0]  %s20_s11, 1024, %s22_s12, [#allocation7], %s2322_s15, %s2322_s15, %s2323_s16  }
   0xd   :  { %s47_s18 = sshll.u32 %s2324_s17, 4  ;;  %s69_s20 = sshll.u32 %s3447_s4, 4  ;;  %s48_s18 = int_to_ptr.vmem [resolvable:$true] %s47_s18  ;;  %s70_s20 = int_to_ptr.hbm [resolvable:$true] %s69_s20 }
   0xe   :  { %53 = dma.hbm_to_vmem [thread:$0]  %s46_s3, 8192, %s48_s18, [#allocation10], %s2318_s29, %s2318_s29, %s2319_s30  }
   0xf   :  { %s2325_s21 = smov [#allocation14]  }
  0x10   :  { %s71_s22 = sshll.u32 %s2325_s21, 4  ;;  %s72_s22 = int_to_ptr.vmem [resolvable:$true] %s71_s22 }
  0x11   :  { %77 = dma.hbm_to_vmem [thread:$0]  %s70_s20, 2048, %s72_s22, [#allocation13], %s2322_s15, %s2322_s15, %s2323_s16  }
  0x12   :  { %2309 = dma.done.wait [#allocation7], 1024  }
  0x13   :  { %2310 = vsyncadd [#allocation7], 4294966272 }
  0x14   :  { %2311 = dma.done.wait [#allocation10], 10240  }
  0x15   :  { %2312 = vsyncadd [#allocation10], 4294957056 }
  0x16   :  { %2313 = dma.done.wait [#allocation13], 2112  }
  0x17   :  { %2314 = vsyncadd [#allocation13], 4294965184  ;;  %v190_v0 = vld [vmem:[#allocation9 + $0x60] sm:$0xff]  ;;  %v192_v1 = vld [vmem:[#allocation9 + $0x70] sm:$0xff]  ;;  %vm204_vm0 = vcmask 261120   ;;  %s1850_s26 = sshll.u32 %s3449_s6, 4  ;;  %s1851_s26 = int_to_ptr.hbm [resolvable:$true] %s1850_s26 }
  0x18   :  { %v186_v2 = vld [vmem:[#allocation9 + $0x40] sm:$0xff]  ;;  %1921 = vmatpush.msra.mxu1 %v190_v0  ;;  %1922 = vmatpush.msra.mxu3 %v190_v0  ;;  %v188_v3 = vld [vmem:[#allocation9 + $0x50] sm:$0xff]  ;;  %v2386_v9 = vld [vmem:[#allocation6 + $0x28] sm:$0xff] }
  0x19   :  { %323 = vmatpush.msra.mxu2 %v192_v1  ;;  %v182_v4 = vld [vmem:[#allocation9 + $0x20] sm:$0xff]  ;;  %241 = vmatpush.msra.mxu0 %v190_v0  ;;  %v184_v5 = vld [vmem:[#allocation9 + $0x30] sm:$0xff]  ;;  %v193_v11 = vld [vmem:[#allocation9 + $0x78] sm:$0xff] }
  0x1a   :  { %1923 = vmatpush.msra.mxu1 %v186_v2  ;;  %1924 = vmatpush.msra.mxu3 %v186_v2  ;;  %v178_v6 = vld [vmem:[#allocation9] sm:$0xff]  ;;  %v180_v7 = vld [vmem:[#allocation9 + $0x10] sm:$0xff]  ;;  %v191_v12 = vld [vmem:[#allocation9 + $0x68] sm:$0xff] }
  0x1b   :  { %324 = vmatpush.msra.mxu2 %v188_v3  ;;  %242 = vmatpush.msra.mxu0 %v186_v2  ;;  %v2384_v8 = vld [vmem:[#allocation6 + $0x20] sm:$0xff]  ;;  %v187_v14 = vld [vmem:[#allocation9 + $0x48] sm:$0xff]  ;;  %v189_v15 = vld [vmem:[#allocation9 + $0x58] sm:$0xff] }
  0x1c   :  { %1925 = vmatpush.msra.mxu1 %v182_v4  ;;  %1926 = vmatpush.msra.mxu3 %v182_v4  ;;  %v2388_v10 = vld [vmem:[#allocation6] sm:$0xff]  ;;  %v183_v17 = vld [vmem:[#allocation9 + $0x28] sm:$0xff]  ;;  %v185_v18 = vld [vmem:[#allocation9 + $0x38] sm:$0xff] }
  0x1d   :  { %325 = vmatpush.msra.mxu2 %v184_v5  ;;  %243 = vmatpush.msra.mxu0 %v182_v4  ;;  %v2392_v13 = vld [vmem:[#allocation11 + $0x1e0] sm:$0xff]  ;;  %v179_v20 = vld [vmem:[#allocation9 + $0x8] sm:$0xff]  ;;  %v181_v21 = vld [vmem:[#allocation9 + $0x18] sm:$0xff] }
  0x1e   :  { %1927 = vmatpush.msra.mxu1 %v178_v6  ;;  %1928 = vmatpush.msra.mxu3 %v178_v6  ;;  %3545 = vst [vmem:[#allocation20_spill] sm:$0xff] %v2392_v13  ;;  %v2398_v16 = vld [vmem:[#allocation11 + $0x1c0] sm:$0xff]  ;;  %v2406_v22 = vld [vmem:[#allocation6 + $0x30] sm:$0xff]  ;;  %v2408_v23 = vld [vmem:[#allocation6 + $0x8] sm:$0xff] }
  0x1f   :  { %326 = vmatpush.msra.mxu2 %v180_v7  ;;  %1869 = vmatmul.msk.f32.vlgmr.msra.gmra.mxu1 %vm204_vm0, %v2384_v8  ;;  %v2401_v19 = vld [vmem:[#allocation11 + $0x1a0] sm:$0xff]  ;;  %v2411_v24 = vld [vmem:[#allocation11 + $0x1e8] sm:$0xff]  ;;  %v2416_v26 = vld [vmem:[#allocation11 + $0x1f8] sm:$0xff] }
  0x20   :  { %1870 = vmatmul.msk.f32.vlgmr.msra.gmra.mxu3 %vm204_vm0, %v2386_v9  ;;  %1881 = vmatmul.msk.f32.vlgmr.msra.gmra.mxu2 %vm204_vm0, %v2388_v10  ;;  %v2414_v25 = vld [vmem:[#allocation11 + $0x180] sm:$0xff]  ;;  %v2422_v27 = vld [vmem:[#allocation11 + $0x1c8] sm:$0xff]  ;;  %v2429_v29 = vld [vmem:[#allocation11 + $0x1d8] sm:$0xff] }
  0x21   :  { %364 = vmatpush.msrb.mxu3 %v193_v11  ;;  %282 = vmatpush.msrb.mxu1 %v191_v12  ;;  %v2426_v28 = vld [vmem:[#allocation11 + $0x160] sm:$0xff]  ;;  %v2433_v30 = vld [vmem:[#allocation11 + $0x1a8] sm:$0xff]  ;;  %v2438_v32 = vld [vmem:[#allocation11 + $0x1b8] sm:$0xff] }
  0x22   :  { %431 = vmatpush.msrb.mxu2 %v2392_v13  ;;  %244 = vmatpush.msra.mxu0 %v178_v6  ;;  %v2435_v31 = vld [vmem:[#allocation11 + $0x140] sm:$0xff]  ;;  %v2443_v33 = vld [vmem:[#allocation11 + $0x188] sm:$0xff]  ;;  %v2445_v34 = vld [vmem:[#allocation6 + $0x38] sm:$0xff] }
  0x23   :  { %283 = vmatpush.msrb.mxu1 %v187_v14  ;;  %365 = vmatpush.msrb.mxu3 %v189_v15  ;;  %v2449_v35 = vld [vmem:[#allocation6 + $0x10] sm:$0xff]  ;;  %v2453_v36 = vld [vmem:[#allocation11 + $0x168] sm:$0xff]  ;;  %v2455_v37 = vld [vmem:[#allocation11 + $0x120] sm:$0xff] }
  0x24   :  { %432 = vmatpush.msrb.mxu2 %v2398_v16  ;;  %1865 = vmatmul.msk.f32.vlgmr.msra.gmra.mxu0 %vm204_vm0, %v2388_v10  ;;  %v2458_v38 = vld [vmem:[#allocation11 + $0x198] sm:$0xff]  ;;  %v2465_v39 = vld [vmem:[#allocation11 + $0x148] sm:$0xff]  ;;  %v2469_v40 = vld [vmem:[#allocation11 + $0x100] sm:$0xff] }
  0x25   :  { %284 = vmatpush.msrb.mxu1 %v183_v17  ;;  %366 = vmatpush.msrb.mxu3 %v185_v18  ;;  %v2472_v41 = vld [vmem:[#allocation11 + $0x178] sm:$0xff]  ;;  %v2476_v42 = vld [vmem:[#allocation11 + $0x128] sm:$0xff]  ;;  %v2478_v43 = vld [vmem:[#allocation11 + $0xe0] sm:$0xff] }
  0x26   :  { %433 = vmatpush.msrb.mxu2 %v2401_v19  ;;  %588 = vmatpush.msrb.mxu0 %v2392_v13  ;;  %v2481_v44 = vld [vmem:[#allocation11 + $0x158] sm:$0xff]  ;;  %v2487_v45 = vld [vmem:[#allocation11 + $0x108] sm:$0xff]  ;;  %v2497_v48 = vld [vmem:[#allocation11 + $0xc0] sm:$0xff] }
  0x27   :  { %285 = vmatpush.msrb.mxu1 %v179_v20  ;;  %367 = vmatpush.msrb.mxu3 %v181_v21  ;;  %v2491_v46 = vld [vmem:[#allocation6 + $0x18] sm:$0xff]  ;;  %v2500_v49 = vld [vmem:[#allocation11 + $0xe8] sm:$0xff]  ;;  %v2511_v51 = vld [vmem:[#allocation11 + $0xa0] sm:$0xff] }
  0x28   :  { %1871 = vmatmul.msk.f32.gmra.mxu3 %vm204_vm0, %v2406_v22  ;;  %1873 = vmatmul.msk.f32.vlgmr.msrb.gmra.mxu1 %vm204_vm0, %v2388_v10  ;;  %v2495_v47 = vld [vmem:[#allocation11 + $0x138] sm:$0xff]  ;;  %v2514_v52 = vld [vmem:[#allocation11 + $0xc8] sm:$0xff]  ;;  %v2520_v54 = vld [vmem:[#allocation11 + $0x80] sm:$0xff] }
  0x29   :  { %1882 = vmatmul.msk.f32.gmra.mxu2 %vm204_vm0, %v2408_v23  ;;  %451 = vmatpush.msra.mxu1 %v2411_v24  ;;  %v2507_v50 = vld [vmem:[#allocation11 + $0x118] sm:$0xff]  ;;  %3546 = vst [vmem:[#allocation21_spill] sm:$0xff] %v2520_v54  ;;  %v2523_v55 = vld [vmem:[#allocation11 + $0xa8] sm:$0xff]  ;;  %v2534_v57 = vld [vmem:[#allocation11 + $0x60] sm:$0xff] }
  0x2a   :  { %434 = vmatpush.msrb.mxu2 %v2414_v25  ;;  %491 = vmatpush.msra.mxu3 %v2416_v26  ;;  %v2518_v53 = vld [vmem:[#allocation11 + $0xf8] sm:$0xff]  ;;  %3547 = vst [vmem:[#allocation22_spill] sm:$0xff] %v2523_v55  ;;  %v2537_v58 = vld [vmem:[#allocation11 + $0x88] sm:$0xff]  ;;  %v2547_v59 = vld [vmem:[#allocation11 + $0x40] sm:$0xff] }
  0x2b   :  { %452 = vmatpush.msra.mxu1 %v2422_v27  ;;  %589 = vmatpush.msrb.mxu0 %v2398_v16  ;;  %v2529_v56 = vld [vmem:[#allocation11 + $0xd8] sm:$0xff]  ;;  %3548 = vst [vmem:[#allocation23_spill] sm:$0xff] %v2534_v57  ;;  %v2553_v61 = vld [vmem:[#allocation11 + $0x68] sm:$0xff]  ;;  %v2556_v62 = vld [vmem:[#allocation11 + $0x20] sm:$0xff] }
  0x2c   :  { %435 = vmatpush.msrb.mxu2 %v2426_v28  ;;  %492 = vmatpush.msra.mxu3 %v2429_v29  ;;  %3549 = vst [vmem:[#allocation24_spill] sm:$0xff] %v2537_v58  ;;  %v2551_v60 = vld [vmem:[#allocation11 + $0xb8] sm:$0xff]  ;;  %v2560_v63 = vld [vmem:[#allocation11 + $0x48] sm:$0xff]  ;;  %v2571_v2 = vld [vmem:[#allocation11] sm:$0xff] }
  0x2d   :  { %453 = vmatpush.msra.mxu1 %v2433_v30  ;;  %590 = vmatpush.msrb.mxu0 %v2401_v19  ;;  %3550 = vst [vmem:[#allocation25_spill] sm:$0xff] %v2547_v59  ;;  %v2565_v0 = vld [vmem:[#allocation11 + $0x98] sm:$0xff]  ;;  %v2567_v1 = vld [vmem:[#allocation11 + $0x28] sm:$0xff]  ;;  %v2581_v4 = vld [vmem:[#allocation11 + $0x1f0] sm:$0xff] }
  0x2e   :  { %436 = vmatpush.msrb.mxu2 %v2435_v31  ;;  %493 = vmatpush.msra.mxu3 %v2438_v32  ;;  %3551 = vst [vmem:[#allocation26_spill] sm:$0xff] %v2551_v60  ;;  %v2574_v3 = vld [vmem:[#allocation11 + $0x8] sm:$0xff]  ;;  %v2587_v5 = vld [vmem:[#allocation11 + $0x1d0] sm:$0xff]  ;;  %v2589_v6 = vld [vmem:[#allocation11 + $0x78] sm:$0xff] }
  0x2f   :  { %454 = vmatpush.msra.mxu1 %v2443_v33  ;;  %591 = vmatpush.msrb.mxu0 %v2414_v25  ;;  %3552 = vst [vmem:[#allocation27_spill] sm:$0xff] %v2553_v61  ;;  %v2591_v7 = vld [vmem:[#allocation11 + $0x58] sm:$0xff]  ;;  %v2602_v11 = vld [vmem:[#allocation11 + $0x190] sm:$0xff] }
  0x30   :  { %1872 = vmatmul.msk.f32.gmra.mxu3 %vm204_vm0, %v2445_v34  ;;  %1874 = vmatmul.msk.f32.gmra.mxu1 %vm204_vm0, %v2408_v23  ;;  %3553 = vst [vmem:[#allocation28_spill] sm:$0xff] %v2556_v62  ;;  %v2613_v12 = vld [vmem:[#allocation11 + $0x170] sm:$0xff]  ;;  %v2615_v14 = vld [vmem:[#allocation11 + $0x38] sm:$0xff] }
  0x31   :  { %1883 = vmatmul.msk.f32.gmra.mxu2 %vm204_vm0, %v2449_v35  ;;  %455 = vmatpush.msra.mxu1 %v2453_v36  ;;  %3554 = vst [vmem:[#allocation29_spill] sm:$0xff] %v2560_v63  ;;  %v2617_v15 = vld [vmem:[#allocation11 + $0x18] sm:$0xff]  ;;  %v2623_v17 = vld [vmem:[#allocation11 + $0x150] sm:$0xff] }
  0x32   :  { %437 = vmatpush.msrb.mxu2 %v2455_v37  ;;  %494 = vmatpush.msra.mxu3 %v2458_v38  ;;  %3555 = vst [vmem:[#allocation30_spill] sm:$0xff] %v2565_v0  ;;  %v2628_v18 = vld [vmem:[#allocation11 + $0x130] sm:$0xff] }
  0x33   :  { %456 = vmatpush.msra.mxu1 %v2465_v39  ;;  %1866 = vmatmul.msk.f32.gmra.mxu0 %vm204_vm0, %v2408_v23  ;;  %3556 = vst [vmem:[#allocation31_spill] sm:$0xff] %v2567_v1  ;;  %v2634_v20 = vld [vmem:[#allocation11 + $0x110] sm:$0xff] }
  0x34   :  { %438 = vmatpush.msrb.mxu2 %v2469_v40  ;;  %495 = vmatpush.msra.mxu3 %v2472_v41  ;;  %3557 = vst [vmem:[#allocation32_spill] sm:$0xff] %v2571_v2  ;;  %v2644_v21 = vld [vmem:[#allocation11 + $0xf0] sm:$0xff] }
  0x35   :  { %457 = vmatpush.msra.mxu1 %v2476_v42  ;;  %592 = vmatpush.msrb.mxu0 %v2426_v28  ;;  %3558 = vst [vmem:[#allocation33_spill] sm:$0xff] %v2574_v3 }
  0x36   :  { %439 = vmatpush.msrb.mxu2 %v2478_v43  ;;  %496 = vmatpush.msra.mxu3 %v2481_v44  ;;  %3559 = vst [vmem:[#allocation34_spill] sm:$0xff] %v2589_v6 }
  0x37   :  { %458 = vmatpush.msra.mxu1 %v2487_v45  ;;  %593 = vmatpush.msrb.mxu0 %v2435_v31  ;;  %3560 = vst [vmem:[#allocation35_spill] sm:$0xff] %v2591_v7 }
  0x38   :  { %1875 = vmatmul.msk.f32.gmra.mxu1 %vm204_vm0, %v2449_v35  ;;  %1889 = vmatmul.msk.f32.vlgmr.msrb.gmra.mxu3 %vm204_vm0, %v2388_v10  ;;  %v2596_v10 = vld [vmem:[#allocation11 + $0x1b0] sm:$0xff]  ;;  %3561 = vst [vmem:[#allocation36_spill] sm:$0xff] %v2615_v14 }
  0x39   :  { %1884 = vmatmul.msk.f32.gmra.mxu2 %vm204_vm0, %v2491_v46  ;;  %497 = vmatpush.msra.mxu3 %v2495_v47  ;;  %3562 = vst [vmem:[#allocation37_spill] sm:$0xff] %v2617_v15 }
  0x3a   :  { %440 = vmatpush.msrb.mxu2 %v2497_v48  ;;  %459 = vmatpush.msra.mxu1 %v2500_v49 }
  0x3b   :  { %498 = vmatpush.msra.mxu3 %v2507_v50  ;;  %594 = vmatpush.msrb.mxu0 %v2455_v37 }
  0x3c   :  { %441 = vmatpush.msrb.mxu2 %v2511_v51  ;;  %460 = vmatpush.msra.mxu1 %v2514_v52 }
  0x3d   :  { %499 = vmatpush.msra.mxu3 %v2518_v53  ;;  %595 = vmatpush.msrb.mxu0 %v2469_v40 }
  0x3e   :  { %442 = vmatpush.msrb.mxu2 %v2520_v54  ;;  %461 = vmatpush.msra.mxu1 %v2523_v55 }
  0x3f   :  { %500 = vmatpush.msra.mxu3 %v2529_v56  ;;  %1867 = vmatmul.msk.f32.gmra.mxu0 %vm204_vm0, %v2449_v35 }
  0x40   :  { %1876 = vmatmul.msk.f32.gmra.mxu1 %vm204_vm0, %v2491_v46  ;;  %1890 = vmatmul.msk.f32.gmra.mxu3 %vm204_vm0, %v2408_v23  ;;  %v2650_v23 = vld [vmem:[#allocation11 + $0xd0] sm:$0xff] }
  0x41   :  { %1885 = vmatmul.msk.f32.gmra.mxu2 %vm204_vm0, %v2384_v8  ;;  %462 = vmatpush.msra.mxu1 %v2537_v58 }
  0x42   :  { %443 = vmatpush.msrb.mxu2 %v2534_v57  ;;  %596 = vmatpush.msrb.mxu0 %v2478_v43 }
  0x43   :  { %501 = vmatpush.msra.mxu3 %v2551_v60  ;;  %463 = vmatpush.msra.mxu1 %v2553_v61 }
  0x44   :  { %444 = vmatpush.msrb.mxu2 %v2547_v59  ;;  %597 = vmatpush.msrb.mxu0 %v2497_v48 }
  0x45   :  { %464 = vmatpush.msra.mxu1 %v2560_v63  ;;  %502 = vmatpush.msra.mxu3 %v2565_v0 }
  0x46   :  { %445 = vmatpush.msrb.mxu2 %v2556_v62  ;;  %598 = vmatpush.msrb.mxu0 %v2511_v51 }
  0x47   :  { %465 = vmatpush.msra.mxu1 %v2567_v1  ;;  %503 = vmatpush.msra.mxu3 %v2589_v6 }
  0x48   :  { %1877 = vmatmul.msk.f32.gmra.mxu1 %vm204_vm0, %v2384_v8  ;;  %1891 = vmatmul.msk.f32.gmra.mxu3 %vm204_vm0, %v2449_v35  ;;  %v2655_v35 = vld [vmem:[#allocation11 + $0xb0] sm:$0xff] }
  0x49   :  { %1886 = vmatmul.msk.f32.gmra.mxu2 %vm204_vm0, %v2386_v9  ;;  %466 = vmatpush.msra.mxu1 %v2574_v3  ;;  %3563 = vst [vmem:[#allocation38_spill] sm:$0xff] %v2655_v35 }
  0x4a   :  { %446 = vmatpush.msrb.mxu2 %v2571_v2  ;;  %599 = vmatpush.msrb.mxu0 %v2520_v54 }
  0x4b   :  { %608 = vmatpush.msrb.mxu1 %v2411_v24  ;;  %504 = vmatpush.msra.mxu3 %v2591_v7 }
  0x4c   :  { %471 = vmatpush.msra.mxu2 %v2581_v4  ;;  %1868 = vmatmul.msk.f32.gmra.mxu0 %vm204_vm0, %v2491_v46 }
  0x4d   :  { %609 = vmatpush.msrb.mxu1 %v2422_v27  ;;  %600 = vmatpush.msrb.mxu0 %v2534_v57 }
  0x4e   :  { %472 = vmatpush.msra.mxu2 %v2587_v5  ;;  %505 = vmatpush.msra.mxu3 %v2615_v14 }
  0x4f   :  { %610 = vmatpush.msrb.mxu1 %v2433_v30  ;;  %601 = vmatpush.msrb.mxu0 %v2547_v59 }
  0x50   :  { %473 = vmatpush.msra.mxu2 %v2596_v10  ;;  %1878 = vmatmul.msk.f32.gmra.mxu1 %vm204_vm0, %v2386_v9 }
  0x51   :  { %1892 = vmatmul.msk.f32.gmra.mxu3 %vm204_vm0, %v2491_v46  ;;  %1887 = vmatmul.msk.f32.gmra.mxu2 %vm204_vm0, %v2406_v22  ;;  %v2671_v46 = vld [vmem:[#allocation11 + $0x70] sm:$0xff] }
  0x52   :  { %474 = vmatpush.msra.mxu2 %v2602_v11  ;;  %611 = vmatpush.msrb.mxu1 %v2443_v33  ;;  %3565 = vst [vmem:[#allocation40_spill] sm:$0xff] %v2671_v46 }
  0x53   :  { %506 = vmatpush.msra.mxu3 %v2617_v15  ;;  %602 = vmatpush.msrb.mxu0 %v2556_v62  ;;  %v2675_v62 = vld [vmem:[#allocation11 + $0x50] sm:$0xff] }
  0x54   :  { %475 = vmatpush.msra.mxu2 %v2613_v12  ;;  %612 = vmatpush.msrb.mxu1 %v2453_v36  ;;  %3566 = vst [vmem:[#allocation41_spill] sm:$0xff] %v2675_v62 }
  0x55   :  { %648 = vmatpush.msrb.mxu3 %v2416_v26  ;;  %603 = vmatpush.msrb.mxu0 %v2571_v2  ;;  %v2326_v2 = vmov 0.0  }
  0x56   :  { %476 = vmatpush.msra.mxu2 %v2623_v17  ;;  %613 = vmatpush.msrb.mxu1 %v2465_v39 }
  0x57   :  { %649 = vmatpush.msrb.mxu3 %v2429_v29  ;;  %746 = vmatpush.msra.mxu0 %v2392_v13  ;;  %v2680_v13 = vld [vmem:[#allocation11 + $0x30] sm:$0xff] }
  0x58   :  { %477 = vmatpush.msra.mxu2 %v2628_v18  ;;  %1879 = vmatmul.msk.f32.gmra.mxu1 %vm204_vm0, %v2406_v22  ;;  %3567 = vst [vmem:[#allocation42_spill] sm:$0xff] %v2680_v13 }
  0x59   :  { %1893 = vmatmul.msk.f32.gmra.mxu3 %vm204_vm0, %v2384_v8  ;;  %1888 = vmatmul.msk.f32.gmra.mxu2 %vm204_vm0, %v2445_v34  ;;  %v2661_v8 = vld [vmem:[#allocation11 + $0x90] sm:$0xff] }
  0x5a   :  { %478 = vmatpush.msra.mxu2 %v2634_v20  ;;  %650 = vmatpush.msrb.mxu3 %v2438_v32  ;;  %3564 = vst [vmem:[#allocation39_spill] sm:$0xff] %v2661_v8 }
  0x5b   :  { %614 = vmatpush.msrb.mxu1 %v2476_v42  ;;  %747 = vmatpush.msra.mxu0 %v2398_v16 }
  0x5c   :  { %479 = vmatpush.msra.mxu2 %v2644_v21  ;;  %651 = vmatpush.msrb.mxu3 %v2458_v38 }
  0x5d   :  { %615 = vmatpush.msrb.mxu1 %v2487_v45  ;;  %748 = vmatpush.msra.mxu0 %v2401_v19 }
  0x5e   :  { %480 = vmatpush.msra.mxu2 %v2650_v23  ;;  %652 = vmatpush.msrb.mxu3 %v2472_v41 }
  0x5f   :  { %616 = vmatpush.msrb.mxu1 %v2500_v49  ;;  %749 = vmatpush.msra.mxu0 %v2414_v25 }
  0x60   :  { %481 = vmatpush.msra.mxu2 %v2655_v35  ;;  %653 = vmatpush.msrb.mxu3 %v2481_v44 }
  0x61   :  { %1880 = vmatmul.msk.f32.gmra.mxu1 %vm204_vm0, %v2445_v34  ;;  %1894 = vmatmul.msk.f32.gmra.mxu3 %vm204_vm0, %v2386_v9  ;;  %v2686_v9 = vld [vmem:[#allocation11 + $0x10] sm:$0xff] }
  0x62   :  { %482 = vmatpush.msra.mxu2 %v2661_v8  ;;  %654 = vmatpush.msrb.mxu3 %v2495_v47  ;;  %3568 = vst [vmem:[#allocation43_spill] sm:$0xff] %v2686_v9 }
  0x63   :  { %447 = vmatmul.f32.vlgmr.msrb.gmra.mxu2 %v2326_v2  ;;  %617 = vmatpush.msrb.mxu1 %v2514_v52 }
  0x64   :  { %483 = vmatpush.msra.mxu2 %v2671_v46  ;;  %655 = vmatpush.msrb.mxu3 %v2507_v50 }
  0x65   :  { %618 = vmatpush.msrb.mxu1 %v2523_v55  ;;  %750 = vmatpush.msra.mxu0 %v2426_v28 }
  0x66   :  { %484 = vmatpush.msra.mxu2 %v2675_v62  ;;  %656 = vmatpush.msrb.mxu3 %v2518_v53 }
  0x67   :  { %619 = vmatpush.msrb.mxu1 %v2537_v58  ;;  %751 = vmatpush.msra.mxu0 %v2435_v31 }
  0x68   :  { %485 = vmatpush.msra.mxu2 %v2680_v13  ;;  %657 = vmatpush.msrb.mxu3 %v2529_v56 }
  0x69   :  { %1895 = vmatmul.msk.f32.gmra.mxu3 %vm204_vm0, %v2406_v22  ;;  %467 = vmatmul.f32.vlgmr.msra.gmra.mxu1 %v2326_v2  ;;  %v3569_v22 = vld [vmem:[#allocation28_spill] sm:$0xff] }
  0x6a   :  { %486 = vmatpush.msra.mxu2 %v2686_v9  ;;  %658 = vmatpush.msrb.mxu3 %v2551_v60 }
  0x6b   :  { %487 = vmatmul.f32.vlgmr.msra.gmra.mxu2 %v2326_v2  ;;  %620 = vmatpush.msrb.mxu1 %v2553_v61 }
  0x6c   :  { %628 = vmatpush.msrb.mxu2 %v2581_v4  ;;  %659 = vmatpush.msrb.mxu3 %v2565_v0 }
  0x6d   :  { %621 = vmatpush.msrb.mxu1 %v2560_v63  ;;  %752 = vmatpush.msra.mxu0 %v2455_v37 }
  0x6e   :  { %629 = vmatpush.msrb.mxu2 %v2587_v5  ;;  %660 = vmatpush.msrb.mxu3 %v2589_v6 }
  0x6f   :  { %622 = vmatpush.msrb.mxu1 %v2567_v1  ;;  %753 = vmatpush.msra.mxu0 %v2469_v40 }
  0x70   :  { %630 = vmatpush.msrb.mxu2 %v2596_v10  ;;  %661 = vmatpush.msrb.mxu3 %v2591_v7 }
  0x71   :  { %1896 = vmatmul.msk.f32.gmra.mxu3 %vm204_vm0, %v2445_v34  ;;  %623 = vmatpush.msrb.mxu1 %v2574_v3  ;;  %v3570_v34 = vld [vmem:[#allocation32_spill] sm:$0xff] }
  0x72   :  { %631 = vmatpush.msrb.mxu2 %v2602_v11  ;;  %662 = vmatpush.msrb.mxu3 %v2615_v14 }
  0x73   :  { %766 = vmatpush.msra.mxu1 %v2411_v24  ;;  %754 = vmatpush.msra.mxu0 %v2478_v43 }
  0x74   :  { %632 = vmatpush.msrb.mxu2 %v2613_v12  ;;  %663 = vmatpush.msrb.mxu3 %v2617_v15 }
  0x75   :  { %767 = vmatpush.msra.mxu1 %v2422_v27  ;;  %755 = vmatpush.msra.mxu0 %v2497_v48 }
  0x76   :  { %633 = vmatpush.msrb.mxu2 %v2623_v17 }
  0x77   :  { %768 = vmatpush.msra.mxu1 %v2433_v30  ;;  %756 = vmatpush.msra.mxu0 %v2511_v51 }
  0x78   :  { %634 = vmatpush.msrb.mxu2 %v2628_v18 }
  0x79   :  { %507 = vmatmul.f32.vlgmr.msra.gmra.mxu3 %v2326_v2  ;;  %769 = vmatpush.msra.mxu1 %v2443_v33 }
  0x7a   :  { %635 = vmatpush.msrb.mxu2 %v2634_v20  ;;  %806 = vmatpush.msra.mxu3 %v2416_v26 }
  0x7b   :  { %770 = vmatpush.msra.mxu1 %v2453_v36  ;;  %757 = vmatpush.msra.mxu0 %v2520_v54 }
  0x7c   :  { %636 = vmatpush.msrb.mxu2 %v2644_v21  ;;  %807 = vmatpush.msra.mxu3 %v2429_v29 }
  0x7d   :  { %771 = vmatpush.msra.mxu1 %v2465_v39  ;;  %758 = vmatpush.msra.mxu0 %v2534_v57 }
  0x7e   :  { %637 = vmatpush.msrb.mxu2 %v2650_v23  ;;  %808 = vmatpush.msra.mxu3 %v2438_v32 }
  0x7f   :  { %772 = vmatpush.msra.mxu1 %v2476_v42  ;;  %759 = vmatpush.msra.mxu0 %v2547_v59 }
  0x80   :  { %638 = vmatpush.msrb.mxu2 %v2655_v35  ;;  %809 = vmatpush.msra.mxu3 %v2458_v38 }
  0x81   :  { %773 = vmatpush.msra.mxu1 %v2487_v45  ;;  %760 = vmatpush.msra.mxu0 %v3569_v22 }
  0x82   :  { %639 = vmatpush.msrb.mxu2 %v2661_v8  ;;  %810 = vmatpush.msra.mxu3 %v2472_v41 }
  0x83   :  { %774 = vmatpush.msra.mxu1 %v2500_v49  ;;  %761 = vmatpush.msra.mxu0 %v3570_v34 }
  0x84   :  { %640 = vmatpush.msrb.mxu2 %v2671_v46  ;;  %811 = vmatpush.msra.mxu3 %v2481_v44 }
  0x85   :  { %775 = vmatpush.msra.mxu1 %v2514_v52 }
  0x86   :  { %641 = vmatpush.msrb.mxu2 %v2675_v62  ;;  %812 = vmatpush.msra.mxu3 %v2495_v47 }
  0x87   :  { %776 = vmatpush.msra.mxu1 %v2523_v55 }
  0x88   :  { %642 = vmatpush.msrb.mxu2 %v2680_v13  ;;  %813 = vmatpush.msra.mxu3 %v2507_v50 }
  0x89   :  { %777 = vmatpush.msra.mxu1 %v2537_v58 }
  0x8a   :  { %643 = vmatpush.msrb.mxu2 %v2686_v9  ;;  %814 = vmatpush.msra.mxu3 %v2518_v53 }
  0x8b   :  { %778 = vmatpush.msra.mxu1 %v2553_v61 }
  0x8c   :  { %786 = vmatpush.msra.mxu2 %v2581_v4  ;;  %815 = vmatpush.msra.mxu3 %v2529_v56 }
  0x8d   :  { %779 = vmatpush.msra.mxu1 %v2560_v63 }
  0x8e   :  { %787 = vmatpush.msra.mxu2 %v2587_v5  ;;  %816 = vmatpush.msra.mxu3 %v2551_v60 }
  0x8f   :  { %780 = vmatpush.msra.mxu1 %v2567_v1 }
  0x90   :  { %788 = vmatpush.msra.mxu2 %v2596_v10  ;;  %817 = vmatpush.msra.mxu3 %v2565_v0 }
  0x91   :  { %781 = vmatpush.msra.mxu1 %v2574_v3 }
  0x92   :  { %789 = vmatpush.msra.mxu2 %v2602_v11  ;;  %818 = vmatpush.msra.mxu3 %v2589_v6 }
  0x94   :  { %790 = vmatpush.msra.mxu2 %v2613_v12  ;;  %819 = vmatpush.msra.mxu3 %v2591_v7 }
  0x96   :  { %791 = vmatpush.msra.mxu2 %v2623_v17  ;;  %820 = vmatpush.msra.mxu3 %v2615_v14 }
  0x98   :  { %792 = vmatpush.msra.mxu2 %v2628_v18  ;;  %821 = vmatpush.msra.mxu3 %v2617_v15 }
  0x9a   :  { %793 = vmatpush.msra.mxu2 %v2634_v20 }
  0x9c   :  { %794 = vmatpush.msra.mxu2 %v2644_v21  ;;  %v2777_v2 = vpop.f32.mrf.mxu1 }
  0x9d   :  { %3571 = vst [vmem:[#allocation44_spill] sm:$0xff] %v2777_v2  ;;  %v194_v2 = vld [vmem:[#allocation12] sm:$0xf] }
  0x9e   :  { %795 = vmatpush.msra.mxu2 %v2650_v23  ;;  %v2790_v14 = vperm.slane %v194_v2, 2  ;;  %v197_v22 = vperm.slane %v194_v2, 1 }
  0xa0   :  { %796 = vmatpush.msra.mxu2 %v2655_v35 }
  0xa2   :  { %797 = vmatpush.msra.mxu2 %v2661_v8 }
  0xa3   :  { %v2783_v3 = vpop.f32.mrf.mxu3  ;;  %v2785_v34 = vpop.f32.mrf.mxu2 }
  0xa4   :  { %798 = vmatpush.msra.mxu2 %v2671_v46  ;;  %3572 = vst [vmem:[#allocation45_spill] sm:$0xff] %v2783_v3 }
  0xa5   :  { %v287_v15 = vpop.f32.mrf.mxu1 }
  0xa6   :  { %799 = vmatpush.msra.mxu2 %v2675_v62 }
  0xa8   :  { %800 = vmatpush.msra.mxu2 %v2680_v13 }
  0xaa   :  { %801 = vmatpush.msra.mxu2 %v2686_v9 }
  0xab   :  { %v2792_v1 = vpop.f32.mrf.mxu3 }
  0xac   :  { %3573 = vst [vmem:[#allocation46_spill] sm:$0xff] %v2792_v1  ;;  %v331_v7 = vpop.f32.mrf.mxu2 }
  0xad   :  { %v2795_v63 = vadd.f32 %v331_v7, %v2790_v14  ;;  %v290_v3 = vpop.f32.mrf.mxu1 }
  0xae   :  { %v2797_v59 = vadd.f32 %v290_v3, %v197_v22 }
  0xaf   :  { %3574 = vst [vmem:[#allocation47_spill] sm:$0xff] %v2795_v63  ;;  %v199_v63 = vperm.slane %v194_v2, 3 }
  0xb0   :  { %3575 = vst [vmem:[#allocation48_spill] sm:$0xff] %v2797_v59 }
  0xb3   :  { %v2799_v6 = vpop.f32.mrf.mxu3 }
  0xb4   :  { %3576 = vst [vmem:[#allocation49_spill] sm:$0xff] %v2799_v6  ;;  %v334_v62 = vpop.f32.mrf.mxu2 }
  0xb5   :  { %v2802_v13 = vadd.f32 %v334_v62, %v2790_v14  ;;  %v293_v9 = vpop.f32.mrf.mxu1 }
  0xb6   :  { %v2804_v46 = vadd.f32 %v293_v9, %v197_v22 }
  0xb7   :  { %3577 = vst [vmem:[#allocation50_spill] sm:$0xff] %v2802_v13 }
  0xb8   :  { %3578 = vst [vmem:[#allocation51_spill] sm:$0xff] %v2804_v46 }
  0xbb   :  { %v369_v61 = vpop.f32.mrf.mxu3 }
  0xbc   :  { %v337_v57 = vpop.f32.mrf.mxu2 }
  0xbd   :  { %v2807_v1 = vadd.f32 %v337_v57, %v2790_v14  ;;  %v296_v0 = vpop.f32.mrf.mxu1 }
  0xbe   :  { %v2809_v7 = vadd.f32 %v296_v0, %v197_v22 }
  0xbf   :  { %3579 = vst [vmem:[#allocation52_spill] sm:$0xff] %v2807_v1 }
  0xc0   :  { %3580 = vst [vmem:[#allocation53_spill] sm:$0xff] %v2809_v7 }
  0xc3   :  { %v372_v3 = vpop.f32.mrf.mxu3 }
  0xc4   :  { %v340_v59 = vpop.f32.mrf.mxu2  ;;  %v2811_v8 = vadd.f32 %v372_v3, %v199_v63 }
  0xc5   :  { %v2814_v6 = vadd.f32 %v340_v59, %v2790_v14  ;;  %v299_v62 = vpop.f32.mrf.mxu1 }
  0xc6   :  { %3581 = vst [vmem:[#allocation54_spill] sm:$0xff] %v2811_v8  ;;  %v2816_v13 = vadd.f32 %v299_v62, %v197_v22 }
  0xc7   :  { %3582 = vst [vmem:[#allocation55_spill] sm:$0xff] %v2814_v6 }
  0xc8   :  { %3583 = vst [vmem:[#allocation56_spill] sm:$0xff] %v2816_v13 }
  0xcb   :  { %v375_v9 = vpop.f32.mrf.mxu3 }
  0xcc   :  { %v343_v46 = vpop.f32.mrf.mxu2  ;;  %v2818_v58 = vadd.f32 %v375_v9, %v199_v63 }
  0xcd   :  { %v2821_v57 = vadd.f32 %v343_v46, %v2790_v14  ;;  %v302_v0 = vpop.f32.mrf.mxu1 }
  0xce   :  { %3584 = vst [vmem:[#allocation57_spill] sm:$0xff] %v2818_v58  ;;  %v2823_v1 = vadd.f32 %v302_v0, %v197_v22 }
  0xcf   :  { %3585 = vst [vmem:[#allocation58_spill] sm:$0xff] %v2821_v57  ;;  %v246_v57 = vpop.f32.mrf.mxu0 }
  0xd0   :  { %3586 = vst [vmem:[#allocation59_spill] sm:$0xff] %v2823_v1 }
  0xd4   :  { %v378_v7 = vpop.f32.mrf.mxu3  ;;  %v346_v3 = vpop.f32.mrf.mxu2 }
  0xd5   :  { %v2825_v54 = vadd.f32 %v378_v7, %v199_v63  ;;  %v305_v8 = vpop.f32.mrf.mxu1  ;;  %v2828_v59 = vadd.f32 %v346_v3, %v2790_v14  ;;  %v2839_v7 = vperm.slane %v194_v2, 0  ;;  %v288_v3 = vadd.f32 %v287_v15, %v197_v22 }
  0xd6   :  { %v2830_v62 = vadd.f32 %v305_v8, %v197_v22 }
  0xd7   :  { %3587 = vst [vmem:[#allocation60_spill] sm:$0xff] %v2825_v54  ;;  %v247_v1 = vadd.f32 %v246_v57, %v2839_v7 }
  0xd8   :  { %3588 = vst [vmem:[#allocation61_spill] sm:$0xff] %v2828_v59 }
  0xd9   :  { %3589 = vst [vmem:[#allocation62_spill] sm:$0xff] %v2830_v62 }
  0xda   :  { %3593 = vst [vmem:[#allocation66_spill] sm:$0xff] %v2839_v7 }
  0xdc   :  { %v381_v6 = vpop.f32.mrf.mxu3  ;;  %v349_v9 = vpop.f32.mrf.mxu2 }
  0xdd   :  { %v2832_v13 = vadd.f32 %v381_v6, %v199_v63  ;;  %v2835_v46 = vadd.f32 %v349_v9, %v2790_v14 }
  0xde   :  { %v308_v58 = vpop.f32.mrf.mxu1 }
  0xdf   :  { %3590 = vst [vmem:[#allocation63_spill] sm:$0xff] %v2832_v13  ;;  %v2837_v0 = vadd.f32 %v308_v58, %v197_v22 }
  0xe0   :  { %3591 = vst [vmem:[#allocation64_spill] sm:$0xff] %v2835_v46 }
  0xe1   :  { %3592 = vst [vmem:[#allocation65_spill] sm:$0xff] %v2837_v0 }
  0xe4   :  { %v384_v54 = vpop.f32.mrf.mxu3 }
  0xe5   :  { %v2842_v59 = vadd.f32 %v384_v54, %v199_v63 }
  0xe6   :  { %v448_v8 = vpop.f32.mrf.mxu2  ;;  %v468_v62 = vpop.f32.mrf.mxu1 }
  0xe7   :  { %3594 = vst [vmem:[#allocation67_spill] sm:$0xff] %v2842_v59  ;;  %v511_v6 = vadd.f32 %v448_v8, %v247_v1  ;;  %v512_v13 = vadd.f32 %v468_v62, %v288_v3  ;;  %v370_v1 = vadd.f32 %v369_v61, %v199_v63 }
  0xe9   :  { %v1897_v60 = vmul.f32 -1.442695, %v511_v6  ;;  %v1898_v35 = vmul.f32 -1.442695, %v512_v13 }
  0xeb   :  { %1941 = vpow2.f32 %v1897_v60 }
  0xec   :  { %1943 = vpow2.f32 %v1898_v35  ;;  %v387_v9 = vpop.f32.mrf.mxu3 }
  0xed   :  { %v2844_v58 = vadd.f32 %v387_v9, %v199_v63 }
  0xef   :  { %3595 = vst [vmem:[#allocation68_spill] sm:$0xff] %v2844_v58  ;;  %v488_v58 = vpop.f32.mrf.mxu2 }
  0xf1   :  { %v1942_v46 = vpop.eup %1941 }
  0xf2   :  { %v1944_v2 = vpop.eup %1943  ;;  %v518_v0 = vadd.f32 1.0, %v1942_v46  ;;  %v329_v46 = vadd.f32 %v2785_v34, %v2790_v14 }
  0xf3   :  { %v537_v55 = vadd.f32 1.0, %v1944_v2 }
  0xf4   :  { %1945 = vrcp.f32 %v518_v0  ;;  %v390_v57 = vpop.f32.mrf.mxu3  ;;  %vm524_vm1 = vweird.f32 %v518_v0  ;;  %v513_v61 = vadd.f32 %v488_v58, %v329_v46 }
  0xf5   :  { %1947 = vrcp.f32 %v537_v55  ;;  %v2846_v54 = vadd.f32 %v390_v57, %v199_v63  ;;  %v549_v57 = vand.u32 2147483648, %v537_v55  ;;  %v530_v63 = vand.u32 2147483648, %v518_v0 }
  0xf6   :  { %vm543_vm4 = vweird.f32 %v537_v55 }
  0xf7   :  { %3596 = vst [vmem:[#allocation69_spill] sm:$0xff] %v2846_v54  ;;  %v531_v14 = vor.u32 1.1754944e-38, %v530_v63 }
  0xfa   :  { %v1946_v15 = vpop.eup %1945 }
  0xfb   :  { %v1948_v22 = vpop.eup %1947  ;;  %v520_v62 = vmul.f32 %v1946_v15, %v518_v0  ;;  %vm525_vm2 = vweird.f32 %v1946_v15 }
  0xfc   :  { %v539_v3 = vmul.f32 %v1948_v22, %v537_v55  ;;  %v508_v13 = vpop.f32.mrf.mxu3  ;;  %vm544_vm3 = vweird.f32 %v1948_v22  ;;  %vm2850_vm5 = vmor %vm524_vm1, %vm525_vm2 }
  0xfd   :  { %v521_v60 = vsub.f32 1.0, %v520_v62  ;;  %v514_v35 = vadd.f32 %v508_v13, %v370_v1  ;;  %v528_v62 = vand.u32 2147483647, %v518_v0  ;;  %vm545_vm6 = vmor %vm543_vm4, %vm544_vm3 }
  0xfe   :  { %v540_v8 = vsub.f32 1.0, %v539_v3  ;;  %v547_v3 = vand.u32 2147483647, %v537_v55 }
  0xff   :  { %v1899_v6 = vmul.f32 -1.442695, %v514_v35  ;;  %v522_v59 = vmul.f32 %v1946_v15, %v521_v60  ;;  %v550_v35 = vor.u32 1.1754944e-38, %v549_v57  ;;  %vm529_vm7 = vcmp.eq.f32.partialorder %v528_v62, 8.507059e+37 }
 0x100   :  { %v541_v9 = vmul.f32 %v1948_v22, %v540_v8  ;;  %vm548_vm8 = vcmp.eq.f32.partialorder %v547_v3, 8.507059e+37 }
 0x101   :  { %1949 = vpow2.f32 %v1899_v6  ;;  %v523_v54 = vadd.f32 %v1946_v15, %v522_v59 }
 0x102   :  { %v542_v2 = vadd.f32 %v1948_v22, %v541_v9  ;;  %1951 = vtanh.f32 %v513_v61 }
 0x103   :  { %v527_v8 = vsel %vm2850_vm5, %v1946_v15, %v523_v54 }
 0x104   :  { %v546_v60 = vsel %vm545_vm6, %v1948_v22, %v542_v2  ;;  %v532_v59 = vsel %vm529_vm7, %v531_v14, %v527_v8 }
 0x105   :  { %v551_v58 = vsel %vm548_vm8, %v550_v35, %v546_v60  ;;  %v3626_v60 = vld [vmem:[#allocation48_spill] sm:$0xff] }
 0x106   :  { %v573_v6 = vmul.f32 0.0, %v551_v58  ;;  %v3627_v58 = vld [vmem:[#allocation54_spill] sm:$0xff] }
 0x107   :  { %v1950_v13 = vpop.eup %1949 }
 0x108   :  { %v557_v34 = vadd.f32 1.0, %v1950_v13  ;;  %v1952_v9 = vpop.eup %1951 }
 0x109   :  { %v574_v46 = vmul.f32 %v1952_v9, %v532_v59 }
 0x10a   :  { %1953 = vrcp.f32 %v557_v34  ;;  %v569_v2 = vand.u32 2147483648, %v557_v34  ;;  %v567_v61 = vand.u32 2147483647, %v557_v34  ;;  %vm563_vm10 = vweird.f32 %v557_v34 }
 0x10b   :  { %v2856_v55 = vadd.f32 %v574_v46, %v573_v6 }
 0x10c   :  { %v570_v15 = vor.u32 1.1754944e-38, %v569_v2  ;;  %vm568_vm12 = vcmp.eq.f32.partialorder %v567_v61, 8.507059e+37 }
 0x10d   :  { %1955 = vtanh.f32 %v2856_v55 }
 0x110   :  { %v1954_v0 = vpop.eup %1953 }
 0x111   :  { %v559_v7 = vmul.f32 %v1954_v0, %v557_v34  ;;  %vm564_vm9 = vweird.f32 %v1954_v0 }
 0x112   :  { %vm565_vm11 = vmor %vm563_vm10, %vm564_vm9 }
 0x113   :  { %v560_v22 = vsub.f32 1.0, %v559_v7  ;;  %v1956_v1 = vpop.eup %1955  ;;  %v3600_v7 = vld [vmem:[#allocation20_spill] sm:$0xff] }
 0x115   :  { %v561_v57 = vmul.f32 %v1954_v0, %v560_v22 }
 0x117   :  { %v562_v54 = vadd.f32 %v1954_v0, %v561_v57 }
 0x119   :  { %v566_v63 = vsel %vm565_vm11, %v1954_v0, %v562_v54 }
 0x11a   :  { %v571_v62 = vsel %vm568_vm12, %v570_v15, %v566_v63  ;;  %v3628_v15 = vld [vmem:[#allocation47_spill] sm:$0xff] }
 0x11b   :  { %v2859_v3 = vmul.f32 %v1956_v1, %v571_v62 }
 0x11d   :  { %3599 = vst [vmem:[#allocation70_spill] sm:$0xff] %v2859_v3  ;;  %604 = vmatmul.f32.vlgmr.msrb.gmra.mxu0 %v2859_v3  ;;  %624 = vmatmul.f32.vlgmr.msrb.gmra.mxu1 %v2859_v3 }
 0x11e   :  { %644 = vmatmul.f32.vlgmr.msrb.gmra.mxu2 %v2859_v3  ;;  %664 = vmatmul.f32.vlgmr.msrb.gmra.mxu3 %v2859_v3 }
 0x11f   :  { %904 = vmatpush.msrb.mxu0 %v3600_v7  ;;  %924 = vmatpush.msrb.mxu1 %v2411_v24  ;;  %v3603_v24 = vld [vmem:[#allocation26_spill] sm:$0xff] }
 0x120   :  { %944 = vmatpush.msrb.mxu2 %v2581_v4  ;;  %964 = vmatpush.msrb.mxu3 %v2416_v26  ;;  %v3605_v26 = vld [vmem:[#allocation24_spill] sm:$0xff] }
 0x121   :  { %905 = vmatpush.msrb.mxu0 %v2398_v16  ;;  %925 = vmatpush.msrb.mxu1 %v2422_v27  ;;  %v3601_v16 = vld [vmem:[#allocation22_spill] sm:$0xff]  ;;  %v3606_v27 = vld [vmem:[#allocation39_spill] sm:$0xff] }
 0x122   :  { %945 = vmatpush.msrb.mxu2 %v2587_v5  ;;  %965 = vmatpush.msrb.mxu3 %v2429_v29  ;;  %v3608_v29 = vld [vmem:[#allocation23_spill] sm:$0xff] }
 0x123   :  { %906 = vmatpush.msrb.mxu0 %v2401_v19  ;;  %926 = vmatpush.msrb.mxu1 %v2433_v30  ;;  %v3602_v19 = vld [vmem:[#allocation38_spill] sm:$0xff]  ;;  %v3609_v30 = vld [vmem:[#allocation27_spill] sm:$0xff] }
 0x124   :  { %946 = vmatpush.msrb.mxu2 %v2596_v10  ;;  %966 = vmatpush.msrb.mxu3 %v2438_v32  ;;  %v3611_v32 = vld [vmem:[#allocation34_spill] sm:$0xff] }
 0x125   :  { %907 = vmatpush.msrb.mxu0 %v2414_v25  ;;  %927 = vmatpush.msrb.mxu1 %v2443_v33  ;;  %v3604_v25 = vld [vmem:[#allocation21_spill] sm:$0xff] }
 0x126   :  { %947 = vmatpush.msrb.mxu2 %v2602_v11  ;;  %967 = vmatpush.msrb.mxu3 %v2458_v38  ;;  %v3612_v33 = vld [vmem:[#allocation25_spill] sm:$0xff]  ;;  %v3615_v38 = vld [vmem:[#allocation35_spill] sm:$0xff] }
 0x127   :  { %908 = vmatpush.msrb.mxu0 %v2426_v28  ;;  %928 = vmatpush.msrb.mxu1 %v2453_v36  ;;  %v3607_v28 = vld [vmem:[#allocation30_spill] sm:$0xff]  ;;  %v3613_v36 = vld [vmem:[#allocation29_spill] sm:$0xff] }
 0x128   :  { %948 = vmatpush.msrb.mxu2 %v2613_v12  ;;  %968 = vmatpush.msrb.mxu3 %v2472_v41  ;;  %v3618_v41 = vld [vmem:[#allocation42_spill] sm:$0xff] }
 0x129   :  { %909 = vmatpush.msrb.mxu0 %v2435_v31  ;;  %929 = vmatpush.msrb.mxu1 %v2465_v39  ;;  %v3610_v31 = vld [vmem:[#allocation40_spill] sm:$0xff] }
 0x12a   :  { %949 = vmatpush.msrb.mxu2 %v2623_v17  ;;  %969 = vmatpush.msrb.mxu3 %v2481_v44  ;;  %v3616_v39 = vld [vmem:[#allocation28_spill] sm:$0xff]  ;;  %v3621_v44 = vld [vmem:[#allocation33_spill] sm:$0xff] }
 0x12b   :  { %910 = vmatpush.msrb.mxu0 %v2455_v37  ;;  %930 = vmatpush.msrb.mxu1 %v2476_v42  ;;  %v3614_v37 = vld [vmem:[#allocation41_spill] sm:$0xff]  ;;  %v3619_v42 = vld [vmem:[#allocation36_spill] sm:$0xff] }
 0x12c   :  { %950 = vmatpush.msrb.mxu2 %v2628_v18  ;;  %970 = vmatpush.msrb.mxu3 %v2495_v47  ;;  %v3623_v47 = vld [vmem:[#allocation37_spill] sm:$0xff] }
 0x12d   :  { %911 = vmatpush.msrb.mxu0 %v2469_v40  ;;  %931 = vmatpush.msrb.mxu1 %v2487_v45  ;;  %v3617_v40 = vld [vmem:[#allocation31_spill] sm:$0xff] }
 0x12e   :  { %951 = vmatpush.msrb.mxu2 %v2634_v20  ;;  %971 = vmatpush.msrb.mxu3 %v2507_v50  ;;  %v3622_v45 = vld [vmem:[#allocation43_spill] sm:$0xff] }
 0x12f   :  { %912 = vmatpush.msrb.mxu0 %v2478_v43  ;;  %932 = vmatpush.msrb.mxu1 %v2500_v49  ;;  %v3620_v43 = vld [vmem:[#allocation32_spill] sm:$0xff] }
 0x130   :  { %952 = vmatpush.msrb.mxu2 %v2644_v21  ;;  %972 = vmatpush.msrb.mxu3 %v2518_v53 }
 0x131   :  { %913 = vmatpush.msrb.mxu0 %v2497_v48  ;;  %933 = vmatpush.msrb.mxu1 %v2514_v52  ;;  %v249_v48 = vpop.f32.mrf.mxu0 }
 0x132   :  { %953 = vmatpush.msrb.mxu2 %v2650_v23  ;;  %973 = vmatpush.msrb.mxu3 %v2529_v56 }
 0x133   :  { %914 = vmatpush.msrb.mxu0 %v2511_v51  ;;  %934 = vmatpush.msrb.mxu1 %v3601_v16  ;;  %v3625_v51 = vld [vmem:[#allocation66_spill] sm:$0xff] }
 0x134   :  { %954 = vmatpush.msrb.mxu2 %v3602_v19  ;;  %974 = vmatpush.msrb.mxu3 %v3603_v24  ;;  %v250_v52 = vadd.f32 %v249_v48, %v3625_v51 }
 0x135   :  { %915 = vmatpush.msrb.mxu0 %v3604_v25  ;;  %935 = vmatpush.msrb.mxu1 %v3605_v26 }
 0x136   :  { %955 = vmatpush.msrb.mxu2 %v3606_v27  ;;  %975 = vmatpush.msrb.mxu3 %v3607_v28 }
 0x137   :  { %916 = vmatpush.msrb.mxu0 %v3608_v29  ;;  %936 = vmatpush.msrb.mxu1 %v3609_v30 }
 0x138   :  { %956 = vmatpush.msrb.mxu2 %v3610_v31  ;;  %976 = vmatpush.msrb.mxu3 %v3611_v32 }
 0x139   :  { %917 = vmatpush.msrb.mxu0 %v3612_v33  ;;  %937 = vmatpush.msrb.mxu1 %v3613_v36  ;;  %v2929_v49 = vpop.f32.mrf.mxu0 }
 0x13a   :  { %957 = vmatpush.msrb.mxu2 %v3614_v37  ;;  %977 = vmatpush.msrb.mxu3 %v3615_v38 }
 0x13b   :  { %918 = vmatpush.msrb.mxu0 %v3616_v39  ;;  %938 = vmatpush.msrb.mxu1 %v3617_v40 }
 0x13c   :  { %958 = vmatpush.msrb.mxu2 %v3618_v41  ;;  %978 = vmatpush.msrb.mxu3 %v3619_v42 }
 0x13d   :  { %919 = vmatpush.msrb.mxu0 %v3620_v43  ;;  %939 = vmatpush.msrb.mxu1 %v3621_v44 }
 0x13e   :  { %959 = vmatpush.msrb.mxu2 %v3622_v45  ;;  %979 = vmatpush.msrb.mxu3 %v3623_v47 }
 0x141   :  { %v2931_v50 = vpop.f32.mrf.mxu0 }
 0x142   :  { %3624 = vst [vmem:[#allocation20_spill] sm:$0xff] %v2931_v50 }
 0x19a   :  { %v605_v53 = vpop.f32.mrf.mxu0  ;;  %v625_v56 = vpop.f32.mrf.mxu1 }
 0x19b   :  { %v668_v13 = vadd.f32 %v605_v53, %v250_v52  ;;  %v669_v35 = vadd.f32 %v625_v56, %v3626_v60 }
 0x19d   :  { %v1900_v14 = vmul.f32 -1.442695, %v668_v13  ;;  %v1901_v34 = vmul.f32 -1.442695, %v669_v35 }
 0x19f   :  { %1957 = vpow2.f32 %v1900_v14 }
 0x1a0   :  { %1959 = vpow2.f32 %v1901_v34 }
 0x1a1   :  { %v665_v8 = vpop.f32.mrf.mxu3  ;;  %v645_v2 = vpop.f32.mrf.mxu2 }
 0x1a2   :  { %v671_v59 = vadd.f32 %v665_v8, %v3627_v58  ;;  %v670_v63 = vadd.f32 %v645_v2, %v3628_v15  ;;  %v2957_v15 = vld [vmem:[#allocation11 + $0x1c0] sm:$0xff] }
 0x1a4   :  { %v1902_v6 = vmul.f32 -1.442695, %v671_v59 }
 0x1a5   :  { %v1958_v9 = vpop.eup %1957 }
 0x1a6   :  { %v1960_v46 = vpop.eup %1959  ;;  %v675_v0 = vadd.f32 1.0, %v1958_v9  ;;  %1961 = vpow2.f32 %v1902_v6 }
 0x1a7   :  { %v694_v22 = vadd.f32 1.0, %v1960_v46 }
 0x1a8   :  { %1963 = vrcp.f32 %v675_v0  ;;  %v687_v25 = vand.u32 2147483648, %v675_v0  ;;  %v685_v29 = vand.u32 2147483647, %v675_v0  ;;  %vm681_vm15 = vweird.f32 %v675_v0 }
 0x1a9   :  { %1965 = vrcp.f32 %v694_v22  ;;  %v706_v26 = vand.u32 2147483648, %v694_v22  ;;  %v704_v33 = vand.u32 2147483647, %v694_v22  ;;  %vm700_vm0 = vweird.f32 %v694_v22 }
 0x1aa   :  { %v688_v40 = vor.u32 1.1754944e-38, %v687_v25  ;;  %vm686_vm3 = vcmp.eq.f32.partialorder %v685_v29, 8.507059e+37  ;;  %v2987_v25 = vld [vmem:[#allocation11 + $0x160] sm:$0xff]  ;;  %v3004_v29 = vld [vmem:[#allocation11 + $0x158] sm:$0xff] }
 0x1ab   :  { %v707_v48 = vor.u32 1.1754944e-38, %v706_v26  ;;  %vm705_vm4 = vcmp.eq.f32.partialorder %v704_v33, 8.507059e+37  ;;  %v2994_v26 = vld [vmem:[#allocation11 + $0x178] sm:$0xff] }
 0x1ac   :  { %v1962_v57 = vpop.eup %1961  ;;  %v3014_v33 = vld [vmem:[#allocation11 + $0x138] sm:$0xff] }
 0x1ad   :  { %v714_v61 = vadd.f32 1.0, %v1962_v57 }
 0x1ae   :  { %v1964_v54 = vpop.eup %1963 }
 0x1af   :  { %v1966_v1 = vpop.eup %1965  ;;  %v677_v62 = vmul.f32 %v1964_v54, %v675_v0  ;;  %1967 = vrcp.f32 %v714_v61  ;;  %vm682_vm13 = vweird.f32 %v1964_v54  ;;  %v726_v6 = vand.u32 2147483648, %v714_v61 }
 0x1b0   :  { %v696_v7 = vmul.f32 %v1966_v1, %v694_v22  ;;  %1969 = vtanh.f32 %v670_v63  ;;  %vm701_vm14 = vweird.f32 %v1966_v1  ;;  %vm683_vm1 = vmor %vm681_vm15, %vm682_vm13  ;;  %vm720_vm6 = vweird.f32 %v714_v61  ;;  %v2960_v63 = vld [vmem:[#allocation11 + $0x1c8] sm:$0xff] }
 0x1b1   :  { %v678_v16 = vsub.f32 1.0, %v677_v62  ;;  %vm702_vm2 = vmor %vm700_vm0, %vm701_vm14  ;;  %v724_v9 = vand.u32 2147483647, %v714_v61  ;;  %v727_v0 = vor.u32 1.1754944e-38, %v726_v6  ;;  %v2967_v62 = vld [vmem:[#allocation11 + $0x1a0] sm:$0xff] }
 0x1b2   :  { %v697_v24 = vsub.f32 1.0, %v696_v7  ;;  %v2974_v7 = vld [vmem:[#allocation11 + $0x1b8] sm:$0xff] }
 0x1b3   :  { %v679_v28 = vmul.f32 %v1964_v54, %v678_v16  ;;  %vm725_vm8 = vcmp.eq.f32.partialorder %v724_v9, 8.507059e+37  ;;  %v2977_v16 = vld [vmem:[#allocation11 + $0x180] sm:$0xff] }
 0x1b4   :  { %v698_v30 = vmul.f32 %v1966_v1, %v697_v24  ;;  %v2984_v24 = vld [vmem:[#allocation11 + $0x198] sm:$0xff] }
 0x1b5   :  { %v1968_v36 = vpop.eup %1967  ;;  %v680_v39 = vadd.f32 %v1964_v54, %v679_v28  ;;  %v2997_v28 = vld [vmem:[#allocation11 + $0x140] sm:$0xff] }
 0x1b6   :  { %v699_v43 = vadd.f32 %v1966_v1, %v698_v30  ;;  %v716_v44 = vmul.f32 %v1968_v36, %v714_v61  ;;  %v1970_v53 = vpop.eup %1969  ;;  %vm721_vm5 = vweird.f32 %v1968_v36  ;;  %v2950_v61 = vld [vmem:[#allocation11 + $0x1e8] sm:$0xff]  ;;  %v3007_v30 = vld [vmem:[#allocation11 + $0x120] sm:$0xff] }
 0x1b7   :  { %v684_v52 = vsel %vm683_vm1, %v1964_v54, %v680_v39  ;;  %vm722_vm7 = vmor %vm720_vm6, %vm721_vm5  ;;  %v2954_v54 = vld [vmem:[#allocation11 + $0x1f8] sm:$0xff] }
 0x1b8   :  { %v689_v56 = vsel %vm686_vm3, %v688_v40, %v684_v52  ;;  %v703_v13 = vsel %vm702_vm2, %v1966_v1, %v699_v43  ;;  %v717_v60 = vsub.f32 1.0, %v716_v44  ;;  %v2964_v1 = vld [vmem:[#allocation11 + $0x1d8] sm:$0xff]  ;;  %v3027_v40 = vld [vmem:[#allocation11 + $0xe0] sm:$0xff] }
 0x1b9   :  { %v708_v35 = vsel %vm705_vm4, %v707_v48, %v703_v13  ;;  %v731_v14 = vmul.f32 %v1970_v53, %v689_v56  ;;  %v3024_v39 = vld [vmem:[#allocation11 + $0x118] sm:$0xff]  ;;  %v3037_v44 = vld [vmem:[#allocation11 + $0xc0] sm:$0xff] }
 0x1ba   :  { %v730_v34 = vmul.f32 %v708_v35, %v2856_v55  ;;  %v718_v8 = vmul.f32 %v1968_v36, %v717_v60  ;;  %v2947_v55 = vld [vmem:[#allocation11 + $0x1e0] sm:$0xff]  ;;  %v3034_v43 = vld [vmem:[#allocation11 + $0xf8] sm:$0xff] }
 0x1bb   :  { %v3044_v48 = vld [vmem:[#allocation11 + $0xd8] sm:$0xff]  ;;  %v3047_v52 = vld [vmem:[#allocation11 + $0xa0] sm:$0xff] }
 0x1bc   :  { %v2938_v58 = vadd.f32 %v731_v14, %v730_v34  ;;  %v719_v59 = vadd.f32 %v1968_v36, %v718_v8  ;;  %3630 = vst [vmem:[#allocation38_spill] sm:$0xff] %v3044_v48  ;;  %v3054_v53 = vld [vmem:[#allocation11 + $0xb8] sm:$0xff]  ;;  %v3057_v56 = vld [vmem:[#allocation11 + $0x80] sm:$0xff]  ;;  %v3086_v34 = vld [vmem:[#allocation11 + $0x28] sm:$0xff] }
 0x1bd   :  { %3631 = vst [vmem:[#allocation26_spill] sm:$0xff] %v3047_v52  ;;  %v3064_v13 = vld [vmem:[#allocation11 + $0x98] sm:$0xff]  ;;  %v3067_v60 = vld [vmem:[#allocation11 + $0x60] sm:$0xff] }
 0x1be   :  { %1971 = vtanh.f32 %v2938_v58  ;;  %v723_v46 = vsel %vm722_vm7, %v1968_v36, %v719_v59  ;;  %v3017_v36 = vld [vmem:[#allocation11 + $0x100] sm:$0xff]  ;;  %3633 = vst [vmem:[#allocation24_spill] sm:$0xff] %v3054_v53 }
 0x1bf   :  { %v728_v2 = vsel %vm725_vm8, %v727_v0, %v723_v46  ;;  %3634 = vst [vmem:[#allocation39_spill] sm:$0xff] %v3057_v56  ;;  %v3075_v35 = vld [vmem:[#allocation11 + $0x40] sm:$0xff]  ;;  %v3646_v0 = vld [vmem:[#allocation57_spill] sm:$0xff] }
 0x1c0   :  { %3636 = vst [vmem:[#allocation23_spill] sm:$0xff] %v3064_v13  ;;  %v3083_v14 = vld [vmem:[#allocation11 + $0x20] sm:$0xff] }
 0x1c1   :  { %3637 = vst [vmem:[#allocation27_spill] sm:$0xff] %v3067_v60  ;;  %v3645_v59 = vld [vmem:[#allocation51_spill] sm:$0xff] }
 0x1c2   :  { %3639 = vst [vmem:[#allocation34_spill] sm:$0xff] %v3075_v35 }
 0x1c3   :  { %3641 = vst [vmem:[#allocation29_spill] sm:$0xff] %v3083_v14 }
 0x1c4   :  { %v1972_v22 = vpop.eup %1971  ;;  %3642 = vst [vmem:[#allocation41_spill] sm:$0xff] %v3086_v34 }
 0x1c5   :  { %v2941_v57 = vmul.f32 %v1972_v22, %v728_v2 }
 0x1c7   :  { %3629 = vst [vmem:[#allocation22_spill] sm:$0xff] %v2941_v57  ;;  %762 = vmatmul.f32.vlgmr.msra.gmra.mxu0 %v2941_v57  ;;  %782 = vmatmul.f32.vlgmr.msra.gmra.mxu1 %v2941_v57 }
 0x1c8   :  { %802 = vmatmul.f32.vlgmr.msra.gmra.mxu2 %v2941_v57  ;;  %822 = vmatmul.f32.vlgmr.msra.gmra.mxu3 %v2941_v57 }
 0x1c9   :  { %1062 = vmatpush.msra.mxu0 %v2947_v55  ;;  %1082 = vmatpush.msra.mxu1 %v2950_v61 }
 0x1ca   :  { %1102 = vmatpush.msra.mxu2 %v2581_v4  ;;  %1122 = vmatpush.msra.mxu3 %v2954_v54  ;;  %v2970_v4 = vld [vmem:[#allocation11 + $0x1a8] sm:$0xff] }
 0x1cb   :  { %1063 = vmatpush.msra.mxu0 %v2957_v15  ;;  %1083 = vmatpush.msra.mxu1 %v2960_v63 }
 0x1cc   :  { %1103 = vmatpush.msra.mxu2 %v2587_v5  ;;  %1123 = vmatpush.msra.mxu3 %v2964_v1  ;;  %v2980_v5 = vld [vmem:[#allocation11 + $0x188] sm:$0xff] }
 0x1cd   :  { %1064 = vmatpush.msra.mxu0 %v2967_v62  ;;  %1084 = vmatpush.msra.mxu1 %v2970_v4 }
 0x1ce   :  { %1104 = vmatpush.msra.mxu2 %v2596_v10  ;;  %1124 = vmatpush.msra.mxu3 %v2974_v7  ;;  %v2990_v10 = vld [vmem:[#allocation11 + $0x168] sm:$0xff] }
 0x1cf   :  { %1065 = vmatpush.msra.mxu0 %v2977_v16  ;;  %1085 = vmatpush.msra.mxu1 %v2980_v5 }
 0x1d0   :  { %1105 = vmatpush.msra.mxu2 %v2602_v11  ;;  %1125 = vmatpush.msra.mxu3 %v2984_v24  ;;  %v3000_v11 = vld [vmem:[#allocation11 + $0x148] sm:$0xff] }
 0x1d1   :  { %1066 = vmatpush.msra.mxu0 %v2987_v25  ;;  %1086 = vmatpush.msra.mxu1 %v2990_v10 }
 0x1d2   :  { %1106 = vmatpush.msra.mxu2 %v2613_v12  ;;  %1126 = vmatpush.msra.mxu3 %v2994_v26  ;;  %v3010_v12 = vld [vmem:[#allocation11 + $0x128] sm:$0xff] }
 0x1d3   :  { %1067 = vmatpush.msra.mxu0 %v2997_v28  ;;  %1087 = vmatpush.msra.mxu1 %v3000_v11 }
 0x1d4   :  { %1107 = vmatpush.msra.mxu2 %v2623_v17  ;;  %1127 = vmatpush.msra.mxu3 %v3004_v29  ;;  %v3020_v17 = vld [vmem:[#allocation11 + $0x108] sm:$0xff] }
 0x1d5   :  { %1068 = vmatpush.msra.mxu0 %v3007_v30  ;;  %1088 = vmatpush.msra.mxu1 %v3010_v12 }
 0x1d6   :  { %1108 = vmatpush.msra.mxu2 %v2628_v18  ;;  %1128 = vmatpush.msra.mxu3 %v3014_v33  ;;  %v3030_v18 = vld [vmem:[#allocation11 + $0xe8] sm:$0xff] }
 0x1d7   :  { %1069 = vmatpush.msra.mxu0 %v3017_v36  ;;  %1089 = vmatpush.msra.mxu1 %v3020_v17 }
 0x1d8   :  { %1109 = vmatpush.msra.mxu2 %v2634_v20  ;;  %1129 = vmatpush.msra.mxu3 %v3024_v39  ;;  %v3040_v20 = vld [vmem:[#allocation11 + $0xc8] sm:$0xff] }
 0x1d9   :  { %1070 = vmatpush.msra.mxu0 %v3027_v40  ;;  %1090 = vmatpush.msra.mxu1 %v3030_v18 }
 0x1da   :  { %1110 = vmatpush.msra.mxu2 %v2644_v21  ;;  %1130 = vmatpush.msra.mxu3 %v3034_v43  ;;  %v3050_v21 = vld [vmem:[#allocation11 + $0xa8] sm:$0xff] }
 0x1db   :  { %1071 = vmatpush.msra.mxu0 %v3037_v44  ;;  %1091 = vmatpush.msra.mxu1 %v3040_v20  ;;  %3632 = vst [vmem:[#allocation21_spill] sm:$0xff] %v3050_v21 }
 0x1dc   :  { %1111 = vmatpush.msra.mxu2 %v2650_v23  ;;  %1131 = vmatpush.msra.mxu3 %v3044_v48  ;;  %v3060_v23 = vld [vmem:[#allocation11 + $0x88] sm:$0xff] }
 0x1dd   :  { %1072 = vmatpush.msra.mxu0 %v3047_v52  ;;  %1092 = vmatpush.msra.mxu1 %v3050_v21  ;;  %3635 = vst [vmem:[#allocation30_spill] sm:$0xff] %v3060_v23 }
 0x1de   :  { %1112 = vmatpush.msra.mxu2 %v3602_v19  ;;  %1132 = vmatpush.msra.mxu3 %v3054_v53  ;;  %v3070_v19 = vld [vmem:[#allocation11 + $0x68] sm:$0xff] }
 0x1df   :  { %1073 = vmatpush.msra.mxu0 %v3057_v56  ;;  %1093 = vmatpush.msra.mxu1 %v3060_v23  ;;  %3638 = vst [vmem:[#allocation40_spill] sm:$0xff] %v3070_v19 }
 0x1e0   :  { %1113 = vmatpush.msra.mxu2 %v3606_v27  ;;  %1133 = vmatpush.msra.mxu3 %v3064_v13  ;;  %v3078_v27 = vld [vmem:[#allocation11 + $0x48] sm:$0xff] }
 0x1e1   :  { %1074 = vmatpush.msra.mxu0 %v3067_v60  ;;  %1094 = vmatpush.msra.mxu1 %v3070_v19  ;;  %3640 = vst [vmem:[#allocation25_spill] sm:$0xff] %v3078_v27 }
 0x1e2   :  { %1114 = vmatpush.msra.mxu2 %v3610_v31  ;;  %1134 = vmatpush.msra.mxu3 %v3611_v32  ;;  %v3091_v31 = vld [vmem:[#allocation11] sm:$0xff]  ;;  %v3094_v32 = vld [vmem:[#allocation11 + $0x8] sm:$0xff] }
 0x1e3   :  { %1075 = vmatpush.msra.mxu0 %v3075_v35  ;;  %1095 = vmatpush.msra.mxu1 %v3078_v27  ;;  %3643 = vst [vmem:[#allocation35_spill] sm:$0xff] %v3091_v31 }
 0x1e4   :  { %1115 = vmatpush.msra.mxu2 %v3614_v37  ;;  %1135 = vmatpush.msra.mxu3 %v3615_v38  ;;  %3644 = vst [vmem:[#allocation28_spill] sm:$0xff] %v3094_v32  ;;  %v253_v37 = vadd.f32 %v2929_v49, %v3625_v51 }
 0x1e5   :  { %1076 = vmatpush.msra.mxu0 %v3083_v14  ;;  %1096 = vmatpush.msra.mxu1 %v3086_v34 }
 0x1e6   :  { %1116 = vmatpush.msra.mxu2 %v3618_v41  ;;  %1136 = vmatpush.msra.mxu3 %v3619_v42 }
 0x1e7   :  { %1077 = vmatpush.msra.mxu0 %v3091_v31  ;;  %1097 = vmatpush.msra.mxu1 %v3094_v32 }
 0x1e8   :  { %1117 = vmatpush.msra.mxu2 %v3622_v45  ;;  %1137 = vmatpush.msra.mxu3 %v3623_v47 }
 0x244   :  { %v763_v38 = vpop.f32.mrf.mxu0  ;;  %v783_v8 = vpop.f32.mrf.mxu1 }
 0x245   :  { %v826_v41 = vadd.f32 %v763_v38, %v253_v37  ;;  %v827_v42 = vadd.f32 %v783_v8, %v3645_v59  ;;  %v3647_v8 = vld [vmem:[#allocation50_spill] sm:$0xff] }
 0x247   :  { %v1903_v6 = vmul.f32 -1.442695, %v826_v41  ;;  %v1904_v9 = vmul.f32 -1.442695, %v827_v42 }
 0x249   :  { %1973 = vpow2.f32 %v1903_v6 }
 0x24a   :  { %1975 = vpow2.f32 %v1904_v9 }
 0x24b   :  { %v823_v46 = vpop.f32.mrf.mxu3  ;;  %v803_v49 = vpop.f32.mrf.mxu2 }
 0x24c   :  { %v829_v22 = vadd.f32 %v823_v46, %v3646_v0  ;;  %v828_v41 = vadd.f32 %v803_v49, %v3647_v8 }
 0x24e   :  { %v1905_v2 = vmul.f32 -1.442695, %v829_v22 }
 0x24f   :  { %v1974_v57 = vpop.eup %1973 }
 0x250   :  { %v1976_v45 = vpop.eup %1975  ;;  %v833_v3 = vadd.f32 1.0, %v1974_v57  ;;  %1977 = vpow2.f32 %v1905_v2 }
 0x251   :  { %v852_v47 = vadd.f32 1.0, %v1976_v45 }
 0x252   :  { %1979 = vrcp.f32 %v833_v3  ;;  %v845_v0 = vand.u32 2147483648, %v833_v3  ;;  %v843_v2 = vand.u32 2147483647, %v833_v3  ;;  %vm839_vm11 = vweird.f32 %v833_v3 }
 0x253   :  { %1981 = vrcp.f32 %v852_v47  ;;  %v864_v22 = vand.u32 2147483648, %v852_v47  ;;  %v862_v51 = vand.u32 2147483647, %v852_v47  ;;  %vm858_vm12 = vweird.f32 %v852_v47 }
 0x254   :  { %v846_v49 = vor.u32 1.1754944e-38, %v845_v0  ;;  %vm844_vm15 = vcmp.eq.f32.partialorder %v843_v2, 8.507059e+37 }
 0x255   :  { %vm863_vm0 = vcmp.eq.f32.partialorder %v862_v51, 8.507059e+37 }
 0x256   :  { %v1978_v50 = vpop.eup %1977 }
 0x257   :  { %v872_v37 = vadd.f32 1.0, %v1978_v50 }
 0x258   :  { %v1980_v38 = vpop.eup %1979 }
 0x259   :  { %v1982_v59 = vpop.eup %1981  ;;  %v835_v42 = vmul.f32 %v1980_v38, %v833_v3  ;;  %1983 = vrcp.f32 %v872_v37  ;;  %vm840_vm9 = vweird.f32 %v1980_v38  ;;  %v884_v0 = vand.u32 2147483648, %v872_v37 }
 0x25a   :  { %v854_v6 = vmul.f32 %v1982_v59, %v852_v47  ;;  %1985 = vtanh.f32 %v828_v41  ;;  %vm859_vm10 = vweird.f32 %v1982_v59  ;;  %vm841_vm13 = vmor %vm839_vm11, %vm840_vm9  ;;  %vm878_vm2 = vweird.f32 %v872_v37 }
 0x25b   :  { %v836_v9 = vsub.f32 1.0, %v835_v42  ;;  %vm860_vm14 = vmor %vm858_vm12, %vm859_vm10  ;;  %v865_v42 = vor.u32 1.1754944e-38, %v864_v22  ;;  %v885_v2 = vor.u32 1.1754944e-38, %v884_v0  ;;  %v3658_v0 = vld [vmem:[#allocation29_spill] sm:$0xff] }
 0x25c   :  { %v855_v46 = vsub.f32 1.0, %v854_v6 }
 0x25d   :  { %v837_v57 = vmul.f32 %v1980_v38, %v836_v9 }
 0x25e   :  { %v856_v45 = vmul.f32 %v1982_v59, %v855_v46 }
 0x25f   :  { %v1984_v32 = vpop.eup %1983  ;;  %v838_v50 = vadd.f32 %v1980_v38, %v837_v57 }
 0x260   :  { %v857_v8 = vadd.f32 %v1982_v59, %v856_v45  ;;  %v874_v31 = vmul.f32 %v1984_v32, %v872_v37  ;;  %v1986_v41 = vpop.eup %1985  ;;  %vm879_vm1 = vweird.f32 %v1984_v32  ;;  %v3158_v45 = vld [vmem:[#allocation11 + $0x110] sm:$0xff] }
 0x261   :  { %v842_v6 = vsel %vm841_vm13, %v1980_v38, %v838_v50  ;;  %v882_v38 = vand.u32 2147483647, %v872_v37  ;;  %vm880_vm3 = vmor %vm878_vm2, %vm879_vm1  ;;  %v3152_v37 = vld [vmem:[#allocation11 + $0x130] sm:$0xff] }
 0x262   :  { %v847_v34 = vsel %vm844_vm15, %v846_v49, %v842_v6  ;;  %v861_v9 = vsel %vm860_vm14, %v1982_v59, %v857_v8  ;;  %v875_v14 = vsub.f32 1.0, %v874_v31  ;;  %v3164_v50 = vld [vmem:[#allocation11 + $0xf0] sm:$0xff] }
 0x263   :  { %v866_v46 = vsel %vm863_vm0, %v865_v42, %v861_v9  ;;  %v889_v27 = vmul.f32 %v1986_v41, %v847_v34  ;;  %vm883_vm4 = vcmp.eq.f32.partialorder %v882_v38, 8.507059e+37  ;;  %v3140_v34 = vld [vmem:[#allocation11 + $0x170] sm:$0xff]  ;;  %v3191_v41 = vld [vmem:[#allocation11 + $0x78] sm:$0xff] }
 0x264   :  { %v888_v35 = vmul.f32 %v866_v46, %v2938_v58  ;;  %v876_v57 = vmul.f32 %v1984_v32, %v875_v14  ;;  %v3116_v58 = vld [vmem:[#allocation11 + $0x1f0] sm:$0xff]  ;;  %3653 = vst [vmem:[#allocation43_spill] sm:$0xff] %v3191_v41 }
 0x265   :  { %v3134_v14 = vld [vmem:[#allocation11 + $0x190] sm:$0xff] }
 0x266   :  { %v3105_v3 = vadd.f32 %v889_v27, %v888_v35  ;;  %v877_v47 = vadd.f32 %v1984_v32, %v876_v57  ;;  %v3122_v35 = vld [vmem:[#allocation11 + $0x1d0] sm:$0xff] }
 0x267   :  { %v3128_v27 = vld [vmem:[#allocation11 + $0x1b0] sm:$0xff] }
 0x268   :  { %1987 = vtanh.f32 %v3105_v3  ;;  %v881_v22 = vsel %vm880_vm3, %v1984_v32, %v877_v47  ;;  %v3146_v32 = vld [vmem:[#allocation11 + $0x150] sm:$0xff]  ;;  %v3199_v47 = vld [vmem:[#allocation11 + $0x58] sm:$0xff] }
 0x269   :  { %v886_v31 = vsel %vm883_vm4, %v885_v2, %v881_v22  ;;  %v3170_v49 = vld [vmem:[#allocation11 + $0xd0] sm:$0xff]  ;;  %3657 = vst [vmem:[#allocation48_spill] sm:$0xff] %v3199_v47  ;;  %v3207_v2 = vld [vmem:[#allocation11 + $0x38] sm:$0xff] }
 0x26a   :  { %3649 = vst [vmem:[#allocation42_spill] sm:$0xff] %v3170_v49  ;;  %v3176_v8 = vld [vmem:[#allocation11 + $0xb0] sm:$0xff] }
 0x26b   :  { %3650 = vst [vmem:[#allocation36_spill] sm:$0xff] %v3176_v8  ;;  %v3182_v42 = vld [vmem:[#allocation11 + $0x90] sm:$0xff] }
 0x26c   :  { %3651 = vst [vmem:[#allocation32_spill] sm:$0xff] %v3182_v42  ;;  %v3188_v6 = vld [vmem:[#allocation11 + $0x70] sm:$0xff] }
 0x26d   :  { %3652 = vst [vmem:[#allocation33_spill] sm:$0xff] %v3188_v6  ;;  %v3654_v9 = vld [vmem:[#allocation34_spill] sm:$0xff]  ;;  %v3655_v46 = vld [vmem:[#allocation25_spill] sm:$0xff] }
 0x26e   :  { %v1988_v51 = vpop.eup %1987  ;;  %v3196_v57 = vld [vmem:[#allocation11 + $0x50] sm:$0xff]  ;;  %3661 = vst [vmem:[#allocation47_spill] sm:$0xff] %v3207_v2 }
 0x26f   :  { %v3108_v59 = vmul.f32 %v1988_v51, %v886_v31  ;;  %3656 = vst [vmem:[#allocation37_spill] sm:$0xff] %v3196_v57  ;;  %v3659_v38 = vld [vmem:[#allocation41_spill] sm:$0xff]  ;;  %v3662_v51 = vld [vmem:[#allocation35_spill] sm:$0xff]  ;;  %v3663_v31 = vld [vmem:[#allocation28_spill] sm:$0xff] }
 0x270   :  { %v3204_v22 = vld [vmem:[#allocation11 + $0x30] sm:$0xff] }
 0x271   :  { %3648 = vst [vmem:[#allocation31_spill] sm:$0xff] %v3108_v59  ;;  %920 = vmatmul.f32.vlgmr.msrb.gmra.mxu0 %v3108_v59  ;;  %940 = vmatmul.f32.vlgmr.msrb.gmra.mxu1 %v3108_v59 }
 0x272   :  { %960 = vmatmul.f32.vlgmr.msrb.gmra.mxu2 %v3108_v59  ;;  %980 = vmatmul.f32.vlgmr.msrb.gmra.mxu3 %v3108_v59  ;;  %3660 = vst [vmem:[#allocation54_spill] sm:$0xff] %v3204_v22  ;;  %v3212_v59 = vld [vmem:[#allocation11 + $0x10] sm:$0xff] }
 0x273   :  { %1220 = vmatpush.msrb.mxu0 %v2947_v55  ;;  %1240 = vmatpush.msrb.mxu1 %v2950_v61  ;;  %3664 = vst [vmem:[#allocation51_spill] sm:$0xff] %v3212_v59 }
 0x274   :  { %1260 = vmatpush.msrb.mxu2 %v3116_v58  ;;  %1280 = vmatpush.msrb.mxu3 %v2954_v54 }
 0x275   :  { %1221 = vmatpush.msrb.mxu0 %v2957_v15  ;;  %1241 = vmatpush.msrb.mxu1 %v2960_v63 }
 0x276   :  { %1261 = vmatpush.msrb.mxu2 %v3122_v35  ;;  %1281 = vmatpush.msrb.mxu3 %v2964_v1 }
 0x277   :  { %1222 = vmatpush.msrb.mxu0 %v2967_v62  ;;  %1242 = vmatpush.msrb.mxu1 %v2970_v4 }
 0x278   :  { %1262 = vmatpush.msrb.mxu2 %v3128_v27  ;;  %1282 = vmatpush.msrb.mxu3 %v2974_v7 }
 0x279   :  { %1223 = vmatpush.msrb.mxu0 %v2977_v16  ;;  %1243 = vmatpush.msrb.mxu1 %v2980_v5 }
 0x27a   :  { %1263 = vmatpush.msrb.mxu2 %v3134_v14  ;;  %1283 = vmatpush.msrb.mxu3 %v2984_v24 }
 0x27b   :  { %1224 = vmatpush.msrb.mxu0 %v2987_v25  ;;  %1244 = vmatpush.msrb.mxu1 %v2990_v10 }
 0x27c   :  { %1264 = vmatpush.msrb.mxu2 %v3140_v34  ;;  %1284 = vmatpush.msrb.mxu3 %v2994_v26 }
 0x27d   :  { %1225 = vmatpush.msrb.mxu0 %v2997_v28  ;;  %1245 = vmatpush.msrb.mxu1 %v3000_v11 }
 0x27e   :  { %1265 = vmatpush.msrb.mxu2 %v3146_v32  ;;  %1285 = vmatpush.msrb.mxu3 %v3004_v29 }
 0x27f   :  { %1226 = vmatpush.msrb.mxu0 %v3007_v30  ;;  %1246 = vmatpush.msrb.mxu1 %v3010_v12 }
 0x280   :  { %1266 = vmatpush.msrb.mxu2 %v3152_v37  ;;  %1286 = vmatpush.msrb.mxu3 %v3014_v33 }
 0x281   :  { %1227 = vmatpush.msrb.mxu0 %v3017_v36  ;;  %1247 = vmatpush.msrb.mxu1 %v3020_v17 }
 0x282   :  { %1267 = vmatpush.msrb.mxu2 %v3158_v45  ;;  %1287 = vmatpush.msrb.mxu3 %v3024_v39 }
 0x283   :  { %1228 = vmatpush.msrb.mxu0 %v3027_v40  ;;  %1248 = vmatpush.msrb.mxu1 %v3030_v18 }
 0x284   :  { %1268 = vmatpush.msrb.mxu2 %v3164_v50  ;;  %1288 = vmatpush.msrb.mxu3 %v3034_v43 }
 0x285   :  { %1229 = vmatpush.msrb.mxu0 %v3037_v44  ;;  %1249 = vmatpush.msrb.mxu1 %v3040_v20 }
 0x286   :  { %1269 = vmatpush.msrb.mxu2 %v3170_v49  ;;  %1289 = vmatpush.msrb.mxu3 %v3044_v48 }
 0x287   :  { %1230 = vmatpush.msrb.mxu0 %v3047_v52  ;;  %1250 = vmatpush.msrb.mxu1 %v3050_v21 }
 0x288   :  { %1270 = vmatpush.msrb.mxu2 %v3176_v8  ;;  %1290 = vmatpush.msrb.mxu3 %v3054_v53 }
 0x289   :  { %1231 = vmatpush.msrb.mxu0 %v3057_v56  ;;  %1251 = vmatpush.msrb.mxu1 %v3060_v23 }
 0x28a   :  { %1271 = vmatpush.msrb.mxu2 %v3182_v42  ;;  %1291 = vmatpush.msrb.mxu3 %v3064_v13 }
 0x28b   :  { %1232 = vmatpush.msrb.mxu0 %v3067_v60  ;;  %1252 = vmatpush.msrb.mxu1 %v3070_v19  ;;  %v3669_v19 = vld [vmem:[#allocation60_spill] sm:$0xff] }
 0x28c   :  { %1272 = vmatpush.msrb.mxu2 %v3188_v6  ;;  %1292 = vmatpush.msrb.mxu3 %v3191_v41  ;;  %v3668_v41 = vld [vmem:[#allocation53_spill] sm:$0xff] }
 0x28d   :  { %1233 = vmatpush.msrb.mxu0 %v3654_v9  ;;  %1253 = vmatpush.msrb.mxu1 %v3655_v46 }
 0x28e   :  { %1273 = vmatpush.msrb.mxu2 %v3196_v57  ;;  %1293 = vmatpush.msrb.mxu3 %v3199_v47  ;;  %v3215_v47 = vld [vmem:[#allocation11 + $0x18] sm:$0xff] }
 0x28f   :  { %1234 = vmatpush.msrb.mxu0 %v3658_v0  ;;  %1254 = vmatpush.msrb.mxu1 %v3659_v38  ;;  %3665 = vst [vmem:[#allocation57_spill] sm:$0xff] %v3215_v47  ;;  %v3666_v38 = vld [vmem:[#allocation66_spill] sm:$0xff]  ;;  %v3667_v0 = vld [vmem:[#allocation20_spill] sm:$0xff] }
 0x290   :  { %1274 = vmatpush.msrb.mxu2 %v3204_v22  ;;  %1294 = vmatpush.msrb.mxu3 %v3207_v2  ;;  %v256_v57 = vadd.f32 %v3667_v0, %v3666_v38 }
 0x291   :  { %1235 = vmatpush.msrb.mxu0 %v3662_v51  ;;  %1255 = vmatpush.msrb.mxu1 %v3663_v31 }
 0x292   :  { %1275 = vmatpush.msrb.mxu2 %v3212_v59  ;;  %1295 = vmatpush.msrb.mxu3 %v3215_v47 }
 0x2ee   :  { %v921_v22 = vpop.f32.mrf.mxu0  ;;  %v941_v46 = vpop.f32.mrf.mxu1 }
 0x2ef   :  { %v984_v9 = vadd.f32 %v921_v22, %v256_v57  ;;  %v985_v2 = vadd.f32 %v941_v46, %v3668_v41  ;;  %v3670_v41 = vld [vmem:[#allocation52_spill] sm:$0xff] }
 0x2f1   :  { %v1906_v6 = vmul.f32 -1.442695, %v984_v9  ;;  %v1907_v51 = vmul.f32 -1.442695, %v985_v2 }
 0x2f3   :  { %1989 = vpow2.f32 %v1906_v6 }
 0x2f4   :  { %1991 = vpow2.f32 %v1907_v51 }
 0x2f5   :  { %v981_v31 = vpop.f32.mrf.mxu3  ;;  %v961_v0 = vpop.f32.mrf.mxu2 }
 0x2f6   :  { %v987_v60 = vadd.f32 %v981_v31, %v3669_v19  ;;  %v986_v9 = vadd.f32 %v961_v0, %v3670_v41 }
 0x2f8   :  { %v1908_v59 = vmul.f32 -1.442695, %v987_v60 }
 0x2f9   :  { %v1990_v13 = vpop.eup %1989 }
 0x2fa   :  { %v1992_v42 = vpop.eup %1991  ;;  %v991_v23 = vadd.f32 1.0, %v1990_v13  ;;  %1993 = vpow2.f32 %v1908_v59 }
 0x2fb   :  { %v1010_v47 = vadd.f32 1.0, %v1992_v42 }
 0x2fc   :  { %1995 = vrcp.f32 %v991_v23  ;;  %v1003_v60 = vand.u32 2147483648, %v991_v23  ;;  %v1001_v59 = vand.u32 2147483647, %v991_v23  ;;  %vm997_vm7 = vweird.f32 %v991_v23 }
 0x2fd   :  { %1997 = vrcp.f32 %v1010_v47  ;;  %v1022_v31 = vand.u32 2147483648, %v1010_v47  ;;  %v1020_v56 = vand.u32 2147483647, %v1010_v47  ;;  %vm1016_vm8 = vweird.f32 %v1010_v47 }
 0x2fe   :  { %v1004_v0 = vor.u32 1.1754944e-38, %v1003_v60  ;;  %vm1002_vm11 = vcmp.eq.f32.partialorder %v1001_v59, 8.507059e+37 }
 0x2ff   :  { %vm1021_vm12 = vcmp.eq.f32.partialorder %v1020_v56, 8.507059e+37 }
 0x300   :  { %v1994_v38 = vpop.eup %1993 }
 0x301   :  { %v1030_v57 = vadd.f32 1.0, %v1994_v38 }
 0x302   :  { %v1996_v22 = vpop.eup %1995 }
 0x303   :  { %v1998_v46 = vpop.eup %1997  ;;  %v993_v6 = vmul.f32 %v1996_v22, %v991_v23  ;;  %1999 = vrcp.f32 %v1030_v57  ;;  %vm998_vm5 = vweird.f32 %v1996_v22  ;;  %v1042_v60 = vand.u32 2147483648, %v1030_v57 }
 0x304   :  { %v1012_v2 = vmul.f32 %v1998_v46, %v1010_v47  ;;  %2001 = vtanh.f32 %v986_v9  ;;  %vm1017_vm6 = vweird.f32 %v1998_v46  ;;  %vm999_vm9 = vmor %vm997_vm7, %vm998_vm5  ;;  %vm1036_vm14 = vweird.f32 %v1030_v57 }
 0x305   :  { %v994_v51 = vsub.f32 1.0, %v993_v6  ;;  %vm1018_vm10 = vmor %vm1016_vm8, %vm1017_vm6  ;;  %v1023_v6 = vor.u32 1.1754944e-38, %v1022_v31  ;;  %v1043_v59 = vor.u32 1.1754944e-38, %v1042_v60  ;;  %v3690_v60 = vld [vmem:[#allocation29_spill] sm:$0xff] }
 0x306   :  { %v1013_v19 = vsub.f32 1.0, %v1012_v2 }
 0x307   :  { %v995_v13 = vmul.f32 %v1996_v22, %v994_v51 }
 0x308   :  { %v1014_v42 = vmul.f32 %v1998_v46, %v1013_v19 }
 0x309   :  { %v2000_v53 = vpop.eup %1999  ;;  %v996_v38 = vadd.f32 %v1996_v22, %v995_v13 }
 0x30a   :  { %v1015_v41 = vadd.f32 %v1998_v46, %v1014_v42  ;;  %v1032_v8 = vmul.f32 %v2000_v53, %v1030_v57  ;;  %v2002_v9 = vpop.eup %2001  ;;  %vm1037_vm13 = vweird.f32 %v2000_v53  ;;  %v3679_v42 = vld [vmem:[#allocation30_spill] sm:$0xff] }
 0x30b   :  { %v1000_v2 = vsel %vm999_vm9, %v1996_v22, %v996_v38  ;;  %v1040_v22 = vand.u32 2147483647, %v1030_v57  ;;  %vm1038_vm15 = vmor %vm1036_vm14, %vm1037_vm13  ;;  %v3678_v57 = vld [vmem:[#allocation39_spill] sm:$0xff]  ;;  %v3680_v38 = vld [vmem:[#allocation32_spill] sm:$0xff] }
 0x30c   :  { %v1005_v21 = vsel %vm1002_vm11, %v1004_v0, %v1000_v2  ;;  %v1019_v51 = vsel %vm1018_vm10, %v1998_v46, %v1015_v41  ;;  %v1033_v52 = vsub.f32 1.0, %v1032_v8  ;;  %v3681_v0 = vld [vmem:[#allocation23_spill] sm:$0xff]  ;;  %v3684_v2 = vld [vmem:[#allocation33_spill] sm:$0xff] }
 0x30d   :  { %v1024_v19 = vsel %vm1021_vm12, %v1023_v6, %v1019_v51  ;;  %v1047_v48 = vmul.f32 %v2002_v9, %v1005_v21  ;;  %vm1041_vm0 = vcmp.eq.f32.partialorder %v1040_v22, 8.507059e+37  ;;  %v3674_v21 = vld [vmem:[#allocation26_spill] sm:$0xff]  ;;  %v3682_v41 = vld [vmem:[#allocation27_spill] sm:$0xff]  ;;  %v3683_v6 = vld [vmem:[#allocation40_spill] sm:$0xff] }
 0x30e   :  { %v1046_v49 = vmul.f32 %v1024_v19, %v3105_v3  ;;  %v1034_v13 = vmul.f32 %v2000_v53, %v1033_v52  ;;  %v3673_v52 = vld [vmem:[#allocation38_spill] sm:$0xff]  ;;  %v3676_v3 = vld [vmem:[#allocation36_spill] sm:$0xff]  ;;  %v3685_v9 = vld [vmem:[#allocation43_spill] sm:$0xff] }
 0x30f   :  { %v3686_v51 = vld [vmem:[#allocation34_spill] sm:$0xff]  ;;  %v3687_v19 = vld [vmem:[#allocation25_spill] sm:$0xff] }
 0x310   :  { %v3224_v23 = vadd.f32 %v1047_v48, %v1046_v49  ;;  %v1035_v47 = vadd.f32 %v2000_v53, %v1034_v13  ;;  %v3672_v48 = vld [vmem:[#allocation42_spill] sm:$0xff]  ;;  %v3677_v49 = vld [vmem:[#allocation24_spill] sm:$0xff]  ;;  %v3688_v13 = vld [vmem:[#allocation37_spill] sm:$0xff] }
 0x311   :  { %v3691_v22 = vld [vmem:[#allocation41_spill] sm:$0xff] }
 0x312   :  { %2003 = vtanh.f32 %v3224_v23  ;;  %v1039_v31 = vsel %vm1038_vm15, %v2000_v53, %v1035_v47  ;;  %v3675_v53 = vld [vmem:[#allocation21_spill] sm:$0xff]  ;;  %v3689_v47 = vld [vmem:[#allocation48_spill] sm:$0xff] }
 0x313   :  { %v1044_v8 = vsel %vm1041_vm0, %v1043_v59, %v1039_v31  ;;  %v3692_v31 = vld [vmem:[#allocation54_spill] sm:$0xff]  ;;  %v3693_v59 = vld [vmem:[#allocation47_spill] sm:$0xff] }
 0x318   :  { %v2004_v56 = vpop.eup %2003 }
 0x319   :  { %v3227_v46 = vmul.f32 %v2004_v56, %v1044_v8  ;;  %v3694_v56 = vld [vmem:[#allocation35_spill] sm:$0xff]  ;;  %v3695_v8 = vld [vmem:[#allocation28_spill] sm:$0xff] }
 0x31b   :  { %3671 = vst [vmem:[#allocation50_spill] sm:$0xff] %v3227_v46  ;;  %1078 = vmatmul.f32.vlgmr.msra.gmra.mxu0 %v3227_v46  ;;  %1098 = vmatmul.f32.vlgmr.msra.gmra.mxu1 %v3227_v46 }
 0x31c   :  { %1118 = vmatmul.f32.vlgmr.msra.gmra.mxu2 %v3227_v46  ;;  %1138 = vmatmul.f32.vlgmr.msra.gmra.mxu3 %v3227_v46  ;;  %v3696_v46 = vld [vmem:[#allocation51_spill] sm:$0xff] }
 0x31d   :  { %1378 = vmatpush.msra.mxu0 %v2947_v55  ;;  %1398 = vmatpush.msra.mxu1 %v2950_v61 }
 0x31e   :  { %1418 = vmatpush.msra.mxu2 %v3116_v58  ;;  %1438 = vmatpush.msra.mxu3 %v2954_v54 }
 0x31f   :  { %1379 = vmatpush.msra.mxu0 %v2957_v15  ;;  %1399 = vmatpush.msra.mxu1 %v2960_v63 }
 0x320   :  { %1419 = vmatpush.msra.mxu2 %v3122_v35  ;;  %1439 = vmatpush.msra.mxu3 %v2964_v1 }
 0x321   :  { %1380 = vmatpush.msra.mxu0 %v2967_v62  ;;  %1400 = vmatpush.msra.mxu1 %v2970_v4 }
 0x322   :  { %1420 = vmatpush.msra.mxu2 %v3128_v27  ;;  %1440 = vmatpush.msra.mxu3 %v2974_v7 }
 0x323   :  { %1381 = vmatpush.msra.mxu0 %v2977_v16  ;;  %1401 = vmatpush.msra.mxu1 %v2980_v5 }
 0x324   :  { %1421 = vmatpush.msra.mxu2 %v3134_v14  ;;  %1441 = vmatpush.msra.mxu3 %v2984_v24 }
 0x325   :  { %1382 = vmatpush.msra.mxu0 %v2987_v25  ;;  %1402 = vmatpush.msra.mxu1 %v2990_v10 }
 0x326   :  { %1422 = vmatpush.msra.mxu2 %v3140_v34  ;;  %1442 = vmatpush.msra.mxu3 %v2994_v26 }
 0x327   :  { %1383 = vmatpush.msra.mxu0 %v2997_v28  ;;  %1403 = vmatpush.msra.mxu1 %v3000_v11 }
 0x328   :  { %1423 = vmatpush.msra.mxu2 %v3146_v32  ;;  %1443 = vmatpush.msra.mxu3 %v3004_v29 }
 0x329   :  { %1384 = vmatpush.msra.mxu0 %v3007_v30  ;;  %1404 = vmatpush.msra.mxu1 %v3010_v12 }
 0x32a   :  { %1424 = vmatpush.msra.mxu2 %v3152_v37  ;;  %1444 = vmatpush.msra.mxu3 %v3014_v33 }
 0x32b   :  { %1385 = vmatpush.msra.mxu0 %v3017_v36  ;;  %1405 = vmatpush.msra.mxu1 %v3020_v17 }
 0x32c   :  { %1425 = vmatpush.msra.mxu2 %v3158_v45  ;;  %1445 = vmatpush.msra.mxu3 %v3024_v39 }
 0x32d   :  { %1386 = vmatpush.msra.mxu0 %v3027_v40  ;;  %1406 = vmatpush.msra.mxu1 %v3030_v18 }
 0x32e   :  { %1426 = vmatpush.msra.mxu2 %v3164_v50  ;;  %1446 = vmatpush.msra.mxu3 %v3034_v43 }
 0x32f   :  { %1387 = vmatpush.msra.mxu0 %v3037_v44  ;;  %1407 = vmatpush.msra.mxu1 %v3040_v20 }
 0x330   :  { %1427 = vmatpush.msra.mxu2 %v3672_v48  ;;  %1447 = vmatpush.msra.mxu3 %v3673_v52 }
 0x331   :  { %1388 = vmatpush.msra.mxu0 %v3674_v21  ;;  %1408 = vmatpush.msra.mxu1 %v3675_v53 }
 0x332   :  { %1428 = vmatpush.msra.mxu2 %v3676_v3  ;;  %1448 = vmatpush.msra.mxu3 %v3677_v49 }
 0x333   :  { %1389 = vmatpush.msra.mxu0 %v3678_v57  ;;  %1409 = vmatpush.msra.mxu1 %v3679_v42 }
 0x334   :  { %1429 = vmatpush.msra.mxu2 %v3680_v38  ;;  %1449 = vmatpush.msra.mxu3 %v3681_v0 }
 0x335   :  { %1390 = vmatpush.msra.mxu0 %v3682_v41  ;;  %1410 = vmatpush.msra.mxu1 %v3683_v6  ;;  %v3700_v6 = vld [vmem:[#allocation56_spill] sm:$0xff] }
 0x336   :  { %1430 = vmatpush.msra.mxu2 %v3684_v2  ;;  %1450 = vmatpush.msra.mxu3 %v3685_v9 }
 0x337   :  { %1391 = vmatpush.msra.mxu0 %v3686_v51  ;;  %1411 = vmatpush.msra.mxu1 %v3687_v19  ;;  %v3697_v51 = vld [vmem:[#allocation57_spill] sm:$0xff]  ;;  %v3698_v19 = vld [vmem:[#allocation66_spill] sm:$0xff] }
 0x338   :  { %1431 = vmatpush.msra.mxu2 %v3688_v13  ;;  %1451 = vmatpush.msra.mxu3 %v3689_v47  ;;  %v3699_v13 = vld [vmem:[#allocation44_spill] sm:$0xff] }
 0x339   :  { %1392 = vmatpush.msra.mxu0 %v3690_v60  ;;  %1412 = vmatpush.msra.mxu1 %v3691_v22  ;;  %v259_v9 = vadd.f32 %v3699_v13, %v3698_v19 }
 0x33a   :  { %1432 = vmatpush.msra.mxu2 %v3692_v31  ;;  %1452 = vmatpush.msra.mxu3 %v3693_v59 }
 0x33b   :  { %1393 = vmatpush.msra.mxu0 %v3694_v56  ;;  %1413 = vmatpush.msra.mxu1 %v3695_v8  ;;  %v3701_v56 = vld [vmem:[#allocation63_spill] sm:$0xff] }
 0x33c   :  { %1433 = vmatpush.msra.mxu2 %v3696_v46  ;;  %1453 = vmatpush.msra.mxu3 %v3697_v51 }
 0x398   :  { %v1079_v47 = vpop.f32.mrf.mxu0  ;;  %v1099_v2 = vpop.f32.mrf.mxu1 }
 0x399   :  { %v1142_v60 = vadd.f32 %v1079_v47, %v259_v9  ;;  %v1143_v22 = vadd.f32 %v1099_v2, %v3700_v6  ;;  %v3702_v6 = vld [vmem:[#allocation55_spill] sm:$0xff] }
 0x39b   :  { %v1909_v41 = vmul.f32 -1.442695, %v1142_v60  ;;  %v1910_v31 = vmul.f32 -1.442695, %v1143_v22 }
 0x39d   :  { %2005 = vpow2.f32 %v1909_v41 }
 0x39e   :  { %2007 = vpow2.f32 %v1910_v31 }
 0x39f   :  { %v1139_v59 = vpop.f32.mrf.mxu3  ;;  %v1119_v13 = vpop.f32.mrf.mxu2 }
 0x3a0   :  { %v1145_v0 = vadd.f32 %v1139_v59, %v3701_v56  ;;  %v1144_v2 = vadd.f32 %v1119_v13, %v3702_v6 }
 0x3a2   :  { %v1911_v8 = vmul.f32 -1.442695, %v1145_v0 }
 0x3a3   :  { %v2006_v38 = vpop.eup %2005 }
 0x3a4   :  { %v2008_v46 = vpop.eup %2007  ;;  %v1149_v42 = vadd.f32 1.0, %v2006_v38  ;;  %2009 = vpow2.f32 %v1911_v8 }
 0x3a5   :  { %v1168_v51 = vadd.f32 1.0, %v2008_v46 }
 0x3a6   :  { %2011 = vrcp.f32 %v1149_v42  ;;  %v1161_v0 = vand.u32 2147483648, %v1149_v42  ;;  %v1159_v46 = vand.u32 2147483647, %v1149_v42  ;;  %vm1155_vm3 = vweird.f32 %v1149_v42 }
 0x3a7   :  { %2013 = vrcp.f32 %v1168_v51  ;;  %v1180_v56 = vand.u32 2147483648, %v1168_v51  ;;  %v1178_v57 = vand.u32 2147483647, %v1168_v51  ;;  %vm1174_vm4 = vweird.f32 %v1168_v51 }
 0x3a8   :  { %v1162_v13 = vor.u32 1.1754944e-38, %v1161_v0  ;;  %vm1160_vm7 = vcmp.eq.f32.partialorder %v1159_v46, 8.507059e+37 }
 0x3a9   :  { %vm1179_vm8 = vcmp.eq.f32.partialorder %v1178_v57, 8.507059e+37 }
 0x3aa   :  { %v2010_v19 = vpop.eup %2009 }
 0x3ab   :  { %v1188_v9 = vadd.f32 1.0, %v2010_v19 }
 0x3ac   :  { %v2012_v47 = vpop.eup %2011 }
 0x3ad   :  { %v2014_v60 = vpop.eup %2013  ;;  %v1151_v41 = vmul.f32 %v2012_v47, %v1149_v42  ;;  %2015 = vrcp.f32 %v1188_v9  ;;  %vm1156_vm1 = vweird.f32 %v2012_v47  ;;  %v1200_v0 = vand.u32 2147483648, %v1188_v9 }
 0x3ae   :  { %v1170_v22 = vmul.f32 %v2014_v60, %v1168_v51  ;;  %2017 = vtanh.f32 %v1144_v2  ;;  %vm1175_vm2 = vweird.f32 %v2014_v60  ;;  %vm1157_vm5 = vmor %vm1155_vm3, %vm1156_vm1  ;;  %vm1194_vm10 = vweird.f32 %v1188_v9 }
 0x3af   :  { %v1152_v31 = vsub.f32 1.0, %v1151_v41  ;;  %vm1176_vm6 = vmor %vm1174_vm4, %vm1175_vm2  ;;  %v1181_v41 = vor.u32 1.1754944e-38, %v1180_v56  ;;  %v1201_v46 = vor.u32 1.1754944e-38, %v1200_v0 }
 0x3b0   :  { %v1171_v59 = vsub.f32 1.0, %v1170_v22 }
 0x3b1   :  { %v1153_v38 = vmul.f32 %v2012_v47, %v1152_v31 }
 0x3b2   :  { %v1172_v8 = vmul.f32 %v2014_v60, %v1171_v59 }
 0x3b3   :  { %v2016_v49 = vpop.eup %2015  ;;  %v1154_v19 = vadd.f32 %v2012_v47, %v1153_v38 }
 0x3b4   :  { %v1173_v6 = vadd.f32 %v2014_v60, %v1172_v8  ;;  %v1190_v3 = vmul.f32 %v2016_v49, %v1188_v9  ;;  %v2018_v2 = vpop.eup %2017  ;;  %vm1195_vm9 = vweird.f32 %v2016_v49 }
 0x3b5   :  { %v1158_v22 = vsel %vm1157_vm5, %v2012_v47, %v1154_v19  ;;  %v1198_v47 = vand.u32 2147483647, %v1188_v9  ;;  %vm1196_vm11 = vmor %vm1194_vm10, %vm1195_vm9 }
 0x3b6   :  { %v1163_v53 = vsel %vm1160_vm7, %v1162_v13, %v1158_v22  ;;  %v1177_v31 = vsel %vm1176_vm6, %v2014_v60, %v1173_v6  ;;  %v1191_v21 = vsub.f32 1.0, %v1190_v3  ;;  %v3733_v6 = vld [vmem:[#allocation58_spill] sm:$0xff] }
 0x3b7   :  { %v1182_v59 = vsel %vm1179_vm8, %v1181_v41, %v1177_v31  ;;  %v1205_v52 = vmul.f32 %v2018_v2, %v1163_v53  ;;  %vm1199_vm12 = vcmp.eq.f32.partialorder %v1198_v47, 8.507059e+37 }
 0x3b8   :  { %v1204_v48 = vmul.f32 %v1182_v59, %v3224_v23  ;;  %v1192_v38 = vmul.f32 %v2016_v49, %v1191_v21 }
 0x3ba   :  { %v3303_v42 = vadd.f32 %v1205_v52, %v1204_v48  ;;  %v1193_v51 = vadd.f32 %v2016_v49, %v1192_v38 }
 0x3bc   :  { %2019 = vtanh.f32 %v3303_v42  ;;  %v1197_v56 = vsel %vm1196_vm11, %v2016_v49, %v1193_v51 }
 0x3bd   :  { %v1202_v3 = vsel %vm1199_vm12, %v1201_v46, %v1197_v56 }
 0x3c2   :  { %v2020_v57 = vpop.eup %2019 }
 0x3c3   :  { %v3306_v60 = vmul.f32 %v2020_v57, %v1202_v3 }
 0x3c5   :  { %1236 = vmatmul.f32.vlgmr.msrb.gmra.mxu0 %v3306_v60  ;;  %1256 = vmatmul.f32.vlgmr.msrb.gmra.mxu1 %v3306_v60 }
 0x3c6   :  { %1276 = vmatmul.f32.vlgmr.msrb.gmra.mxu2 %v3306_v60  ;;  %1296 = vmatmul.f32.vlgmr.msrb.gmra.mxu3 %v3306_v60 }
 0x3c7   :  { %1536 = vmatpush.msrb.mxu0 %v2947_v55  ;;  %1556 = vmatpush.msrb.mxu1 %v2950_v61  ;;  %v3703_v55 = vld [vmem:[#allocation42_spill] sm:$0xff] }
 0x3c8   :  { %1576 = vmatpush.msrb.mxu2 %v3116_v58  ;;  %1596 = vmatpush.msrb.mxu3 %v2954_v54  ;;  %v3704_v61 = vld [vmem:[#allocation38_spill] sm:$0xff] }
 0x3c9   :  { %1537 = vmatpush.msrb.mxu0 %v2957_v15  ;;  %1557 = vmatpush.msrb.mxu1 %v2960_v63  ;;  %v3705_v54 = vld [vmem:[#allocation26_spill] sm:$0xff]  ;;  %v3706_v15 = vld [vmem:[#allocation21_spill] sm:$0xff]  ;;  %v3707_v63 = vld [vmem:[#allocation36_spill] sm:$0xff] }
 0x3ca   :  { %1577 = vmatpush.msrb.mxu2 %v3122_v35  ;;  %1597 = vmatpush.msrb.mxu3 %v2964_v1  ;;  %v3708_v1 = vld [vmem:[#allocation24_spill] sm:$0xff] }
 0x3cb   :  { %1538 = vmatpush.msrb.mxu0 %v2967_v62  ;;  %1558 = vmatpush.msrb.mxu1 %v2970_v4  ;;  %v3709_v62 = vld [vmem:[#allocation39_spill] sm:$0xff]  ;;  %v3710_v4 = vld [vmem:[#allocation30_spill] sm:$0xff] }
 0x3cc   :  { %1578 = vmatpush.msrb.mxu2 %v3128_v27  ;;  %1598 = vmatpush.msrb.mxu3 %v2974_v7  ;;  %v3711_v7 = vld [vmem:[#allocation32_spill] sm:$0xff] }
 0x3cd   :  { %1539 = vmatpush.msrb.mxu0 %v2977_v16  ;;  %1559 = vmatpush.msrb.mxu1 %v2980_v5  ;;  %v3712_v16 = vld [vmem:[#allocation23_spill] sm:$0xff] }
 0x3ce   :  { %1579 = vmatpush.msrb.mxu2 %v3134_v14  ;;  %1599 = vmatpush.msrb.mxu3 %v2984_v24  ;;  %v3713_v5 = vld [vmem:[#allocation27_spill] sm:$0xff]  ;;  %v3714_v24 = vld [vmem:[#allocation40_spill] sm:$0xff] }
 0x3cf   :  { %1540 = vmatpush.msrb.mxu0 %v2987_v25  ;;  %1560 = vmatpush.msrb.mxu1 %v2990_v10  ;;  %v3715_v25 = vld [vmem:[#allocation33_spill] sm:$0xff]  ;;  %v3716_v10 = vld [vmem:[#allocation43_spill] sm:$0xff] }
 0x3d0   :  { %1580 = vmatpush.msrb.mxu2 %v3140_v34  ;;  %1600 = vmatpush.msrb.mxu3 %v2994_v26  ;;  %v3717_v26 = vld [vmem:[#allocation34_spill] sm:$0xff]  ;;  %v3731_v14 = vld [vmem:[#allocation59_spill] sm:$0xff] }
 0x3d1   :  { %1541 = vmatpush.msrb.mxu0 %v2997_v28  ;;  %1561 = vmatpush.msrb.mxu1 %v3000_v11  ;;  %v3718_v28 = vld [vmem:[#allocation25_spill] sm:$0xff] }
 0x3d2   :  { %1581 = vmatpush.msrb.mxu2 %v3146_v32  ;;  %1601 = vmatpush.msrb.mxu3 %v3004_v29  ;;  %v3719_v11 = vld [vmem:[#allocation37_spill] sm:$0xff]  ;;  %v3720_v29 = vld [vmem:[#allocation48_spill] sm:$0xff] }
 0x3d3   :  { %1542 = vmatpush.msrb.mxu0 %v3007_v30  ;;  %1562 = vmatpush.msrb.mxu1 %v3010_v12  ;;  %v3721_v30 = vld [vmem:[#allocation29_spill] sm:$0xff] }
 0x3d4   :  { %1582 = vmatpush.msrb.mxu2 %v3152_v37  ;;  %1602 = vmatpush.msrb.mxu3 %v3014_v33  ;;  %v3722_v12 = vld [vmem:[#allocation41_spill] sm:$0xff]  ;;  %v3723_v33 = vld [vmem:[#allocation54_spill] sm:$0xff] }
 0x3d5   :  { %1543 = vmatpush.msrb.mxu0 %v3017_v36  ;;  %1563 = vmatpush.msrb.mxu1 %v3020_v17  ;;  %v3724_v36 = vld [vmem:[#allocation47_spill] sm:$0xff] }
 0x3d6   :  { %1583 = vmatpush.msrb.mxu2 %v3158_v45  ;;  %1603 = vmatpush.msrb.mxu3 %v3024_v39  ;;  %v3725_v17 = vld [vmem:[#allocation35_spill] sm:$0xff]  ;;  %v3726_v39 = vld [vmem:[#allocation28_spill] sm:$0xff] }
 0x3d7   :  { %1544 = vmatpush.msrb.mxu0 %v3027_v40  ;;  %1564 = vmatpush.msrb.mxu1 %v3030_v18  ;;  %v3727_v40 = vld [vmem:[#allocation51_spill] sm:$0xff]  ;;  %v3728_v18 = vld [vmem:[#allocation57_spill] sm:$0xff] }
 0x3d8   :  { %1584 = vmatpush.msrb.mxu2 %v3164_v50  ;;  %1604 = vmatpush.msrb.mxu3 %v3034_v43  ;;  %v3729_v43 = vld [vmem:[#allocation66_spill] sm:$0xff]  ;;  %v3732_v50 = vld [vmem:[#allocation67_spill] sm:$0xff] }
 0x3d9   :  { %1545 = vmatpush.msrb.mxu0 %v3037_v44  ;;  %1565 = vmatpush.msrb.mxu1 %v3040_v20  ;;  %v3730_v44 = vld [vmem:[#allocation45_spill] sm:$0xff] }
 0x3da   :  { %1585 = vmatpush.msrb.mxu2 %v3703_v55  ;;  %1605 = vmatpush.msrb.mxu3 %v3704_v61  ;;  %v262_v20 = vadd.f32 %v3730_v44, %v3729_v43  ;;  %v1706_v44 = vld [vmem:[#allocation14 + $0x58] sm:$0xff] }
 0x3db   :  { %1546 = vmatpush.msrb.mxu0 %v3705_v54  ;;  %1566 = vmatpush.msrb.mxu1 %v3706_v15 }
 0x3dc   :  { %1586 = vmatpush.msrb.mxu2 %v3707_v63  ;;  %1606 = vmatpush.msrb.mxu3 %v3708_v1 }
 0x3dd   :  { %1547 = vmatpush.msrb.mxu0 %v3709_v62  ;;  %1567 = vmatpush.msrb.mxu1 %v3710_v4 }
 0x3de   :  { %1587 = vmatpush.msrb.mxu2 %v3711_v7  ;;  %1607 = vmatpush.msrb.mxu3 %v3712_v16 }
 0x3df   :  { %1548 = vmatpush.msrb.mxu0 %v3713_v5  ;;  %1568 = vmatpush.msrb.mxu1 %v3714_v24 }
 0x3e0   :  { %1588 = vmatpush.msrb.mxu2 %v3715_v25  ;;  %1608 = vmatpush.msrb.mxu3 %v3716_v10 }
 0x3e1   :  { %1549 = vmatpush.msrb.mxu0 %v3717_v26  ;;  %1569 = vmatpush.msrb.mxu1 %v3718_v28 }
 0x3e2   :  { %1589 = vmatpush.msrb.mxu2 %v3719_v11  ;;  %1609 = vmatpush.msrb.mxu3 %v3720_v29 }
 0x3e3   :  { %1550 = vmatpush.msrb.mxu0 %v3721_v30  ;;  %1570 = vmatpush.msrb.mxu1 %v3722_v12 }
 0x3e4   :  { %1590 = vmatpush.msrb.mxu2 %v3723_v33  ;;  %1610 = vmatpush.msrb.mxu3 %v3724_v36 }
 0x3e5   :  { %1551 = vmatpush.msrb.mxu0 %v3725_v17  ;;  %1571 = vmatpush.msrb.mxu1 %v3726_v39  ;;  %v1709_v39 = vld [vmem:[#allocation14 + $0x70] sm:$0xff] }
 0x3e6   :  { %1591 = vmatpush.msrb.mxu2 %v3727_v40  ;;  %1611 = vmatpush.msrb.mxu3 %v3728_v18  ;;  %v1708_v40 = vld [vmem:[#allocation14 + $0x68] sm:$0xff]  ;;  %v1707_v18 = vld [vmem:[#allocation14 + $0x60] sm:$0xff] }
 0x442   :  { %v1237_v58 = vpop.f32.mrf.mxu0  ;;  %v1257_v35 = vpop.f32.mrf.mxu1 }
 0x443   :  { %v1300_v27 = vadd.f32 %v1237_v58, %v262_v20  ;;  %v1301_v34 = vadd.f32 %v1257_v35, %v3731_v14  ;;  %v3734_v20 = vld [vmem:[#allocation46_spill] sm:$0xff] }
 0x444   :  { %v265_v58 = vadd.f32 %v3734_v20, %v3729_v43  ;;  %v1705_v14 = vld [vmem:[#allocation14 + $0x50] sm:$0xff] }
 0x445   :  { %v1912_v32 = vmul.f32 -1.442695, %v1300_v27  ;;  %v1913_v37 = vmul.f32 -1.442695, %v1301_v34 }
 0x447   :  { %2021 = vpow2.f32 %v1912_v32  ;;  %v3735_v32 = vld [vmem:[#allocation62_spill] sm:$0xff] }
 0x448   :  { %2023 = vpow2.f32 %v1913_v37 }
 0x449   :  { %v1297_v45 = vpop.f32.mrf.mxu3  ;;  %v1277_v9 = vpop.f32.mrf.mxu2 }
 0x44a   :  { %v1303_v23 = vadd.f32 %v1297_v45, %v3732_v50  ;;  %v1302_v41 = vadd.f32 %v1277_v9, %v3733_v6  ;;  %v1704_v45 = vld [vmem:[#allocation14 + $0x48] sm:$0xff] }
 0x44c   :  { %v1914_v48 = vmul.f32 -1.442695, %v1303_v23 }
 0x44d   :  { %v2022_v52 = vpop.eup %2021 }
 0x44e   :  { %v2024_v21 = vpop.eup %2023  ;;  %v1307_v53 = vadd.f32 1.0, %v2022_v52  ;;  %2025 = vpow2.f32 %v1914_v48  ;;  %v1703_v48 = vld [vmem:[#allocation14 + $0x40] sm:$0xff]  ;;  %v1702_v52 = vld [vmem:[#allocation14 + $0x38] sm:$0xff] }
 0x44f   :  { %v1326_v49 = vadd.f32 1.0, %v2024_v21  ;;  %v1701_v21 = vld [vmem:[#allocation14 + $0x30] sm:$0xff] }
 0x450   :  { %2027 = vrcp.f32 %v1307_v53  ;;  %v1319_v51 = vand.u32 2147483648, %v1307_v53  ;;  %v1317_v56 = vand.u32 2147483647, %v1307_v53  ;;  %vm1313_vm15 = vweird.f32 %v1307_v53 }
 0x451   :  { %2029 = vrcp.f32 %v1326_v49  ;;  %v1338_v0 = vand.u32 2147483648, %v1326_v49  ;;  %v1336_v57 = vand.u32 2147483647, %v1326_v49  ;;  %vm1332_vm0 = vweird.f32 %v1326_v49 }
 0x452   :  { %v1320_v61 = vor.u32 1.1754944e-38, %v1319_v51  ;;  %vm1318_vm3 = vcmp.eq.f32.partialorder %v1317_v56, 8.507059e+37 }
 0x453   :  { %v1339_v63 = vor.u32 1.1754944e-38, %v1338_v0  ;;  %vm1337_vm4 = vcmp.eq.f32.partialorder %v1336_v57, 8.507059e+37  ;;  %v3737_v57 = vld [vmem:[#allocation61_spill] sm:$0xff] }
 0x454   :  { %v2026_v8 = vpop.eup %2025 }
 0x455   :  { %v1346_v19 = vadd.f32 1.0, %v2026_v8  ;;  %v1700_v8 = vld [vmem:[#allocation14 + $0x28] sm:$0xff] }
 0x456   :  { %v2028_v13 = vpop.eup %2027 }
 0x457   :  { %v2030_v22 = vpop.eup %2029  ;;  %v1309_v2 = vmul.f32 %v2028_v13, %v1307_v53  ;;  %2031 = vrcp.f32 %v1346_v19  ;;  %vm1314_vm13 = vweird.f32 %v2028_v13  ;;  %v1358_v11 = vand.u32 2147483648, %v1346_v19 }
 0x458   :  { %v1328_v31 = vmul.f32 %v2030_v22, %v1326_v49  ;;  %2033 = vtanh.f32 %v1302_v41  ;;  %vm1333_vm14 = vweird.f32 %v2030_v22  ;;  %vm1315_vm1 = vmor %vm1313_vm15, %vm1314_vm13  ;;  %vm1352_vm6 = vweird.f32 %v1346_v19  ;;  %v3736_v49 = vld [vmem:[#allocation68_spill] sm:$0xff] }
 0x459   :  { %v1310_v59 = vsub.f32 1.0, %v1309_v2  ;;  %vm1334_vm2 = vmor %vm1332_vm0, %vm1333_vm14  ;;  %v1356_v29 = vand.u32 2147483647, %v1346_v19  ;;  %v1359_v12 = vor.u32 1.1754944e-38, %v1358_v11 }
 0x45a   :  { %v1329_v38 = vsub.f32 1.0, %v1328_v31  ;;  %v1698_v31 = vld [vmem:[#allocation14 + $0x18] sm:$0xff] }
 0x45b   :  { %v1311_v47 = vmul.f32 %v2028_v13, %v1310_v59  ;;  %vm1357_vm8 = vcmp.eq.f32.partialorder %v1356_v29, 8.507059e+37  ;;  %v1697_v59 = vld [vmem:[#allocation14 + $0x10] sm:$0xff] }
 0x45c   :  { %v1330_v46 = vmul.f32 %v2030_v22, %v1329_v38  ;;  %v1696_v38 = vld [vmem:[#allocation14 + $0x8] sm:$0xff] }
 0x45d   :  { %v2032_v3 = vpop.eup %2031  ;;  %v1312_v55 = vadd.f32 %v2028_v13, %v1311_v47  ;;  %v1695_v47 = vld [vmem:[#allocation14] sm:$0xff] }
 0x45e   :  { %v1331_v54 = vadd.f32 %v2030_v22, %v1330_v46  ;;  %v1348_v15 = vmul.f32 %v2032_v3, %v1346_v19  ;;  %v2034_v62 = vpop.eup %2033  ;;  %vm1353_vm5 = vweird.f32 %v2032_v3 }
 0x45f   :  { %v1316_v1 = vsel %vm1315_vm1, %v2028_v13, %v1312_v55  ;;  %vm1354_vm7 = vmor %vm1352_vm6, %vm1353_vm5  ;;  %v1699_v13 = vld [vmem:[#allocation14 + $0x20] sm:$0xff] }
 0x460   :  { %v1321_v4 = vsel %vm1318_vm3, %v1320_v61, %v1316_v1  ;;  %v1335_v7 = vsel %vm1334_vm2, %v2030_v22, %v1331_v54  ;;  %v1349_v16 = vsub.f32 1.0, %v1348_v15 }
 0x461   :  { %v1340_v5 = vsel %vm1337_vm4, %v1339_v63, %v1335_v7  ;;  %v1363_v24 = vmul.f32 %v2034_v62, %v1321_v4 }
 0x462   :  { %v1362_v25 = vmul.f32 %v1340_v5, %v3303_v42  ;;  %v1350_v10 = vmul.f32 %v2032_v3, %v1349_v16  ;;  %v1710_v42 = vld [vmem:[#allocation14 + $0x78] sm:$0xff] }
 0x464   :  { %v3382_v26 = vadd.f32 %v1363_v24, %v1362_v25  ;;  %v1351_v28 = vadd.f32 %v2032_v3, %v1350_v10 }
 0x466   :  { %2035 = vtanh.f32 %v3382_v26  ;;  %v1355_v30 = vsel %vm1354_vm7, %v2032_v3, %v1351_v28 }
 0x467   :  { %v1360_v36 = vsel %vm1357_vm8, %v1359_v12, %v1355_v30 }
 0x46c   :  { %v2036_v33 = vpop.eup %2035 }
 0x46d   :  { %v3385_v17 = vmul.f32 %v2036_v33, %v1360_v36 }
 0x46f   :  { %1394 = vmatmul.f32.vlgmr.msra.gmra.mxu0 %v3385_v17  ;;  %1414 = vmatmul.f32.vlgmr.msra.gmra.mxu1 %v3385_v17 }
 0x470   :  { %1434 = vmatmul.f32.vlgmr.msra.gmra.mxu2 %v3385_v17  ;;  %1454 = vmatmul.f32.vlgmr.msra.gmra.mxu3 %v3385_v17 }
 0x471   :  { %1715 = vmatpush.msra.mxu0 %v1710_v42 }
 0x473   :  { %1716 = vmatpush.msra.mxu0 %v1709_v39 }
 0x475   :  { %1717 = vmatpush.msra.mxu0 %v1708_v40 }
 0x477   :  { %1718 = vmatpush.msra.mxu0 %v1707_v18 }
 0x479   :  { %1719 = vmatpush.msra.mxu0 %v1706_v44 }
 0x47b   :  { %1720 = vmatpush.msra.mxu0 %v1705_v14 }
 0x47d   :  { %1721 = vmatpush.msra.mxu0 %v1704_v45 }
 0x47f   :  { %1722 = vmatpush.msra.mxu0 %v1703_v48  ;;  %v3741_v48 = vld [vmem:[#allocation50_spill] sm:$0xff] }
 0x481   :  { %1723 = vmatpush.msra.mxu0 %v1702_v52  ;;  %v3742_v52 = vld [vmem:[#allocation49_spill] sm:$0xff] }
 0x483   :  { %1724 = vmatpush.msra.mxu0 %v1701_v21  ;;  %v268_v21 = vadd.f32 %v3742_v52, %v3729_v43 }
 0x485   :  { %1725 = vmatpush.msra.mxu0 %v1700_v8  ;;  %v3743_v8 = vld [vmem:[#allocation65_spill] sm:$0xff] }
 0x487   :  { %1726 = vmatpush.msra.mxu0 %v1699_v13 }
 0x489   :  { %1727 = vmatpush.msra.mxu0 %v1698_v31 }
 0x48b   :  { %1728 = vmatpush.msra.mxu0 %v1697_v59 }
 0x48d   :  { %1729 = vmatpush.msra.mxu0 %v1696_v38 }
 0x48f   :  { %1730 = vmatpush.msra.mxu0 %v1695_v47 }
 0x4ec   :  { %v1395_v35 = vpop.f32.mrf.mxu0  ;;  %v1415_v27 = vpop.f32.mrf.mxu1 }
 0x4ed   :  { %v1458_v34 = vadd.f32 %v1395_v35, %v265_v58  ;;  %v1459_v37 = vadd.f32 %v1415_v27, %v3735_v32 }
 0x4ef   :  { %v1915_v50 = vmul.f32 -1.442695, %v1458_v34  ;;  %v1916_v23 = vmul.f32 -1.442695, %v1459_v37 }
 0x4f1   :  { %2037 = vpow2.f32 %v1915_v50  ;;  %v3739_v50 = vld [vmem:[#allocation22_spill] sm:$0xff] }
 0x4f2   :  { %2039 = vpow2.f32 %v1916_v23  ;;  %v3740_v23 = vld [vmem:[#allocation31_spill] sm:$0xff] }
 0x4f3   :  { %v1455_v53 = vpop.f32.mrf.mxu3  ;;  %v1435_v51 = vpop.f32.mrf.mxu2 }
 0x4f4   :  { %v1461_v9 = vadd.f32 %v1455_v53, %v3736_v49  ;;  %v1460_v3 = vadd.f32 %v1435_v51, %v3737_v57 }
 0x4f6   :  { %v1917_v19 = vmul.f32 -1.442695, %v1461_v9 }
 0x4f7   :  { %v2038_v6 = vpop.eup %2037 }
 0x4f8   :  { %v2040_v41 = vpop.eup %2039  ;;  %v1465_v22 = vadd.f32 1.0, %v2038_v6  ;;  %2041 = vpow2.f32 %v1917_v19 }
 0x4f9   :  { %v1484_v2 = vadd.f32 1.0, %v2040_v41  ;;  %v3412_v41 = vld [vmem:[%s3448_s5] ss:$0 sm:$0xff]  ;;  %s2327_s5 = smov [#allocation15]  }
 0x4fa   :  { %2043 = vrcp.f32 %v1465_v22  ;;  %v1477_v1 = vand.u32 2147483648, %v1465_v22  ;;  %v1475_v7 = vand.u32 2147483647, %v1465_v22  ;;  %vm1471_vm11 = vweird.f32 %v1465_v22  ;;  %s1848_s23 = sshll.u32 %s2327_s5, 4  ;;  %s1849_s23 = int_to_ptr.vmem [resolvable:$true] %s1848_s23 }
 0x4fb   :  { %2045 = vrcp.f32 %v1484_v2  ;;  %v1496_v62 = vand.u32 2147483648, %v1484_v2  ;;  %v1494_v5 = vand.u32 2147483647, %v1484_v2  ;;  %vm1490_vm12 = vweird.f32 %v1484_v2 }
 0x4fc   :  { %v1478_v10 = vor.u32 1.1754944e-38, %v1477_v1  ;;  %vm1476_vm15 = vcmp.eq.f32.partialorder %v1475_v7, 8.507059e+37 }
 0x4fd   :  { %v1497_v29 = vor.u32 1.1754944e-38, %v1496_v62  ;;  %vm1495_vm0 = vcmp.eq.f32.partialorder %v1494_v5, 8.507059e+37 }
 0x4fe   :  { %v2042_v0 = vpop.eup %2041 }
 0x4ff   :  { %v1504_v56 = vadd.f32 1.0, %v2042_v0 }
 0x500   :  { %v2044_v46 = vpop.eup %2043 }
 0x501   :  { %v2046_v55 = vpop.eup %2045  ;;  %v1467_v61 = vmul.f32 %v2044_v46, %v1465_v22  ;;  %2047 = vrcp.f32 %v1504_v56  ;;  %vm1472_vm9 = vweird.f32 %v2044_v46  ;;  %v1516_v35 = vand.u32 2147483648, %v1504_v56 }
 0x502   :  { %v1486_v54 = vmul.f32 %v2046_v55, %v1484_v2  ;;  %2049 = vtanh.f32 %v1460_v3  ;;  %vm1491_vm10 = vweird.f32 %v2046_v55  ;;  %vm1473_vm13 = vmor %vm1471_vm11, %vm1472_vm9  ;;  %vm1510_vm2 = vweird.f32 %v1504_v56 }
 0x503   :  { %v1468_v15 = vsub.f32 1.0, %v1467_v61  ;;  %vm1492_vm14 = vmor %vm1490_vm12, %vm1491_vm10  ;;  %v1514_v27 = vand.u32 2147483647, %v1504_v56  ;;  %v1517_v34 = vor.u32 1.1754944e-38, %v1516_v35  ;;  %v3745_v61 = vld [vmem:[#allocation64_spill] sm:$0xff] }
 0x504   :  { %v1487_v63 = vsub.f32 1.0, %v1486_v54 }
 0x505   :  { %v1469_v4 = vmul.f32 %v2044_v46, %v1468_v15  ;;  %vm1515_vm4 = vcmp.eq.f32.partialorder %v1514_v27, 8.507059e+37 }
 0x506   :  { %v1488_v16 = vmul.f32 %v2046_v55, %v1487_v63 }
 0x507   :  { %v2048_v24 = vpop.eup %2047  ;;  %v1470_v25 = vadd.f32 %v2044_v46, %v1469_v4 }
 0x508   :  { %v1489_v28 = vadd.f32 %v2046_v55, %v1488_v16  ;;  %v1506_v11 = vmul.f32 %v2048_v24, %v1504_v56  ;;  %v2050_v12 = vpop.eup %2049  ;;  %vm1511_vm1 = vweird.f32 %v2048_v24 }
 0x509   :  { %v1474_v30 = vsel %vm1473_vm13, %v2044_v46, %v1470_v25  ;;  %vm1512_vm3 = vmor %vm1510_vm2, %vm1511_vm1 }
 0x50a   :  { %v1479_v33 = vsel %vm1476_vm15, %v1478_v10, %v1474_v30  ;;  %v1493_v36 = vsel %vm1492_vm14, %v2046_v55, %v1489_v28  ;;  %v1507_v42 = vsub.f32 1.0, %v1506_v11 }
 0x50b   :  { %v1498_v39 = vsel %vm1495_vm0, %v1497_v29, %v1493_v36  ;;  %v1521_v40 = vmul.f32 %v2050_v12, %v1479_v33 }
 0x50c   :  { %v1520_v18 = vmul.f32 %v1498_v39, %v3382_v26  ;;  %v1508_v44 = vmul.f32 %v2048_v24, %v1507_v42  ;;  %v3738_v26 = vld [vmem:[#allocation70_spill] sm:$0xff] }
 0x50e   :  { %v3397_v20 = vadd.f32 %v1521_v40, %v1520_v18  ;;  %v1509_v58 = vadd.f32 %v2048_v24, %v1508_v44 }
 0x510   :  { %2051 = vtanh.f32 %v3397_v20  ;;  %v1513_v14 = vsel %vm1512_vm3, %v2048_v24, %v1509_v58 }
 0x511   :  { %v1518_v37 = vsel %vm1515_vm4, %v1517_v34, %v1513_v14 }
 0x516   :  { %v2052_v32 = vpop.eup %2051 }
 0x517   :  { %v1524_v45 = vmul.f32 %v2052_v32, %v1518_v37 }
 0x519   :  { %1552 = vmatmul.f32.vlgmr.msrb.gmra.mxu0 %v1524_v45  ;;  %1572 = vmatmul.f32.vlgmr.msrb.gmra.mxu1 %v1524_v45 }
 0x51a   :  { %1592 = vmatmul.f32.vlgmr.msrb.gmra.mxu2 %v1524_v45  ;;  %1612 = vmatmul.f32.vlgmr.msrb.gmra.mxu3 %v1524_v45 }
 0x521   :  { %1731 = vmatmul.f32.vlgmr.msra.gmra.mxu0 %v3738_v26 }
 0x529   :  { %1734 = vmatmul.f32.gmra.mxu0 %v3739_v50 }
 0x531   :  { %1737 = vmatmul.f32.gmra.mxu0 %v3740_v23 }
 0x539   :  { %1740 = vmatmul.f32.gmra.mxu0 %v3741_v48 }
 0x541   :  { %1743 = vmatmul.f32.gmra.mxu0 %v3306_v60 }
 0x549   :  { %1746 = vmatmul.f32.gmra.mxu0 %v3385_v17  ;;  %v3744_v17 = vld [vmem:[#allocation69_spill] sm:$0xff] }
 0x551   :  { %1749 = vmatmul.f32.gmra.mxu0 %v1524_v45 }
 0x596   :  { %v1553_v53 = vpop.f32.mrf.mxu0  ;;  %v1573_v49 = vpop.f32.mrf.mxu1 }
 0x597   :  { %v1616_v9 = vadd.f32 %v1553_v53, %v268_v21  ;;  %v1617_v19 = vadd.f32 %v1573_v49, %v3743_v8 }
 0x599   :  { %v1918_v13 = vmul.f32 -1.442695, %v1616_v9  ;;  %v1919_v6 = vmul.f32 -1.442695, %v1617_v19 }
 0x59b   :  { %2053 = vpow2.f32 %v1918_v13 }
 0x59c   :  { %2055 = vpow2.f32 %v1919_v6 }
 0x59d   :  { %v1613_v60 = vpop.f32.mrf.mxu3  ;;  %v1593_v56 = vpop.f32.mrf.mxu2 }
 0x59e   :  { %v1619_v22 = vadd.f32 %v1613_v60, %v3744_v17  ;;  %v1732_v2 = vpop.f32.mrf.mxu0  ;;  %v1618_v54 = vadd.f32 %v1593_v56, %v3745_v61 }
 0x59f   :  { %v3416_v43 = vadd.f32 %v3412_v41, %v1732_v2 }
 0x5a0   :  { %v1920_v31 = vmul.f32 -1.442695, %v1619_v22 }
 0x5a1   :  { %v2054_v59 = vpop.eup %2053  ;;  %1756 = vmax.xlane.f32.xlu0 %v3416_v43 }
 0x5a2   :  { %v2056_v38 = vpop.eup %2055  ;;  %v1623_v51 = vadd.f32 1.0, %v2054_v59  ;;  %2057 = vpow2.f32 %v1920_v31 }
 0x5a3   :  { %v1642_v0 = vadd.f32 1.0, %v2056_v38 }
 0x5a4   :  { %2059 = vrcp.f32 %v1623_v51  ;;  %v1633_v7 = vand.u32 2147483647, %v1623_v51  ;;  %v1635_v16 = vand.u32 2147483648, %v1623_v51  ;;  %vm1629_vm7 = vweird.f32 %v1623_v51 }
 0x5a5   :  { %2061 = vrcp.f32 %v1642_v0  ;;  %v1654_v24 = vand.u32 2147483648, %v1642_v0  ;;  %v1652_v11 = vand.u32 2147483647, %v1642_v0  ;;  %vm1648_vm8 = vweird.f32 %v1642_v0 }
 0x5a6   :  { %v1735_v47 = vpop.f32.mrf.mxu0  ;;  %v1636_v12 = vor.u32 1.1754944e-38, %v1635_v16  ;;  %vm1634_vm10 = vcmp.eq.f32.partialorder %v1633_v7, 8.507059e+37 }
 0x5a7   :  { %v3420_v46 = vadd.f32 %v3412_v41, %v1735_v47  ;;  %v1655_v42 = vor.u32 1.1754944e-38, %v1654_v24  ;;  %vm1653_vm12 = vcmp.eq.f32.partialorder %v1652_v11, 8.507059e+37 }
 0x5a8   :  { %v2058_v57 = vpop.eup %2057 }
 0x5a9   :  { %v1662_v3 = vadd.f32 1.0, %v2058_v57  ;;  %1758 = vmax.xlane.f32.xlu0 %v3420_v46 }
 0x5aa   :  { %v2060_v55 = vpop.eup %2059 }
 0x5ab   :  { %v2062_v15 = vpop.eup %2061  ;;  %v1625_v63 = vmul.f32 %v2060_v55, %v1623_v51  ;;  %2063 = vrcp.f32 %v1662_v3  ;;  %vm1630_vm5 = vweird.f32 %v2060_v55  ;;  %v1674_v50 = vand.u32 2147483648, %v1662_v3 }
 0x5ac   :  { %v1644_v1 = vmul.f32 %v2062_v15, %v1642_v0  ;;  %2065 = vtanh.f32 %v1618_v54  ;;  %vm1649_vm6 = vweird.f32 %v2062_v15  ;;  %vm1631_vm9 = vmor %vm1629_vm7, %vm1630_vm5  ;;  %vm1668_vm14 = vweird.f32 %v1662_v3 }
 0x5ad   :  { %v1626_v62 = vsub.f32 1.0, %v1625_v63  ;;  %vm1650_vm11 = vmor %vm1648_vm8, %vm1649_vm6  ;;  %v1672_v23 = vand.u32 2147483647, %v1662_v3  ;;  %v1675_v21 = vor.u32 1.1754944e-38, %v1674_v50 }
 0x5ae   :  { %v1645_v4 = vsub.f32 1.0, %v1644_v1  ;;  %v1738_v5 = vpop.f32.mrf.mxu0 }
 0x5af   :  { %v1627_v25 = vmul.f32 %v2060_v55, %v1626_v62  ;;  %v3425_v10 = vadd.f32 %v3412_v41, %v1738_v5  ;;  %vm1673_vm0 = vcmp.eq.f32.partialorder %v1672_v23, 8.507059e+37 }
 0x5b0   :  { %v1646_v28 = vmul.f32 %v2062_v15, %v1645_v4 }
 0x5b1   :  { %v2064_v29 = vpop.eup %2063  ;;  %v1628_v30 = vadd.f32 %v2060_v55, %v1627_v25  ;;  %1760 = vmax.xlane.f32.xlu1 %v3425_v10 }
 0x5b2   :  { %v1647_v33 = vadd.f32 %v2062_v15, %v1646_v28  ;;  %v1664_v36 = vmul.f32 %v2064_v29, %v1662_v3  ;;  %v2066_v40 = vpop.eup %2065  ;;  %vm1669_vm13 = vweird.f32 %v2064_v29 }
 0x5b3   :  { %v1632_v39 = vsel %vm1631_vm9, %v2060_v55, %v1628_v30  ;;  %vm1670_vm15 = vmor %vm1668_vm14, %vm1669_vm13 }
 0x5b4   :  { %v1637_v18 = vsel %vm1634_vm10, %v1636_v12, %v1632_v39  ;;  %v1651_v44 = vsel %vm1650_vm11, %v2062_v15, %v1647_v33  ;;  %v1665_v58 = vsub.f32 1.0, %v1664_v36 }
 0x5b5   :  { %v1679_v35 = vmul.f32 %v2066_v40, %v1637_v18  ;;  %v1656_v27 = vsel %vm1653_vm12, %v1655_v42, %v1651_v44 }
 0x5b6   :  { %v1741_v14 = vpop.f32.mrf.mxu0  ;;  %v1666_v34 = vmul.f32 %v2064_v29, %v1665_v58  ;;  %v1678_v32 = vmul.f32 %v1656_v27, %v3397_v20 }
 0x5b7   :  { %v1742_v37 = vadd.f32 %v3412_v41, %v1741_v14 }
 0x5b8   :  { %v1680_v45 = vadd.f32 %v1679_v35, %v1678_v32  ;;  %v1667_v26 = vadd.f32 %v2064_v29, %v1666_v34 }
 0x5b9   :  { %1762 = vmax.xlane.f32.xlu1 %v1742_v37 }
 0x5ba   :  { %2067 = vtanh.f32 %v1680_v45  ;;  %v1671_v48 = vsel %vm1670_vm15, %v2064_v29, %v1667_v26 }
 0x5bb   :  { %v1676_v9 = vsel %vm1673_vm0, %v1675_v21, %v1671_v48 }
 0x5be   :  { %v1744_v52 = vpop.f32.mrf.mxu0 }
 0x5bf   :  { %v1745_v53 = vadd.f32 %v3412_v41, %v1744_v52 }
 0x5c0   :  { %v2068_v49 = vpop.eup %2067 }
 0x5c1   :  { %1764 = vmax.xlane.f32.xlu2 %v1745_v53  ;;  %v1682_v20 = vmul.f32 %v2068_v49, %v1676_v9 }
 0x5c3   :  { %1752 = vmatmul.f32.gmra.mxu0 %v1682_v20 }
 0x5c6   :  { %v1747_v8 = vpop.f32.mrf.mxu0 }
 0x5c7   :  { %v1748_v19 = vadd.f32 %v3412_v41, %v1747_v8 }
 0x5c9   :  { %1766 = vmax.xlane.f32.xlu2 %v1748_v19 }
 0x5ce   :  { %v1750_v13 = vpop.f32.mrf.mxu0 }
 0x5cf   :  { %v1751_v6 = vadd.f32 %v3412_v41, %v1750_v13 }
 0x5d1   :  { %1768 = vmax.xlane.f32.xlu0 %v1751_v6 }
 0x614   :  { %v1757_v60 = vpop.xlane.xlu0 %1756 }
 0x615   :  { %v1772_v17 = vsub.f32 %v3416_v43, %v1757_v60 }
 0x617   :  { %v1780_v22 = vmul.f32 1.442695, %v1772_v17 }
 0x619   :  { %2069 = vpow2.f32 %v1780_v22 }
 0x61c   :  { %v1759_v2 = vpop.xlane.xlu0 %1758 }
 0x61d   :  { %v1773_v31 = vsub.f32 %v3420_v46, %v1759_v2 }
 0x61f   :  { %v2070_v59 = vpop.eup %2069  ;;  %v1782_v38 = vmul.f32 1.442695, %v1773_v31 }
 0x620   :  { %1796 = vadd.xlane.f32.xlu2 %v2070_v59 }
 0x621   :  { %2071 = vpow2.f32 %v1782_v38 }
 0x624   :  { %v1761_v51 = vpop.xlane.xlu1 %1760 }
 0x625   :  { %v1774_v54 = vsub.f32 %v3425_v10, %v1761_v51 }
 0x627   :  { %v2072_v0 = vpop.eup %2071  ;;  %v1784_v15 = vmul.f32 1.442695, %v1774_v54 }
 0x628   :  { %1798 = vadd.xlane.f32.xlu0 %v2072_v0 }
 0x62c   :  { %v1763_v47 = vpop.xlane.xlu1 %1762 }
 0x62d   :  { %v1775_v56 = vsub.f32 %v1742_v37, %v1763_v47 }
 0x62f   :  { %v1786_v57 = vmul.f32 1.442695, %v1775_v56 }
 0x631   :  { %2073 = vpow2.f32 %v1786_v57 }
 0x634   :  { %v1765_v3 = vpop.xlane.xlu2 %1764 }
 0x635   :  { %v1776_v55 = vsub.f32 %v1745_v53, %v1765_v3 }
 0x637   :  { %v2074_v61 = vpop.eup %2073  ;;  %v1788_v43 = vmul.f32 1.442695, %v1776_v55 }
 0x638   :  { %1802 = vadd.xlane.f32.xlu2 %v2074_v61 }
 0x639   :  { %2075 = vpow2.f32 %v1788_v43 }
 0x63a   :  { %2077 = vpow2.f32 %v1784_v15 }
 0x63c   :  { %v1767_v1 = vpop.xlane.xlu2 %1766 }
 0x63d   :  { %v1777_v4 = vsub.f32 %v1748_v19, %v1767_v1 }
 0x63f   :  { %v2076_v46 = vpop.eup %2075  ;;  %v1790_v24 = vmul.f32 1.442695, %v1777_v4 }
 0x640   :  { %v1753_v63 = vpop.f32.mrf.mxu0  ;;  %1804 = vadd.xlane.f32.xlu0 %v2076_v46  ;;  %v2078_v25 = vpop.eup %2077 }
 0x641   :  { %v1754_v62 = vadd.f32 %v3412_v41, %v1753_v63 }
 0x643   :  { %1770 = vmax.xlane.f32.xlu1 %v1754_v62 }
 0x644   :  { %v1769_v7 = vpop.xlane.xlu0 %1768 }
 0x645   :  { %v1778_v16 = vsub.f32 %v1751_v6, %v1769_v7 }
 0x647   :  { %v1792_v5 = vmul.f32 1.442695, %v1778_v16 }
 0x649   :  { %2079 = vpow2.f32 %v1792_v5 }
 0x64a   :  { %2081 = vpow2.f32 %v1790_v24 }
 0x64b   :  { %1800 = vadd.xlane.f32.xlu1 %v2078_v25 }
 0x64f   :  { %v2080_v28 = vpop.eup %2079 }
 0x650   :  { %1808 = vadd.xlane.f32.xlu2 %v2080_v28  ;;  %v2082_v10 = vpop.eup %2081 }
 0x653   :  { %1806 = vadd.xlane.f32.xlu1 %v2082_v10 }
 0x693   :  { %v1797_v11 = vpop.xlane.xlu2 %1796 }
 0x694   :  { %2083 = vlog2.f32 %v1797_v11 }
 0x69a   :  { %v2084_v29 = vpop.eup %2083 }
 0x69b   :  { %v1813_v30 = vmul.f32 0.6931472, %v2084_v29  ;;  %v1799_v41 = vpop.xlane.xlu0 %1798 }
 0x69c   :  { %2085 = vlog2.f32 %v1799_v41 }
 0x69d   :  { %v1828_v12 = vsub.f32 %v1772_v17, %v1813_v30 }
 0x69f   :  { %1836 = vst [vmem:[#allocation15] sm:$0xff] %v1828_v12 }
 0x6a2   :  { %v2086_v33 = vpop.eup %2085 }
 0x6a3   :  { %v1815_v36 = vmul.f32 0.6931472, %v2086_v33 }
 0x6a5   :  { %v1829_v42 = vsub.f32 %v1773_v31, %v1815_v36 }
 0x6a7   :  { %1837 = vst [vmem:[#allocation15 + $0x8] sm:$0xff] %v1829_v42 }
 0x6ab   :  { %v1803_v39 = vpop.xlane.xlu2 %1802 }
 0x6ac   :  { %2087 = vlog2.f32 %v1803_v39 }
 0x6b2   :  { %v2088_v40 = vpop.eup %2087 }
 0x6b3   :  { %v1819_v18 = vmul.f32 0.6931472, %v2088_v40  ;;  %v1805_v44 = vpop.xlane.xlu0 %1804 }
 0x6b4   :  { %2089 = vlog2.f32 %v1805_v44 }
 0x6b5   :  { %v1831_v58 = vsub.f32 %v1775_v56, %v1819_v18 }
 0x6b6   :  { %v1771_v35 = vpop.xlane.xlu1 %1770 }
 0x6b7   :  { %1839 = vst [vmem:[#allocation15 + $0x18] sm:$0xff] %v1831_v58  ;;  %v1779_v27 = vsub.f32 %v1754_v62, %v1771_v35 }
 0x6b9   :  { %v1794_v14 = vmul.f32 1.442695, %v1779_v27 }
 0x6ba   :  { %v2090_v34 = vpop.eup %2089 }
 0x6bb   :  { %v1821_v32 = vmul.f32 0.6931472, %v2090_v34  ;;  %2091 = vpow2.f32 %v1794_v14 }
 0x6bd   :  { %v1832_v37 = vsub.f32 %v1776_v55, %v1821_v32 }
 0x6be   :  { %v1801_v45 = vpop.xlane.xlu1 %1800 }
 0x6bf   :  { %1840 = vst [vmem:[#allocation15 + $0x20] sm:$0xff] %v1832_v37  ;;  %2093 = vlog2.f32 %v1801_v45 }
 0x6c1   :  { %v2092_v26 = vpop.eup %2091 }
 0x6c2   :  { %1810 = vadd.xlane.f32.xlu0 %v2092_v26 }
 0x6c3   :  { %v1809_v50 = vpop.xlane.xlu2 %1808 }
 0x6c4   :  { %2095 = vlog2.f32 %v1809_v50 }
 0x6c5   :  { %v2094_v23 = vpop.eup %2093 }
 0x6c6   :  { %v1817_v48 = vmul.f32 0.6931472, %v2094_v23  ;;  %v1807_v52 = vpop.xlane.xlu1 %1806 }
 0x6c7   :  { %2097 = vlog2.f32 %v1807_v52 }
 0x6c8   :  { %v1830_v21 = vsub.f32 %v1774_v54, %v1817_v48 }
 0x6ca   :  { %v2096_v53 = vpop.eup %2095  ;;  %1838 = vst [vmem:[#allocation15 + $0x10] sm:$0xff] %v1830_v21 }
 0x6cb   :  { %v1825_v49 = vmul.f32 0.6931472, %v2096_v53 }
 0x6cd   :  { %v2098_v9 = vpop.eup %2097  ;;  %v1834_v20 = vsub.f32 %v1778_v16, %v1825_v49 }
 0x6ce   :  { %v1823_v8 = vmul.f32 0.6931472, %v2098_v9 }
 0x6cf   :  { %1842 = vst [vmem:[#allocation15 + $0x30] sm:$0xff] %v1834_v20 }
 0x6d0   :  { %v1833_v19 = vsub.f32 %v1777_v4, %v1823_v8 }
 0x6d2   :  { %1841 = vst [vmem:[#allocation15 + $0x28] sm:$0xff] %v1833_v19 }
 0x735   :  { %v1811_v13 = vpop.xlane.xlu0 %1810 }
 0x736   :  { %2099 = vlog2.f32 %v1811_v13 }
 0x73c   :  { %v2100_v6 = vpop.eup %2099 }
 0x73d   :  { %v1827_v60 = vmul.f32 0.6931472, %v2100_v6 }
 0x73f   :  { %v1835_v17 = vsub.f32 %v1779_v27, %v1827_v60 }
 0x741   :  { %1843 = vst [vmem:[#allocation15 + $0x38] sm:$0xff] %v1835_v17 }
 0x742   :  { %1856 = dma.vmem_to_hbm [thread:$0]  %s1849_s23, 1024, %s1851_s26, [#allocation8], %s2322_s15, %s2322_s15, %s2323_s16  }
 0x743   :  { %2315 = dma.done.wait [#allocation8], 1024  }
 0x744   :  { %2316 = vsyncadd [#allocation8], 4294966272 }
 0x745   :  { %1861 = vsyncpa [#allocation7], 1 }
 0x746   :  { %1862 = vsyncpa [#allocation10], 1 }
 0x747   :  { %1863 = vsyncpa [#allocation13], 1 }
 0x748   :  { %1864 = vsyncpa [#allocation8], 1 }

</bundles_post_ra>
